<compile_context>
chip_gen: v6e
topology: v6e:2x2x1
jax: 0.10.0
libtpu: 0.0.40
codegen_flags: <defaults>
</compile_context>

<pallas_src>
import functools

import jax
import jax.numpy as jnp
from jax import lax
from jax.experimental import pallas as pl
from jax.experimental.pallas import tpu as pltpu

_TM_TARGET = 1024                  # row-tile target; sweep 512-2048 per TPU gen
_VMEM_LIMIT = 32 * 1024 * 1024     # raised scoped-VMEM budget (safe on v5e/v6e/v7x)
_POOL_PAD = -1e30                  # sentinel for max-pool spatial padding


def _round_up(x, m):
    return ((x + m - 1) // m) * m


def _pick_row_tile(m, target=_TM_TARGET):
    # row tile must be a multiple of 8 (sublane); clamp to the problem size
    return min(target, _round_up(m, 8))


# ---------------------------------------------------------------------------
# Pallas kernels
# ---------------------------------------------------------------------------
def _conv_stats_kernel(p_ref, w_ref, y_ref, s1_ref, s2_ref):
    """One (TM, Kd) x (Kd, Cout) GEMM tile (bf16 in, f32 acc) plus per-chunk
    per-channel sum / sum-of-squares partials for the BatchNorm batch stats."""
    y = jnp.dot(p_ref[...], w_ref[...], preferred_element_type=jnp.float32)
    y_ref[...] = y
    s1_ref[...] = jnp.sum(y, axis=0, keepdims=True)[None]        # (1, 1, Cout)
    s2_ref[...] = jnp.sum(y * y, axis=0, keepdims=True)[None]    # (1, 1, Cout)


def _bn_relu_pool_kernel(win_ref, scale_ref, shift_ref, o_ref):
    """Fused BatchNorm affine + ReLU + max over the 3x3 pool-tap axis.
    Padded taps carry the _POOL_PAD sentinel and are dropped in-kernel:
    post-ReLU valid values are >= 0 and every pool window has >= 1 valid tap,
    so replacing padded taps by 0 never changes the max."""
    w = win_ref[...]                                  # (9, TM, C)
    scale = scale_ref[...][None]                      # (1, 1, C)
    shift = shift_ref[...][None]                      # (1, 1, C)
    a = jnp.maximum(w * scale + shift, 0.0)
    a = jnp.where(w > 0.5 * _POOL_PAD, a, 0.0)        # drop sentinel (padded) taps
    o_ref[...] = jnp.max(a, axis=0)                   # (TM, C)


# ---------------------------------------------------------------------------
# Pallas wrappers
# ---------------------------------------------------------------------------
def conv_gemm_stats(patches, w2d):
    """patches: (M, Kd) f32, w2d: (Kd, Cout) f32 ->
    (y[M, Cout] f32, sum[Cout] f32, sumsq[Cout] f32)."""
    M, Kd = patches.shape
    Cout = w2d.shape[1]

    # Pad contraction dim to a multiple of 128 (clean lane layout); zero
    # columns/rows contribute exactly zero to the GEMM.
    Kd_p = _round_up(Kd, 128)
    if Kd_p != Kd:
        patches = jnp.pad(patches, ((0, 0), (0, Kd_p - Kd)))
        w2d = jnp.pad(w2d, ((0, Kd_p - Kd), (0, 0)))

    # bf16 inputs, f32 MXU accumulation.
    patches = patches.astype(jnp.bfloat16)
    w2d = w2d.astype(jnp.bfloat16)

    tm = _pick_row_tile(M)
    Mp = _round_up(M, tm)
    if Mp != M:
        # zero rows contribute zero to s1/s2 and are sliced off y afterwards
        patches = jnp.pad(patches, ((0, Mp - M), (0, 0)))
    n_chunks = Mp // tm

    y, s1, s2 = pl.pallas_call(
        _conv_stats_kernel,
        out_shape=(jax.ShapeDtypeStruct((Mp, Cout), jnp.float32),
                   jax.ShapeDtypeStruct((n_chunks, 1, Cout), jnp.float32),
                   jax.ShapeDtypeStruct((n_chunks, 1, Cout), jnp.float32)),
        grid=(n_chunks,),
        in_specs=[pl.BlockSpec((tm, Kd_p), lambda i: (i, 0)),
                  pl.BlockSpec((Kd_p, Cout), lambda i: (0, 0))],
        out_specs=(pl.BlockSpec((tm, Cout), lambda i: (i, 0)),
                   pl.BlockSpec((1, 1, Cout), lambda i: (i, 0, 0)),
                   pl.BlockSpec((1, 1, Cout), lambda i: (i, 0, 0))),
        compiler_params=pltpu.CompilerParams(
            dimension_semantics=("parallel",),
            vmem_limit_bytes=_VMEM_LIMIT),
    )(patches, w2d)

    return y[:M], jnp.sum(s1[:, 0, :], axis=0), jnp.sum(s2[:, 0, :], axis=0)


def bn_relu_pool(windows, scale, shift):
    """windows: (9, M, C) f32 (sentinel-padded taps); scale/shift: (C,) -> (M, C)."""
    KW, M, C = windows.shape
    tm = _pick_row_tile(M)
    Mp = _round_up(M, tm)
    if Mp != M:
        windows = jnp.pad(windows, ((0, 0), (0, Mp - M), (0, 0)))

    out = pl.pallas_call(
        _bn_relu_pool_kernel,
        out_shape=jax.ShapeDtypeStruct((Mp, C), jnp.float32),
        grid=(Mp // tm,),
        in_specs=[pl.BlockSpec((KW, tm, C), lambda i: (0, i, 0)),
                  pl.BlockSpec((1, C), lambda i: (0, 0)),
                  pl.BlockSpec((1, C), lambda i: (0, 0))],
        out_specs=pl.BlockSpec((tm, C), lambda i: (i, 0)),
        compiler_params=pltpu.CompilerParams(
            dimension_semantics=("parallel",),
            vmem_limit_bytes=_VMEM_LIMIT),
    )(windows, scale[None], shift[None])
    return out[:M]


# ---------------------------------------------------------------------------
# ResNetBasicStem forward (Conv3d -> BN(train stats) -> ReLU -> MaxPool3d)
# ---------------------------------------------------------------------------
@functools.partial(jax.jit, static_argnames=("kernel", "stride", "padding", "eps"))
def resnet_basic_stem_forward(x, w, gamma, beta, *, kernel, stride, padding,
                              eps=1e-5):
    # x: (N, Cin, T, H, W) f32 ; w: (kT, kH, kW, Cin, Cout) f32
    N, Cin, T, H, W = x.shape
    kT, kH, kW = kernel
    sT, sH, sW = stride
    pT, pH, pW = padding
    Cout = w.shape[-1]

    xl = jnp.transpose(x, (0, 2, 3, 4, 1))                       # (N,T,H,W,Cin)
    xp = jnp.pad(xl, ((0, 0), (pT, pT), (pH, pH), (pW, pW), (0, 0)))
    To = (T + 2 * pT - kT) // sT + 1
    Ho = (H + 2 * pH - kH) // sH + 1
    Wo = (W + 2 * pW - kW) // sW + 1

    # im2col (JAX glue)
    taps = []
    for kt in range(kT):
        for kh in range(kH):
            for kw in range(kW):
                taps.append(xp[:,
                               kt:kt + (To - 1) * sT + 1:sT,
                               kh:kh + (Ho - 1) * sH + 1:sH,
                               kw:kw + (Wo - 1) * sW + 1:sW, :])
    Ktaps = kT * kH * kW
    M = N * To * Ho * Wo
    patches = jnp.stack(taps, axis=-2).reshape(M, Ktaps * Cin)
    w2d = w.reshape(Ktaps * Cin, Cout)

    # hot path: conv GEMM + batch-stat partials (Pallas, MXU, bf16 inputs)
    y, s1, s2 = conv_gemm_stats(patches, w2d)

    # BatchNorm3d in training mode: biased batch statistics per channel
    mean = s1 / M
    var = jnp.maximum(s2 / M - mean * mean, 0.0)
    scale = gamma * lax.rsqrt(var + eps)
    shift = beta - mean * scale

    # MaxPool3d kernel [1,3,3], stride [1,2,2], padding [0,1,1]
    y5 = y.reshape(N, To, Ho, Wo, Cout)
    Hp = (Ho + 2 - 3) // 2 + 1
    Wp = (Wo + 2 - 3) // 2 + 1
    ypad = jnp.pad(y5, ((0, 0), (0, 0), (1, 1), (1, 1), (0, 0)),
                   constant_values=_POOL_PAD)                    # sentinel pad
    wins = []
    for kh in range(3):
        for kw in range(3):
            wins.append(ypad[:, :,
                             kh:kh + (Hp - 1) * 2 + 1:2,
                             kw:kw + (Wp - 1) * 2 + 1:2, :])
    Mpool = N * To * Hp * Wp
    windows = jnp.stack(wins, axis=0).reshape(9, Mpool, Cout)

    # hot path: fused BN affine + ReLU + 3x3 max-pool (Pallas, no mask array)
    out = bn_relu_pool(windows, scale, shift)
    out = out.reshape(N, To, Hp, Wp, Cout)
    return jnp.transpose(out, (0, 4, 1, 2, 3))                   # back to NCDHW


# ---------------------------------------------------------------------------
# VideoModelStem (multi-pathway wrapper) with deterministic parameter init
# ---------------------------------------------------------------------------
class VideoModelStemPallas:
    def __init__(self, dim_in, dim_out, kernel, stride, padding, eps=1e-5, seed=0):
        assert len({len(dim_in), len(dim_out), len(kernel), len(stride),
                    len(padding)}) == 1, "Input pathway dimensions are not consistent."
        self.num_pathways = len(dim_in)
        self.kernel = tuple(tuple(k) for k in kernel)
        self.stride = tuple(tuple(s) for s in stride)
        self.padding = tuple(tuple(p) for p in padding)
        self.eps = float(eps)
        self.params = []
        key = jax.random.PRNGKey(seed)
        for p in range(self.num_pathways):
            key, kw_, kg_, kb_ = jax.random.split(key, 4)
            kT, kH, kW = self.kernel[p]
            w = 0.05 * jax.random.normal(
                kw_, (kT, kH, kW, dim_in[p], dim_out[p]), jnp.float32)
            gamma = 1.0 + 0.1 * jax.random.normal(kg_, (dim_out[p],), jnp.float32)
            beta = 0.1 * jax.random.normal(kb_, (dim_out[p],), jnp.float32)
            self.params.append((w, gamma, beta))

    def __call__(self, xs):
        assert len(xs) == self.num_pathways
        outs = []
        for p, x in enumerate(xs):
            w, gamma, beta = self.params[p]
            outs.append(resnet_basic_stem_forward(
                x, w, gamma, beta,
                kernel=self.kernel[p], stride=self.stride[p],
                padding=self.padding[p], eps=self.eps))
        return outs


# ---------------------------------------------------------------------------
# Pure-JAX f32 reference (for correctness check)
# ---------------------------------------------------------------------------
def reference_stem(x, w, gamma, beta, kernel, stride, padding, eps=1e-5):
    w_oidhw = jnp.transpose(w, (4, 3, 0, 1, 2))
    y = lax.conv_general_dilated(
        x, w_oidhw, window_strides=tuple(stride),
        padding=[(p, p) for p in padding],
        dimension_numbers=("NCDHW", "OIDHW", "NCDHW"))
    mean = jnp.mean(y, axis=(0, 2, 3, 4), keepdims=True)
    var = jnp.mean((y - mean) ** 2, axis=(0, 2, 3, 4), keepdims=True)
    yb = (y - mean) * lax.rsqrt(var + eps) * gamma.reshape(1, -1, 1, 1, 1) \
         + beta.reshape(1, -1, 1, 1, 1)
    yr = jnp.maximum(yb, 0.0)
    return lax.reduce_window(
        yr, -jnp.inf, lax.max,
        window_dimensions=(1, 1, 1, 3, 3),
        window_strides=(1, 1, 1, 2, 2),
        padding=((0, 0), (0, 0), (0, 0), (1, 1), (1, 1)))


if __name__ == "__main__":
    # Two-pathway (SlowFast-style) configuration at small shapes.
    dim_in = [3, 3]
    dim_out = [16, 8]
    kernel = [[1, 7, 7], [5, 7, 7]]
    stride = [[1, 2, 2], [1, 2, 2]]
    padding = [[0, 3, 3], [2, 3, 3]]

    stem = VideoModelStemPallas(dim_in, dim_out, kernel, stride, padding, seed=0)

    key = jax.random.PRNGKey(0)
    k0, k1 = jax.random.split(key)
    x0 = jax.random.normal(k0, (2, 3, 4, 16, 16), jnp.float32)   # slow pathway
    x1 = jax.random.normal(k1, (2, 3, 8, 16, 16), jnp.float32)   # fast pathway
    xs = [x0, x1]

    outs = stem(xs)
    outs = [jax.block_until_ready(o) for o in outs]

    ok = True
    for p in range(2):
        w, gamma, beta = stem.params[p]
        ref = reference_stem(xs[p], w, gamma, beta, kernel[p], stride[p],
                             padding[p], stem.eps)
        ok &= outs[p].shape == ref.shape
        # tolerance absorbs the deliberate bf16 cast of the GEMM inputs
        ok &= bool(jnp.allclose(outs[p], ref, atol=2e-2, rtol=2e-2))

    if ok:
        print("KERNEL_OK")
    else:
        for p in range(2):
            w, gamma, beta = stem.params[p]
            ref = reference_stem(xs[p], w, gamma, beta, kernel[p], stride[p],
                                 padding[p], stem.eps)
            print("pathway", p, "max |err| =",
                  float(jnp.max(jnp.abs(outs[p] - ref))))
        print("MISMATCH")
</pallas_src>

<mosaic_0001>
module attributes {stable_mosaic.version = 11 : i64} {
  func.func @_conv_stats_kernel(%arg0: i32, %arg1: memref<512x256xbf16, #tpu.memory_space<vmem>>, %arg2: memref<256x16xbf16, #tpu.memory_space<vmem>>, %arg3: memref<512x16xf32, #tpu.memory_space<vmem>>, %arg4: memref<1x1x16xf32, #tpu.memory_space<vmem>>, %arg5: memref<1x1x16xf32, #tpu.memory_space<vmem>>) attributes {dimension_semantics = [#tpu.dimension_semantics<parallel>], iteration_bounds = array<i64: 1>, scalar_prefetch = 0 : i64, scratch_operands = 0 : i64, tpu.core_type = #tpu.core_type<tc>, window_params = [{transform_indices = @transform_0, window_bounds = array<i64: 512, 256>}, {pipeline_mode = #tpu.pipeline_mode<synchronous>, transform_indices = @transform_1, window_bounds = array<i64: 256, 16>}, {transform_indices = @transform_2, window_bounds = array<i64: 512, 16>}, {transform_indices = @transform_3, window_bounds = array<i64: 1, 1, 16>}, {transform_indices = @transform_4, window_bounds = array<i64: 1, 1, 16>}]} {
    %c0 = arith.constant 0 : index
    %c0_0 = arith.constant 0 : index
    %0 = vector.load %arg1[%c0, %c0_0] : memref<512x256xbf16, #tpu.memory_space<vmem>>, vector<512x256xbf16>
    %c0_1 = arith.constant 0 : index
    %c0_2 = arith.constant 0 : index
    %1 = vector.load %arg2[%c0_1, %c0_2] : memref<256x16xbf16, #tpu.memory_space<vmem>>, vector<256x16xbf16>
    %cst = arith.constant dense<0.000000e+00> : vector<512x16xf32>
    %2 = tpu.matmul %0, %1, %cst {dimension_numbers = #tpu.dot_dimension_numbers<[1], [0], [0], [1], [0, 0, 1, 1], [], []>} : vector<512x256xbf16>, vector<256x16xbf16>, vector<512x16xf32> -> vector<512x16xf32>
    %c0_3 = arith.constant 0 : index
    %c0_4 = arith.constant 0 : index
    %3 = vector.load %arg3[%c0_3, %c0_4] : memref<512x16xf32, #tpu.memory_space<vmem>>, vector<512x16xf32>
    tpu.vector_store %arg3[%c0_3, %c0_4], %2 {strides = array<i32>} : memref<512x16xf32, #tpu.memory_space<vmem>>, vector<512x16xf32>,
    %cst_5 = arith.constant dense<0.000000e+00> : vector<16xf32>
    %4 = vector.multi_reduction <add>, %2, %cst_5 [0] : vector<512x16xf32> to vector<16xf32>
    %5 = vector.shape_cast %4 : vector<16xf32> to vector<1x16xf32>
    %6 = vector.shape_cast %5 : vector<1x16xf32> to vector<1x1x16xf32>
    %c0_6 = arith.constant 0 : index
    %c0_7 = arith.constant 0 : index
    %c0_8 = arith.constant 0 : index
    %7 = vector.load %arg4[%c0_6, %c0_7, %c0_8] : memref<1x1x16xf32, #tpu.memory_space<vmem>>, vector<1x1x16xf32>
    tpu.vector_store %arg4[%c0_6, %c0_7, %c0_8], %6 {strides = array<i32>} : memref<1x1x16xf32, #tpu.memory_space<vmem>>, vector<1x1x16xf32>,
    %8 = arith.mulf %2, %2 : vector<512x16xf32>
    %cst_9 = arith.constant dense<0.000000e+00> : vector<16xf32>
    %9 = vector.multi_reduction <add>, %8, %cst_9 [0] : vector<512x16xf32> to vector<16xf32>
    %10 = vector.shape_cast %9 : vector<16xf32> to vector<1x16xf32>
    %11 = vector.shape_cast %10 : vector<1x16xf32> to vector<1x1x16xf32>
    %c0_10 = arith.constant 0 : index
    %c0_11 = arith.constant 0 : index
    %c0_12 = arith.constant 0 : index
    %12 = vector.load %arg5[%c0_10, %c0_11, %c0_12] : memref<1x1x16xf32, #tpu.memory_space<vmem>>, vector<1x1x16xf32>
    tpu.vector_store %arg5[%c0_10, %c0_11, %c0_12], %11 {strides = array<i32>} : memref<1x1x16xf32, #tpu.memory_space<vmem>>, vector<1x1x16xf32>,
    return
  }
  func.func @transform_0(%arg0: i32) -> (i32, i32) {
    %c0_i32 = arith.constant 0 : i32
    %c0_i32_0 = arith.constant 0 : i32
    return %arg0, %c0_i32 : i32, i32
  }
  func.func @transform_1(%arg0: i32) -> (i32, i32) {
    %c0_i32 = arith.constant 0 : i32
    %c0_i32_0 = arith.constant 0 : i32
    %c0_i32_1 = arith.constant 0 : i32
    return %c0_i32, %c0_i32_0 : i32, i32
  }
  func.func @transform_2(%arg0: i32) -> (i32, i32) {
    %c0_i32 = arith.constant 0 : i32
    %c0_i32_0 = arith.constant 0 : i32
    return %arg0, %c0_i32 : i32, i32
  }
  func.func @transform_3(%arg0: i32) -> (i32, i32, i32) {
    %c0_i32 = arith.constant 0 : i32
    %c0_i32_0 = arith.constant 0 : i32
    %c0_i32_1 = arith.constant 0 : i32
    return %arg0, %c0_i32, %c0_i32_0 : i32, i32, i32
  }
  func.func @transform_4(%arg0: i32) -> (i32, i32, i32) {
    %c0_i32 = arith.constant 0 : i32
    %c0_i32_0 = arith.constant 0 : i32
    %c0_i32_1 = arith.constant 0 : i32
    return %arg0, %c0_i32, %c0_i32_0 : i32, i32, i32
  }
}

module attributes {stable_mosaic.version = 11 : i64} {
  func.func @_bn_relu_pool_kernel(%arg0: i32, %arg1: memref<9x128x16xf32, #tpu.memory_space<vmem>>, %arg2: memref<1x16xf32, #tpu.memory_space<vmem>>, %arg3: memref<1x16xf32, #tpu.memory_space<vmem>>, %arg4: memref<128x16xf32, #tpu.memory_space<vmem>>) attributes {dimension_semantics = [#tpu.dimension_semantics<parallel>], iteration_bounds = array<i64: 1>, scalar_prefetch = 0 : i64, scratch_operands = 0 : i64, tpu.core_type = #tpu.core_type<tc>, window_params = [{transform_indices = @transform_0, window_bounds = array<i64: 9, 128, 16>}, {pipeline_mode = #tpu.pipeline_mode<synchronous>, transform_indices = @transform_1, window_bounds = array<i64: 1, 16>}, {pipeline_mode = #tpu.pipeline_mode<synchronous>, transform_indices = @transform_2, window_bounds = array<i64: 1, 16>}, {transform_indices = @transform_3, window_bounds = array<i64: 128, 16>}]} {
    %c0 = arith.constant 0 : index
    %c0_0 = arith.constant 0 : index
    %c0_1 = arith.constant 0 : index
    %0 = vector.load %arg1[%c0, %c0_0, %c0_1] : memref<9x128x16xf32, #tpu.memory_space<vmem>>, vector<9x128x16xf32>
    %c0_2 = arith.constant 0 : index
    %c0_3 = arith.constant 0 : index
    %1 = vector.load %arg2[%c0_2, %c0_3] : memref<1x16xf32, #tpu.memory_space<vmem>>, vector<1x16xf32>
    %2 = vector.shape_cast %1 : vector<1x16xf32> to vector<1x1x16xf32>
    %c0_4 = arith.constant 0 : index
    %c0_5 = arith.constant 0 : index
    %3 = vector.load %arg3[%c0_4, %c0_5] : memref<1x16xf32, #tpu.memory_space<vmem>>, vector<1x16xf32>
    %4 = vector.shape_cast %3 : vector<1x16xf32> to vector<1x1x16xf32>
    %5 = vector.broadcast %2 : vector<1x1x16xf32> to vector<9x128x16xf32>
    %6 = arith.mulf %0, %5 : vector<9x128x16xf32>
    %7 = vector.broadcast %4 : vector<1x1x16xf32> to vector<9x128x16xf32>
    %8 = arith.addf %6, %7 : vector<9x128x16xf32>
    %cst = arith.constant 0.000000e+00 : f32
    %9 = vector.broadcast %cst : f32 to vector<9x128x16xf32>
    %10 = arith.maximumf %8, %9 : vector<9x128x16xf32>
    %cst_6 = arith.constant -5.000000e+29 : f32
    %11 = vector.broadcast %cst_6 : f32 to vector<9x128x16xf32>
    %12 = arith.cmpf ogt, %0, %11 : vector<9x128x16xf32>
    %cst_7 = arith.constant 0.000000e+00 : f32
    %13 = vector.broadcast %cst_7 : f32 to vector<9x128x16xf32>
    %14 = arith.select %12, %10, %13 : vector<9x128x16xi1>, vector<9x128x16xf32>
    %cst_8 = arith.constant dense<0xFF800000> : vector<128x16xf32>
    %15 = vector.multi_reduction <maximumf>, %14, %cst_8 [0] : vector<9x128x16xf32> to vector<128x16xf32>
    %c0_9 = arith.constant 0 : index
    %c0_10 = arith.constant 0 : index
    %16 = vector.load %arg4[%c0_9, %c0_10] : memref<128x16xf32, #tpu.memory_space<vmem>>, vector<128x16xf32>
    tpu.vector_store %arg4[%c0_9, %c0_10], %15 {strides = array<i32>} : memref<128x16xf32, #tpu.memory_space<vmem>>, vector<128x16xf32>,
    return
  }
  func.func @transform_0(%arg0: i32) -> (i32, i32, i32) {
    %c0_i32 = arith.constant 0 : i32
    %c0_i32_0 = arith.constant 0 : i32
    %c0_i32_1 = arith.constant 0 : i32
    return %c0_i32, %arg0, %c0_i32_0 : i32, i32, i32
  }
  func.func @transform_1(%arg0: i32) -> (i32, i32) {
    %c0_i32 = arith.constant 0 : i32
    %c0_i32_0 = arith.constant 0 : i32
    %c0_i32_1 = arith.constant 0 : i32
    return %c0_i32, %c0_i32_0 : i32, i32
  }
  func.func @transform_2(%arg0: i32) -> (i32, i32) {
    %c0_i32 = arith.constant 0 : i32
    %c0_i32_0 = arith.constant 0 : i32
    %c0_i32_1 = arith.constant 0 : i32
    return %c0_i32, %c0_i32_0 : i32, i32
  }
  func.func @transform_3(%arg0: i32) -> (i32, i32) {
    %c0_i32 = arith.constant 0 : i32
    %c0_i32_0 = arith.constant 0 : i32
    return %arg0, %c0_i32 : i32, i32
  }
}

</mosaic_0001>

<bundles_post_ra>
// kernel: resnet_basic_stem_forward.2
= control target key start
LH: loop header
LB: loop body
LE: loop exit
PB: predicated region body
PF: predicated region fallthrough
CT: control target
= control target key end

     0   :  { %v1451_v0 = vmov 0   ;;  %vm816_vm0 = vcmask 130048   ;;  %vm1014_vm1 = vcmask 122880   ;;  %s2469_s1 = inlined_call_operand.vmem [shape: bf16[256,16], index: 1, kind: input, shape index: {}]   ;;  %s2470_s0 = inlined_call_operand.vmem [shape: bf16[512,256], index: 0, kind: input, shape index: {}]   ;;  %s2471_s2 = inlined_call_operand.vmem [shape: f32[512,16], index: 2, kind: output, shape index: {0}]   ;;  %s2472_s3 = inlined_call_operand.vmem [shape: f32[1,1,16], index: 3, kind: output, shape index: {1}]   ;;  %s2473_s4 = inlined_call_operand.vmem [shape: f32[1,1,16], index: 4, kind: output, shape index: {2}]  }
   0x1   :  { %527 = vmatprep.subr.bf16.mxu0 %v1451_v0  ;;  %v1339_v1 = vld [vmem:[%s2469_s1 + $0x38] sm:$0xff]   ;;  %1306 = vmatprep.subr.bf16.mxu1 %v1451_v0  ;;  %v1340_v2 = vld [vmem:[%s2469_s1 + $0x30] sm:$0xff]   ;;  %v1341_v3 = vld [vmem:[%s2469_s1 + $0x28] sm:$0xff]  }
   0x2   :  { %528 = vmatpush1.bf16.msra.mxu0 %v1339_v1  ;;  %1322 = vmatpush1.bf16.msra.mxu1 %v1339_v1  ;;  %v1342_v4 = vld [vmem:[%s2469_s1 + $0x20] sm:$0xff]   ;;  %v1343_v5 = vld [vmem:[%s2469_s1 + $0x18] sm:$0xff]   ;;  %v1344_v7 = vld [vmem:[%s2469_s1 + $0x10] sm:$0xff]  }
   0x3   :  { %529 = vmatprep.subr.bf16.mxu0 %v1451_v0  ;;  %1307 = vmatprep.subr.bf16.mxu1 %v1451_v0  ;;  %v1357_v6 = vld [vmem:[%s2470_s0 + $0x4] ss:$8 sps:$4 sm:$0xff]   ;;  %v1347_v11 = vld [vmem:[%s2469_s1 + $0x78] sm:$0xff]   ;;  %v1348_v12 = vld [vmem:[%s2469_s1 + $0x70] sm:$0xff]  }
   0x4   :  { %559 = vmatprep.mubr.bf16.mxu0 %v1357_v6  ;;  %v1345_v8 = vld [vmem:[%s2469_s1 + $0x8] sm:$0xff]   ;;  %v1346_v9 = vld [vmem:[%s2469_s1] sm:$0xff]   ;;  %v1351_v15 = vld [vmem:[%s2469_s1 + $0x58] sm:$0xff]  }
   0x5   :  { %v1381_v10 = vld [vmem:[%s2470_s0 + $0x104] ss:$8 sps:$4 sm:$0xff]   ;;  %v1352_v16 = vld [vmem:[%s2469_s1 + $0x50] sm:$0xff]   ;;  %v1355_v19 = vld [vmem:[%s2470_s0] ss:$8 sps:$4 sm:$0xff]  }
   0x6   :  { %530 = vmatpush1.bf16.msra.mxu0 %v1340_v2  ;;  %1323 = vmatpush1.bf16.msra.mxu1 %v1340_v2  ;;  %v1349_v13 = vld [vmem:[%s2469_s1 + $0x68] sm:$0xff]   ;;  %v1350_v14 = vld [vmem:[%s2469_s1 + $0x60] sm:$0xff]   ;;  %v1358_v21 = vld [vmem:[%s2470_s0 + $0x14] ss:$8 sps:$4 sm:$0xff]  }
   0x7   :  { %531 = vmatprep.subr.bf16.mxu0 %v1451_v0  ;;  %1308 = vmatprep.subr.bf16.mxu1 %v1451_v0  ;;  %v1353_v17 = vld [vmem:[%s2469_s1 + $0x48] sm:$0xff]   ;;  %v1354_v18 = vld [vmem:[%s2469_s1 + $0x40] sm:$0xff]   ;;  %v1385_v22 = vld [vmem:[%s2470_s0 + $0x114] ss:$8 sps:$4 sm:$0xff]  }
   0x8   :  { %687 = vmatprep.mubr.bf16.mxu1 %v1381_v10  ;;  %v1379_v20 = vld [vmem:[%s2470_s0 + $0x100] ss:$8 sps:$4 sm:$0xff]   ;;  %v1360_v23 = vld [vmem:[%s2470_s0 + $0x10] ss:$8 sps:$4 sm:$0xff]   ;;  %v1361_v25 = vld [vmem:[%s2470_s0 + $0x24] ss:$8 sps:$4 sm:$0xff]  }
   0x9   :  { %v1387_v24 = vld [vmem:[%s2470_s0 + $0x110] ss:$8 sps:$4 sm:$0xff]   ;;  %v1391_v26 = vld [vmem:[%s2470_s0 + $0x124] ss:$8 sps:$4 sm:$0xff]   ;;  %v1363_v27 = vld [vmem:[%s2470_s0 + $0x20] ss:$8 sps:$4 sm:$0xff]  }
   0xa   :  { %532 = vmatpush1.bf16.msra.mxu0 %v1341_v3  ;;  %1324 = vmatpush1.bf16.msra.mxu1 %v1341_v3  ;;  %v1393_v28 = vld [vmem:[%s2470_s0 + $0x120] ss:$8 sps:$4 sm:$0xff]   ;;  %v1364_v29 = vld [vmem:[%s2470_s0 + $0x34] ss:$8 sps:$4 sm:$0xff]   ;;  %v1366_v31 = vld [vmem:[%s2470_s0 + $0x30] ss:$8 sps:$4 sm:$0xff]  }
   0xb   :  { %533 = vmatprep.subr.bf16.mxu0 %v1451_v0  ;;  %1309 = vmatprep.subr.bf16.mxu1 %v1451_v0  ;;  %v1397_v30 = vld [vmem:[%s2470_s0 + $0x134] ss:$8 sps:$4 sm:$0xff]   ;;  %v1399_v32 = vld [vmem:[%s2470_s0 + $0x130] ss:$8 sps:$4 sm:$0xff]   ;;  %v1367_v33 = vld [vmem:[%s2470_s0 + $0x44] ss:$8 sps:$4 sm:$0xff]  }
   0xc   :  { %v1403_v34 = vld [vmem:[%s2470_s0 + $0x144] ss:$8 sps:$4 sm:$0xff]   ;;  %v1369_v35 = vld [vmem:[%s2470_s0 + $0x40] ss:$8 sps:$4 sm:$0xff]   ;;  %v1370_v37 = vld [vmem:[%s2470_s0 + $0x54] ss:$8 sps:$4 sm:$0xff]  }
   0xd   :  { %v1405_v36 = vld [vmem:[%s2470_s0 + $0x140] ss:$8 sps:$4 sm:$0xff]   ;;  %v1409_v38 = vld [vmem:[%s2470_s0 + $0x154] ss:$8 sps:$4 sm:$0xff]   ;;  %v1372_v39 = vld [vmem:[%s2470_s0 + $0x50] ss:$8 sps:$4 sm:$0xff]  }
   0xe   :  { %534 = vmatpush1.bf16.msra.mxu0 %v1342_v4  ;;  %1325 = vmatpush1.bf16.msra.mxu1 %v1342_v4  ;;  %v1411_v40 = vld [vmem:[%s2470_s0 + $0x150] ss:$8 sps:$4 sm:$0xff]   ;;  %v1373_v41 = vld [vmem:[%s2470_s0 + $0x64] ss:$8 sps:$4 sm:$0xff]   ;;  %v1375_v43 = vld [vmem:[%s2470_s0 + $0x60] ss:$8 sps:$4 sm:$0xff]  }
   0xf   :  { %535 = vmatprep.subr.bf16.mxu0 %v1451_v0  ;;  %1310 = vmatprep.subr.bf16.mxu1 %v1451_v0  ;;  %v1415_v42 = vld [vmem:[%s2470_s0 + $0x164] ss:$8 sps:$4 sm:$0xff]   ;;  %v1417_v44 = vld [vmem:[%s2470_s0 + $0x160] ss:$8 sps:$4 sm:$0xff]   ;;  %v1376_v45 = vld [vmem:[%s2470_s0 + $0x74] ss:$8 sps:$4 sm:$0xff]  }
  0x10   :  { %v1421_v46 = vld [vmem:[%s2470_s0 + $0x174] ss:$8 sps:$4 sm:$0xff]   ;;  %v1378_v47 = vld [vmem:[%s2470_s0 + $0x70] ss:$8 sps:$4 sm:$0xff]   ;;  %v1382_v49 = vld [vmem:[%s2470_s0 + $0x84] ss:$8 sps:$4 sm:$0xff]  }
  0x11   :  { %v1423_v48 = vld [vmem:[%s2470_s0 + $0x170] ss:$8 sps:$4 sm:$0xff]   ;;  %v1427_v50 = vld [vmem:[%s2470_s0 + $0x184] ss:$8 sps:$4 sm:$0xff]   ;;  %v1384_v51 = vld [vmem:[%s2470_s0 + $0x80] ss:$8 sps:$4 sm:$0xff]  }
  0x12   :  { %536 = vmatpush1.bf16.msra.mxu0 %v1343_v5  ;;  %1326 = vmatpush1.bf16.msra.mxu1 %v1343_v5  ;;  %v1429_v52 = vld [vmem:[%s2470_s0 + $0x180] ss:$8 sps:$4 sm:$0xff]   ;;  %v1388_v53 = vld [vmem:[%s2470_s0 + $0x94] ss:$8 sps:$4 sm:$0xff]   ;;  %v1390_v55 = vld [vmem:[%s2470_s0 + $0x90] ss:$8 sps:$4 sm:$0xff]  }
  0x13   :  { %537 = vmatprep.subr.bf16.mxu0 %v1451_v0  ;;  %1311 = vmatprep.subr.bf16.mxu1 %v1451_v0  ;;  %v1430_v54 = vld [vmem:[%s2470_s0 + $0x194] ss:$8 sps:$4 sm:$0xff]   ;;  %v1432_v56 = vld [vmem:[%s2470_s0 + $0x190] ss:$8 sps:$4 sm:$0xff]   ;;  %v1394_v57 = vld [vmem:[%s2470_s0 + $0xa4] ss:$8 sps:$4 sm:$0xff]  }
  0x14   :  { %v1433_v58 = vld [vmem:[%s2470_s0 + $0x1a4] ss:$8 sps:$4 sm:$0xff]   ;;  %v1396_v59 = vld [vmem:[%s2470_s0 + $0xa0] ss:$8 sps:$4 sm:$0xff]   ;;  %v1400_v61 = vld [vmem:[%s2470_s0 + $0xb4] ss:$8 sps:$4 sm:$0xff]  }
  0x15   :  { %v1435_v60 = vld [vmem:[%s2470_s0 + $0x1a0] ss:$8 sps:$4 sm:$0xff]   ;;  %v1436_v62 = vld [vmem:[%s2470_s0 + $0x1b4] ss:$8 sps:$4 sm:$0xff]   ;;  %v1402_v63 = vld [vmem:[%s2470_s0 + $0xb0] ss:$8 sps:$4 sm:$0xff]  }
  0x16   :  { %538 = vmatpush1.bf16.msra.mxu0 %v1344_v7  ;;  %1327 = vmatpush1.bf16.msra.mxu1 %v1344_v7  ;;  %v1406_v1 = vld [vmem:[%s2470_s0 + $0xc4] ss:$8 sps:$4 sm:$0xff]   ;;  %v1408_v3 = vld [vmem:[%s2470_s0 + $0xc0] ss:$8 sps:$4 sm:$0xff]   ;;  %v1412_v5 = vld [vmem:[%s2470_s0 + $0xd4] ss:$8 sps:$4 sm:$0xff]  }
  0x17   :  { %539 = vmatprep.subr.bf16.mxu0 %v1451_v0  ;;  %1312 = vmatprep.subr.bf16.mxu1 %v1451_v0  ;;  %v1439_v2 = vld [vmem:[%s2470_s0 + $0x1c4] ss:$8 sps:$4 sm:$0xff]   ;;  %v1441_v4 = vld [vmem:[%s2470_s0 + $0x1c0] ss:$8 sps:$4 sm:$0xff]   ;;  %v1442_v6 = vld [vmem:[%s2470_s0 + $0x1d4] ss:$8 sps:$4 sm:$0xff]  }
  0x18   :  { %v1414_v7 = vld [vmem:[%s2470_s0 + $0xd0] ss:$8 sps:$4 sm:$0xff]   ;;  %v1445_v10 = vld [vmem:[%s2470_s0 + $0x1e4] ss:$8 sps:$4 sm:$0xff]  }
  0x1a   :  { %540 = vmatpush1.bf16.msra.mxu0 %v1345_v8  ;;  %1328 = vmatpush1.bf16.msra.mxu1 %v1345_v8  ;;  %v1444_v8 = vld [vmem:[%s2470_s0 + $0x1d0] ss:$8 sps:$4 sm:$0xff]  }
  0x1b   :  { %541 = vmatprep.subr.bf16.mxu0 %v1451_v0  ;;  %1313 = vmatprep.subr.bf16.mxu1 %v1451_v0 }
  0x1e   :  { %542 = vmatpush1.bf16.msra.mxu0 %v1346_v9  ;;  %1329 = vmatpush1.bf16.msra.mxu1 %v1346_v9  ;;  %v1418_v9 = vld [vmem:[%s2470_s0 + $0xe4] ss:$8 sps:$4 sm:$0xff]  }
  0x1f   :  { %543 = vmatprep.subr.bf16.mxu0 %v1451_v0  ;;  %1314 = vmatprep.subr.bf16.mxu1 %v1451_v0 }
  0x22   :  { %544 = vmatpush2.bf16.msra.mxu0 %v1347_v11  ;;  %1330 = vmatpush2.bf16.msra.mxu1 %v1347_v11  ;;  %v1420_v11 = vld [vmem:[%s2470_s0 + $0xe0] ss:$8 sps:$4 sm:$0xff]  }
  0x23   :  { %545 = vmatprep.subr.bf16.mxu0 %v1451_v0  ;;  %1315 = vmatprep.subr.bf16.mxu1 %v1451_v0 }
  0x26   :  { %546 = vmatpush2.bf16.msra.mxu0 %v1348_v12  ;;  %1331 = vmatpush2.bf16.msra.mxu1 %v1348_v12  ;;  %v1447_v12 = vld [vmem:[%s2470_s0 + $0x1e0] ss:$8 sps:$4 sm:$0xff]  }
  0x27   :  { %547 = vmatprep.subr.bf16.mxu0 %v1451_v0  ;;  %1316 = vmatprep.subr.bf16.mxu1 %v1451_v0 }
  0x2a   :  { %548 = vmatpush2.bf16.msra.mxu0 %v1349_v13  ;;  %1332 = vmatpush2.bf16.msra.mxu1 %v1349_v13  ;;  %v1424_v13 = vld [vmem:[%s2470_s0 + $0xf4] ss:$8 sps:$4 sm:$0xff]  }
  0x2b   :  { %549 = vmatprep.subr.bf16.mxu0 %v1451_v0  ;;  %1317 = vmatprep.subr.bf16.mxu1 %v1451_v0 }
  0x2e   :  { %550 = vmatpush2.bf16.msra.mxu0 %v1350_v14  ;;  %1333 = vmatpush2.bf16.msra.mxu1 %v1350_v14  ;;  %v1448_v14 = vld [vmem:[%s2470_s0 + $0x1f4] ss:$8 sps:$4 sm:$0xff]  }
  0x2f   :  { %551 = vmatprep.subr.bf16.mxu0 %v1451_v0  ;;  %1318 = vmatprep.subr.bf16.mxu1 %v1451_v0 }
  0x32   :  { %552 = vmatpush2.bf16.msra.mxu0 %v1351_v15  ;;  %1334 = vmatpush2.bf16.msra.mxu1 %v1351_v15  ;;  %v1426_v15 = vld [vmem:[%s2470_s0 + $0xf0] ss:$8 sps:$4 sm:$0xff]  }
  0x33   :  { %553 = vmatprep.subr.bf16.mxu0 %v1451_v0  ;;  %1319 = vmatprep.subr.bf16.mxu1 %v1451_v0 }
  0x36   :  { %554 = vmatpush2.bf16.msra.mxu0 %v1352_v16  ;;  %1335 = vmatpush2.bf16.msra.mxu1 %v1352_v16  ;;  %v1450_v16 = vld [vmem:[%s2470_s0 + $0x1f0] ss:$8 sps:$4 sm:$0xff]  }
  0x37   :  { %555 = vmatprep.subr.bf16.mxu0 %v1451_v0  ;;  %1320 = vmatprep.subr.bf16.mxu1 %v1451_v0 }
  0x3a   :  { %556 = vmatpush2.bf16.msra.mxu0 %v1353_v17  ;;  %1336 = vmatpush2.bf16.msra.mxu1 %v1353_v17 }
  0x3b   :  { %557 = vmatprep.subr.bf16.mxu0 %v1451_v0  ;;  %1321 = vmatprep.subr.bf16.mxu1 %v1451_v0  ;;  %v1438_v0 = vld [vmem:[%s2470_s0 + $0x1b0] ss:$8 sps:$4 sm:$0xff]  }
  0x3e   :  { %558 = vmatpush2.bf16.msra.mxu0 %v1354_v18  ;;  %1337 = vmatpush2.bf16.msra.mxu1 %v1354_v18 }
  0x41   :  { %560 = vmatmul.mubr.bf16.vlgmr.msra.gmra.mxu0 %v1355_v19  ;;  %688 = vmatmul.mubr.bf16.vlgmr.msra.gmra.mxu1 %v1379_v20 }
  0x42   :  { %567 = vmatprep.mubr.bf16.mxu0 %v1358_v21  ;;  %695 = vmatprep.mubr.bf16.mxu1 %v1385_v22 }
  0x49   :  { %568 = vmatmul.mubr.bf16.gmra.mxu0 %v1360_v23  ;;  %696 = vmatmul.mubr.bf16.gmra.mxu1 %v1387_v24 }
  0x4a   :  { %575 = vmatprep.mubr.bf16.mxu0 %v1361_v25  ;;  %703 = vmatprep.mubr.bf16.mxu1 %v1391_v26 }
  0x51   :  { %576 = vmatmul.mubr.bf16.gmra.mxu0 %v1363_v27  ;;  %704 = vmatmul.mubr.bf16.gmra.mxu1 %v1393_v28 }
  0x52   :  { %583 = vmatprep.mubr.bf16.mxu0 %v1364_v29  ;;  %711 = vmatprep.mubr.bf16.mxu1 %v1397_v30 }
  0x59   :  { %584 = vmatmul.mubr.bf16.gmra.mxu0 %v1366_v31  ;;  %712 = vmatmul.mubr.bf16.gmra.mxu1 %v1399_v32 }
  0x5a   :  { %591 = vmatprep.mubr.bf16.mxu0 %v1367_v33  ;;  %719 = vmatprep.mubr.bf16.mxu1 %v1403_v34 }
  0x61   :  { %592 = vmatmul.mubr.bf16.gmra.mxu0 %v1369_v35  ;;  %720 = vmatmul.mubr.bf16.gmra.mxu1 %v1405_v36 }
  0x62   :  { %599 = vmatprep.mubr.bf16.mxu0 %v1370_v37  ;;  %727 = vmatprep.mubr.bf16.mxu1 %v1409_v38 }
  0x69   :  { %600 = vmatmul.mubr.bf16.gmra.mxu0 %v1372_v39  ;;  %728 = vmatmul.mubr.bf16.gmra.mxu1 %v1411_v40 }
  0x6a   :  { %607 = vmatprep.mubr.bf16.mxu0 %v1373_v41  ;;  %735 = vmatprep.mubr.bf16.mxu1 %v1415_v42 }
  0x71   :  { %608 = vmatmul.mubr.bf16.gmra.mxu0 %v1375_v43  ;;  %736 = vmatmul.mubr.bf16.gmra.mxu1 %v1417_v44 }
  0x72   :  { %615 = vmatprep.mubr.bf16.mxu0 %v1376_v45  ;;  %743 = vmatprep.mubr.bf16.mxu1 %v1421_v46 }
  0x79   :  { %616 = vmatmul.mubr.bf16.gmra.mxu0 %v1378_v47  ;;  %744 = vmatmul.mubr.bf16.gmra.mxu1 %v1423_v48 }
  0x7a   :  { %623 = vmatprep.mubr.bf16.mxu0 %v1382_v49  ;;  %751 = vmatprep.mubr.bf16.mxu1 %v1427_v50 }
  0x81   :  { %624 = vmatmul.mubr.bf16.gmra.mxu0 %v1384_v51  ;;  %752 = vmatmul.mubr.bf16.gmra.mxu1 %v1429_v52 }
  0x82   :  { %631 = vmatprep.mubr.bf16.mxu0 %v1388_v53  ;;  %759 = vmatprep.mubr.bf16.mxu1 %v1430_v54 }
  0x89   :  { %632 = vmatmul.mubr.bf16.gmra.mxu0 %v1390_v55  ;;  %760 = vmatmul.mubr.bf16.gmra.mxu1 %v1432_v56 }
  0x8a   :  { %639 = vmatprep.mubr.bf16.mxu0 %v1394_v57  ;;  %767 = vmatprep.mubr.bf16.mxu1 %v1433_v58 }
  0x91   :  { %640 = vmatmul.mubr.bf16.gmra.mxu0 %v1396_v59  ;;  %768 = vmatmul.mubr.bf16.gmra.mxu1 %v1435_v60 }
  0x92   :  { %647 = vmatprep.mubr.bf16.mxu0 %v1400_v61  ;;  %775 = vmatprep.mubr.bf16.mxu1 %v1436_v62 }
  0x99   :  { %648 = vmatmul.mubr.bf16.gmra.mxu0 %v1402_v63  ;;  %776 = vmatmul.mubr.bf16.gmra.mxu1 %v1438_v0 }
  0x9a   :  { %655 = vmatprep.mubr.bf16.mxu0 %v1406_v1  ;;  %783 = vmatprep.mubr.bf16.mxu1 %v1439_v2 }
  0xa1   :  { %656 = vmatmul.mubr.bf16.gmra.mxu0 %v1408_v3  ;;  %784 = vmatmul.mubr.bf16.gmra.mxu1 %v1441_v4 }
  0xa2   :  { %663 = vmatprep.mubr.bf16.mxu0 %v1412_v5  ;;  %791 = vmatprep.mubr.bf16.mxu1 %v1442_v6 }
  0xa9   :  { %664 = vmatmul.mubr.bf16.gmra.mxu0 %v1414_v7  ;;  %792 = vmatmul.mubr.bf16.gmra.mxu1 %v1444_v8 }
  0xaa   :  { %671 = vmatprep.mubr.bf16.mxu0 %v1418_v9  ;;  %799 = vmatprep.mubr.bf16.mxu1 %v1445_v10 }
  0xb1   :  { %672 = vmatmul.mubr.bf16.gmra.mxu0 %v1420_v11  ;;  %800 = vmatmul.mubr.bf16.gmra.mxu1 %v1447_v12 }
  0xb2   :  { %679 = vmatprep.mubr.bf16.mxu0 %v1424_v13  ;;  %807 = vmatprep.mubr.bf16.mxu1 %v1448_v14 }
  0xb9   :  { %680 = vmatmul.mubr.bf16.gmra.mxu0 %v1426_v15  ;;  %808 = vmatmul.mubr.bf16.gmra.mxu1 %v1450_v16 }
 0x101   :  { %v1749_v17 = vpop.f32.mrf.mxu0  ;;  %v1751_v18 = vpop.f32.mrf.mxu1 }
 0x102   :  { %817 = vst.msk [vmem:[%s2471_s2] sm:$0xff] %vm816_vm0, %v1749_v17  ;;  %849 = vst.msk [vmem:[%s2471_s2 + $0x100] sm:$0xff] %vm816_vm0, %v1751_v18 }
 0x103   :  { %v563_v19 = vpop.f32.mrf.mxu0  ;;  %v691_v20 = vpop.f32.mrf.mxu1 }
 0x104   :  { %v1016_v20 = vmul.f32 %v1749_v17, %v1749_v17 }
 0x105   :  { %v1763_v21 = vpop.f32.mrf.mxu0  ;;  %v1765_v22 = vpop.f32.mrf.mxu1 }
 0x106   :  { %818 = vst.msk [vmem:[%s2471_s2 + $0x8] sm:$0xff] %vm816_vm0, %v1763_v21  ;;  %850 = vst.msk [vmem:[%s2471_s2 + $0x108] sm:$0xff] %vm816_vm0, %v1765_v22  ;;  %v1017_v15 = vmul.f32 %v1763_v21, %v1763_v21 }
 0x107   :  { %v566_v23 = vpop.f32.mrf.mxu0  ;;  %v694_v24 = vpop.f32.mrf.mxu1 }
 0x108   :  { %v882_v23 = vsel %vm816_vm0, %v1763_v21, 0.0 }
 0x109   :  { %v1777_v25 = vpop.f32.mrf.mxu0  ;;  %v1779_v26 = vpop.f32.mrf.mxu1 }
 0x10a   :  { %819 = vst.msk [vmem:[%s2471_s2 + $0x10] sm:$0xff] %vm816_vm0, %v1777_v25  ;;  %851 = vst.msk [vmem:[%s2471_s2 + $0x110] sm:$0xff] %vm816_vm0, %v1779_v26  ;;  %v1018_v24 = vmul.f32 %v1777_v25, %v1777_v25 }
 0x10b   :  { %v571_v27 = vpop.f32.mrf.mxu0  ;;  %v699_v28 = vpop.f32.mrf.mxu1 }
 0x10d   :  { %v1791_v29 = vpop.f32.mrf.mxu0  ;;  %v1793_v30 = vpop.f32.mrf.mxu1 }
 0x10e   :  { %820 = vst.msk [vmem:[%s2471_s2 + $0x18] sm:$0xff] %vm816_vm0, %v1791_v29  ;;  %852 = vst.msk [vmem:[%s2471_s2 + $0x118] sm:$0xff] %vm816_vm0, %v1793_v30 }
 0x10f   :  { %v574_v31 = vpop.f32.mrf.mxu0  ;;  %v702_v32 = vpop.f32.mrf.mxu1 }
 0x110   :  { %v881_v31 = vsel %vm816_vm0, %v1749_v17, 0.0  ;;  %v1081_v32 = vsel %vm816_vm0, %v1017_v15, 0.0 }
 0x111   :  { %v1805_v33 = vpop.f32.mrf.mxu0  ;;  %v1807_v34 = vpop.f32.mrf.mxu1  ;;  %v883_v17 = vadd.f32 %v882_v23, %v881_v31 }
 0x112   :  { %821 = vst.msk [vmem:[%s2471_s2 + $0x20] sm:$0xff] %vm816_vm0, %v1805_v33  ;;  %853 = vst.msk [vmem:[%s2471_s2 + $0x120] sm:$0xff] %vm816_vm0, %v1807_v34 }
 0x113   :  { %v579_v35 = vpop.f32.mrf.mxu0  ;;  %v707_v36 = vpop.f32.mrf.mxu1 }
 0x114   :  { %v884_v35 = vsel %vm816_vm0, %v1777_v25, 0.0  ;;  %v1019_v36 = vmul.f32 %v1791_v29, %v1791_v29  ;;  %v1080_v25 = vsel %vm816_vm0, %v1016_v20, 0.0 }
 0x115   :  { %v1819_v37 = vpop.f32.mrf.mxu0  ;;  %v1821_v38 = vpop.f32.mrf.mxu1 }
 0x116   :  { %822 = vst.msk [vmem:[%s2471_s2 + $0x28] sm:$0xff] %vm816_vm0, %v1819_v37  ;;  %854 = vst.msk [vmem:[%s2471_s2 + $0x128] sm:$0xff] %vm816_vm0, %v1821_v38 }
 0x117   :  { %v582_v39 = vpop.f32.mrf.mxu0  ;;  %v710_v40 = vpop.f32.mrf.mxu1 }
 0x118   :  { %v1083_v40 = vsel %vm816_vm0, %v1018_v24, 0.0 }
 0x119   :  { %v1833_v41 = vpop.f32.mrf.mxu0  ;;  %v1835_v42 = vpop.f32.mrf.mxu1 }
 0x11a   :  { %823 = vst.msk [vmem:[%s2471_s2 + $0x30] sm:$0xff] %vm816_vm0, %v1833_v41  ;;  %855 = vst.msk [vmem:[%s2471_s2 + $0x130] sm:$0xff] %vm816_vm0, %v1835_v42 }
 0x11b   :  { %v587_v43 = vpop.f32.mrf.mxu0  ;;  %v715_v44 = vpop.f32.mrf.mxu1 }
 0x11c   :  { %v886_v43 = vsel %vm816_vm0, %v1791_v29, 0.0  ;;  %v1020_v44 = vmul.f32 %v1805_v33, %v1805_v33 }
 0x11d   :  { %v1847_v45 = vpop.f32.mrf.mxu0  ;;  %v1849_v46 = vpop.f32.mrf.mxu1 }
 0x11e   :  { %824 = vst.msk [vmem:[%s2471_s2 + $0x38] sm:$0xff] %vm816_vm0, %v1847_v45  ;;  %856 = vst.msk [vmem:[%s2471_s2 + $0x138] sm:$0xff] %vm816_vm0, %v1849_v46  ;;  %v894_v31 = vsel %vm816_vm0, %v1847_v45, 0.0 }
 0x11f   :  { %v590_v47 = vpop.f32.mrf.mxu0  ;;  %v718_v48 = vpop.f32.mrf.mxu1 }
 0x120   :  { %v1082_v47 = vadd.f32 %v1081_v32, %v1080_v25  ;;  %v885_v48 = vadd.f32 %v884_v35, %v883_v17 }
 0x121   :  { %v1861_v49 = vpop.f32.mrf.mxu0  ;;  %v1863_v50 = vpop.f32.mrf.mxu1 }
 0x122   :  { %825 = vst.msk [vmem:[%s2471_s2 + $0x40] sm:$0xff] %vm816_vm0, %v1861_v49  ;;  %857 = vst.msk [vmem:[%s2471_s2 + $0x140] sm:$0xff] %vm816_vm0, %v1863_v50  ;;  %v1084_v29 = vadd.f32 %v1083_v40, %v1082_v47  ;;  %v1024_v32 = vmul.f32 %v1861_v49, %v1861_v49  ;;  %v896_v25 = vsel %vm816_vm0, %v1861_v49, 0.0 }
 0x123   :  { %v595_v51 = vpop.f32.mrf.mxu0  ;;  %v723_v52 = vpop.f32.mrf.mxu1 }
 0x124   :  { %v1095_v49 = vsel %vm816_vm0, %v1024_v32, 0.0 }
 0x125   :  { %v1875_v53 = vpop.f32.mrf.mxu0  ;;  %v1877_v54 = vpop.f32.mrf.mxu1 }
 0x126   :  { %826 = vst.msk [vmem:[%s2471_s2 + $0x48] sm:$0xff] %vm816_vm0, %v1875_v53  ;;  %858 = vst.msk [vmem:[%s2471_s2 + $0x148] sm:$0xff] %vm816_vm0, %v1877_v54  ;;  %v1025_v40 = vmul.f32 %v1875_v53, %v1875_v53 }
 0x127   :  { %v598_v55 = vpop.f32.mrf.mxu0  ;;  %v726_v56 = vpop.f32.mrf.mxu1 }
 0x128   :  { %v1085_v55 = vsel %vm816_vm0, %v1019_v36, 0.0  ;;  %v888_v56 = vsel %vm816_vm0, %v1805_v33, 0.0  ;;  %v1087_v33 = vsel %vm816_vm0, %v1020_v44, 0.0 }
 0x129   :  { %v1889_v57 = vpop.f32.mrf.mxu0  ;;  %v1891_v58 = vpop.f32.mrf.mxu1 }
 0x12a   :  { %827 = vst.msk [vmem:[%s2471_s2 + $0x50] sm:$0xff] %vm816_vm0, %v1889_v57  ;;  %859 = vst.msk [vmem:[%s2471_s2 + $0x150] sm:$0xff] %vm816_vm0, %v1891_v58 }
 0x12b   :  { %v603_v59 = vpop.f32.mrf.mxu0  ;;  %v731_v60 = vpop.f32.mrf.mxu1 }
 0x12c   :  { %v1021_v59 = vmul.f32 %v1819_v37, %v1819_v37  ;;  %v887_v60 = vadd.f32 %v886_v43, %v885_v48  ;;  %v898_v48 = vsel %vm816_vm0, %v1875_v53, 0.0 }
 0x12d   :  { %v1903_v61 = vpop.f32.mrf.mxu0  ;;  %v1905_v62 = vpop.f32.mrf.mxu1 }
 0x12e   :  { %828 = vst.msk [vmem:[%s2471_s2 + $0x58] sm:$0xff] %vm816_vm0, %v1903_v61  ;;  %860 = vst.msk [vmem:[%s2471_s2 + $0x158] sm:$0xff] %vm816_vm0, %v1905_v62  ;;  %v1089_v15 = vsel %vm816_vm0, %v1021_v59, 0.0 }
 0x12f   :  { %v606_v63 = vpop.f32.mrf.mxu0  ;;  %v734_v0 = vpop.f32.mrf.mxu1 }
 0x131   :  { %v1917_v1 = vpop.f32.mrf.mxu0  ;;  %v1919_v2 = vpop.f32.mrf.mxu1 }
 0x132   :  { %829 = vst.msk [vmem:[%s2471_s2 + $0x60] sm:$0xff] %vm816_vm0, %v1917_v1  ;;  %861 = vst.msk [vmem:[%s2471_s2 + $0x160] sm:$0xff] %vm816_vm0, %v1919_v2 }
 0x133   :  { %v611_v3 = vpop.f32.mrf.mxu0  ;;  %v739_v4 = vpop.f32.mrf.mxu1 }
 0x134   :  { %v890_v3 = vsel %vm816_vm0, %v1819_v37, 0.0  ;;  %v1022_v4 = vmul.f32 %v1833_v41, %v1833_v41 }
 0x135   :  { %v1931_v5 = vpop.f32.mrf.mxu0  ;;  %v1933_v6 = vpop.f32.mrf.mxu1 }
 0x136   :  { %830 = vst.msk [vmem:[%s2471_s2 + $0x68] sm:$0xff] %vm816_vm0, %v1931_v5  ;;  %862 = vst.msk [vmem:[%s2471_s2 + $0x168] sm:$0xff] %vm816_vm0, %v1933_v6 }
 0x137   :  { %v614_v7 = vpop.f32.mrf.mxu0  ;;  %v742_v8 = vpop.f32.mrf.mxu1 }
 0x138   :  { %v1086_v7 = vadd.f32 %v1085_v55, %v1084_v29  ;;  %v889_v8 = vadd.f32 %v888_v56, %v887_v60  ;;  %v1026_v55 = vmul.f32 %v1889_v57, %v1889_v57 }
 0x139   :  { %v1945_v9 = vpop.f32.mrf.mxu0  ;;  %v1947_v10 = vpop.f32.mrf.mxu1 }
 0x13a   :  { %831 = vst.msk [vmem:[%s2471_s2 + $0x70] sm:$0xff] %vm816_vm0, %v1945_v9  ;;  %863 = vst.msk [vmem:[%s2471_s2 + $0x170] sm:$0xff] %vm816_vm0, %v1947_v10  ;;  %v1088_v37 = vadd.f32 %v1087_v33, %v1086_v7  ;;  %v891_v20 = vadd.f32 %v890_v3, %v889_v8  ;;  %v1027_v33 = vmul.f32 %v1903_v61, %v1903_v61  ;;  %v902_v8 = vsel %vm816_vm0, %v1903_v61, 0.0 }
 0x13b   :  { %v619_v11 = vpop.f32.mrf.mxu0  ;;  %v747_v12 = vpop.f32.mrf.mxu1 }
 0x13c   :  { %v1090_v35 = vadd.f32 %v1089_v15, %v1088_v37  ;;  %v1028_v15 = vmul.f32 %v1917_v1, %v1917_v1 }
 0x13d   :  { %v1959_v13 = vpop.f32.mrf.mxu0  ;;  %v1961_v14 = vpop.f32.mrf.mxu1 }
 0x13e   :  { %832 = vst.msk [vmem:[%s2471_s2 + $0x78] sm:$0xff] %vm816_vm0, %v1959_v13  ;;  %864 = vst.msk [vmem:[%s2471_s2 + $0x178] sm:$0xff] %vm816_vm0, %v1961_v14 }
 0x13f   :  { %v622_v16 = vpop.f32.mrf.mxu0  ;;  %v750_v19 = vpop.f32.mrf.mxu1 }
 0x140   :  { %v892_v16 = vsel %vm816_vm0, %v1833_v41, 0.0  ;;  %v1023_v19 = vmul.f32 %v1847_v45, %v1847_v45  ;;  %v1091_v41 = vsel %vm816_vm0, %v1022_v4, 0.0 }
 0x141   :  { %v1981_v27 = vpop.f32.mrf.mxu0  ;;  %v1983_v28 = vpop.f32.mrf.mxu1  ;;  %v893_v36 = vadd.f32 %v892_v16, %v891_v20  ;;  %v1092_v45 = vadd.f32 %v1091_v41, %v1090_v35  ;;  %v1029_v41 = vmul.f32 %v1931_v5, %v1931_v5 }
 0x142   :  { %833 = vst.msk [vmem:[%s2471_s2 + $0x80] sm:$0xff] %vm816_vm0, %v1981_v27  ;;  %865 = vst.msk [vmem:[%s2471_s2 + $0x180] sm:$0xff] %vm816_vm0, %v1983_v28 }
 0x143   :  { %v627_v21 = vpop.f32.mrf.mxu0  ;;  %v755_v39 = vpop.f32.mrf.mxu1  ;;  %v895_v43 = vadd.f32 %v894_v31, %v893_v36  ;;  %v906_v36 = vsel %vm816_vm0, %v1931_v5, 0.0 }
 0x144   :  { %v1093_v39 = vsel %vm816_vm0, %v1023_v19, 0.0 }
 0x145   :  { %v2008_v51 = vpop.f32.mrf.mxu0  ;;  %v2010_v52 = vpop.f32.mrf.mxu1  ;;  %v1094_v56 = vadd.f32 %v1093_v39, %v1092_v45  ;;  %v897_v59 = vadd.f32 %v896_v25, %v895_v43  ;;  %v1030_v39 = vmul.f32 %v1945_v9, %v1945_v9 }
 0x146   :  { %834 = vst.msk [vmem:[%s2471_s2 + $0x88] sm:$0xff] %vm816_vm0, %v2008_v51  ;;  %866 = vst.msk [vmem:[%s2471_s2 + $0x188] sm:$0xff] %vm816_vm0, %v2010_v52 }
 0x147   :  { %v630_v63 = vpop.f32.mrf.mxu0  ;;  %v758_v0 = vpop.f32.mrf.mxu1  ;;  %v1096_v53 = vadd.f32 %v1095_v49, %v1094_v56  ;;  %v899_v3 = vadd.f32 %v898_v48, %v897_v59  ;;  %v1031_v49 = vmul.f32 %v1959_v13, %v1959_v13  ;;  %v910_v59 = vsel %vm816_vm0, %v1959_v13, 0.0 }
 0x148   :  { %v1097_v63 = vsel %vm816_vm0, %v1025_v40, 0.0  ;;  %v900_v0 = vsel %vm816_vm0, %v1889_v57, 0.0  ;;  %v1099_v57 = vsel %vm816_vm0, %v1026_v55, 0.0 }
 0x149   :  { %v2032_v11 = vpop.f32.mrf.mxu0  ;;  %v2034_v12 = vpop.f32.mrf.mxu1  ;;  %v1098_v16 = vadd.f32 %v1097_v63, %v1096_v53  ;;  %v901_v19 = vadd.f32 %v900_v0, %v899_v3  ;;  %v1032_v63 = vmul.f32 %v1981_v27, %v1981_v27 }
 0x14a   :  { %835 = vst.msk [vmem:[%s2471_s2 + $0x90] sm:$0xff] %vm816_vm0, %v2032_v11  ;;  %867 = vst.msk [vmem:[%s2471_s2 + $0x190] sm:$0xff] %vm816_vm0, %v2034_v12 }
 0x14b   :  { %v635_v23 = vpop.f32.mrf.mxu0  ;;  %v763_v24 = vpop.f32.mrf.mxu1  ;;  %v1100_v61 = vadd.f32 %v1099_v57, %v1098_v16  ;;  %v903_v31 = vadd.f32 %v902_v8, %v901_v19  ;;  %v1033_v57 = vmul.f32 %v2008_v51, %v2008_v51  ;;  %v914_v19 = vsel %vm816_vm0, %v2008_v51, 0.0 }
 0x14c   :  { %v1101_v23 = vsel %vm816_vm0, %v1027_v33, 0.0  ;;  %v904_v24 = vsel %vm816_vm0, %v1917_v1, 0.0  ;;  %v1103_v1 = vsel %vm816_vm0, %v1028_v15, 0.0 }
 0x14d   :  { %v2056_v17 = vpop.f32.mrf.mxu0  ;;  %v2058_v21 = vpop.f32.mrf.mxu1  ;;  %v1102_v25 = vadd.f32 %v1101_v23, %v1100_v61  ;;  %v905_v40 = vadd.f32 %v904_v24, %v903_v31  ;;  %v1034_v23 = vmul.f32 %v2032_v11, %v2032_v11 }
 0x14e   :  { %836 = vst.msk [vmem:[%s2471_s2 + $0x98] sm:$0xff] %vm816_vm0, %v2056_v17  ;;  %868 = vst.msk [vmem:[%s2471_s2 + $0x198] sm:$0xff] %vm816_vm0, %v2058_v21 }
 0x14f   :  { %v638_v44 = vpop.f32.mrf.mxu0  ;;  %v766_v47 = vpop.f32.mrf.mxu1  ;;  %v1104_v5 = vadd.f32 %v1103_v1, %v1102_v25  ;;  %v907_v48 = vadd.f32 %v906_v36, %v905_v40  ;;  %v1035_v1 = vmul.f32 %v2056_v17, %v2056_v17  ;;  %v918_v40 = vsel %vm816_vm0, %v2056_v17, 0.0 }
 0x150   :  { %v1105_v44 = vsel %vm816_vm0, %v1029_v41, 0.0  ;;  %v908_v47 = vsel %vm816_vm0, %v1945_v9, 0.0  ;;  %v1107_v9 = vsel %vm816_vm0, %v1030_v39, 0.0 }
 0x151   :  { %v2080_v29 = vpop.f32.mrf.mxu0  ;;  %v2082_v60 = vpop.f32.mrf.mxu1  ;;  %v1106_v0 = vadd.f32 %v1105_v44, %v1104_v5  ;;  %v909_v33 = vadd.f32 %v908_v47, %v907_v48 }
 0x152   :  { %837 = vst.msk [vmem:[%s2471_s2 + $0xa0] sm:$0xff] %vm816_vm0, %v2080_v29  ;;  %869 = vst.msk [vmem:[%s2471_s2 + $0x1a0] sm:$0xff] %vm816_vm0, %v2082_v60  ;;  %v1036_v44 = vmul.f32 %v2080_v29, %v2080_v29 }
 0x153   :  { %v643_v4 = vpop.f32.mrf.mxu0  ;;  %v771_v7 = vpop.f32.mrf.mxu1  ;;  %v1108_v13 = vadd.f32 %v1107_v9, %v1106_v0  ;;  %v911_v8 = vadd.f32 %v910_v59, %v909_v33 }
 0x154   :  { %v1109_v4 = vsel %vm816_vm0, %v1031_v49, 0.0  ;;  %v912_v7 = vsel %vm816_vm0, %v1981_v27, 0.0  ;;  %v1111_v27 = vsel %vm816_vm0, %v1032_v63, 0.0 }
 0x155   :  { %v2104_v37 = vpop.f32.mrf.mxu0  ;;  %v2106_v20 = vpop.f32.mrf.mxu1  ;;  %v1110_v24 = vadd.f32 %v1109_v4, %v1108_v13  ;;  %v913_v41 = vadd.f32 %v912_v7, %v911_v8 }
 0x156   :  { %838 = vst.msk [vmem:[%s2471_s2 + $0xa8] sm:$0xff] %vm816_vm0, %v2104_v37  ;;  %870 = vst.msk [vmem:[%s2471_s2 + $0x1a8] sm:$0xff] %vm816_vm0, %v2106_v20  ;;  %v1037_v9 = vmul.f32 %v2104_v37, %v2104_v37  ;;  %v922_v33 = vsel %vm816_vm0, %v2104_v37, 0.0 }
 0x157   :  { %v646_v32 = vpop.f32.mrf.mxu0  ;;  %v774_v35 = vpop.f32.mrf.mxu1  ;;  %v1112_v51 = vadd.f32 %v1111_v27, %v1110_v24  ;;  %v915_v36 = vadd.f32 %v914_v19, %v913_v41 }
 0x158   :  { %v1113_v32 = vsel %vm816_vm0, %v1033_v57, 0.0  ;;  %v916_v35 = vsel %vm816_vm0, %v2032_v11, 0.0  ;;  %v1115_v11 = vsel %vm816_vm0, %v1034_v23, 0.0 }
 0x159   :  { %v2128_v45 = vpop.f32.mrf.mxu0  ;;  %v2130_v43 = vpop.f32.mrf.mxu1  ;;  %v1114_v47 = vadd.f32 %v1113_v32, %v1112_v51  ;;  %v917_v49 = vadd.f32 %v916_v35, %v915_v36 }
 0x15a   :  { %839 = vst.msk [vmem:[%s2471_s2 + $0xb0] sm:$0xff] %vm816_vm0, %v2128_v45  ;;  %871 = vst.msk [vmem:[%s2471_s2 + $0x1b0] sm:$0xff] %vm816_vm0, %v2130_v43  ;;  %v1038_v4 = vmul.f32 %v2128_v45, %v2128_v45 }
 0x15b   :  { %v651_v55 = vpop.f32.mrf.mxu0  ;;  %v779_v56 = vpop.f32.mrf.mxu1  ;;  %v1116_v17 = vadd.f32 %v1115_v11, %v1114_v47  ;;  %v919_v59 = vadd.f32 %v918_v40, %v917_v49 }
 0x15c   :  { %v1117_v55 = vsel %vm816_vm0, %v1035_v1, 0.0  ;;  %v920_v56 = vsel %vm816_vm0, %v2080_v29, 0.0  ;;  %v1119_v29 = vsel %vm816_vm0, %v1036_v44, 0.0  ;;  %v1123_v41 = vsel %vm816_vm0, %v1038_v4, 0.0 }
 0x15d   :  { %v652_v53 = vpop.f32.mrf.mxu0  ;;  %v2152_v3 = vpop.f32.mrf.mxu1  ;;  %v1118_v7 = vadd.f32 %v1117_v55, %v1116_v17  ;;  %v921_v57 = vadd.f32 %v920_v56, %v919_v59 }
 0x15e   :  { %840 = vst.msk [vmem:[%s2471_s2 + $0xb8] sm:$0xff] %vm816_vm0, %v652_v53  ;;  %872 = vst.msk [vmem:[%s2471_s2 + $0x1b8] sm:$0xff] %vm816_vm0, %v2152_v3  ;;  %v1039_v27 = vmul.f32 %v652_v53, %v652_v53 }
 0x15f   :  { %v654_v15 = vpop.f32.mrf.mxu0  ;;  %v782_v16 = vpop.f32.mrf.mxu1  ;;  %v1120_v37 = vadd.f32 %v1119_v29, %v1118_v7  ;;  %v923_v19 = vadd.f32 %v922_v33, %v921_v57 }
 0x160   :  { %v1121_v15 = vsel %vm816_vm0, %v1037_v9, 0.0  ;;  %v924_v16 = vsel %vm816_vm0, %v2128_v45, 0.0  ;;  %v926_v45 = vsel %vm816_vm0, %v652_v53, 0.0 }
 0x161   :  { %v657_v61 = vpop.f32.mrf.mxu0  ;;  %v2173_v31 = vpop.f32.mrf.mxu1  ;;  %v1122_v35 = vadd.f32 %v1121_v15, %v1120_v37  ;;  %v925_v1 = vadd.f32 %v924_v16, %v923_v19 }
 0x162   :  { %841 = vst.msk [vmem:[%s2471_s2 + $0xc0] sm:$0xff] %vm816_vm0, %v657_v61  ;;  %873 = vst.msk [vmem:[%s2471_s2 + $0x1c0] sm:$0xff] %vm816_vm0, %v2173_v31  ;;  %v1040_v32 = vmul.f32 %v657_v61, %v657_v61 }
 0x163   :  { %v659_v39 = vpop.f32.mrf.mxu0  ;;  %v787_v25 = vpop.f32.mrf.mxu1  ;;  %v1124_v53 = vadd.f32 %v1123_v41, %v1122_v35  ;;  %v927_v40 = vadd.f32 %v926_v45, %v925_v1 }
 0x164   :  { %v1125_v39 = vsel %vm816_vm0, %v1039_v27, 0.0  ;;  %v928_v25 = vsel %vm816_vm0, %v657_v61, 0.0  ;;  %v1127_v49 = vsel %vm816_vm0, %v1040_v32, 0.0 }
 0x165   :  { %v660_v5 = vpop.f32.mrf.mxu0  ;;  %v2194_v48 = vpop.f32.mrf.mxu1  ;;  %v1126_v56 = vadd.f32 %v1125_v39, %v1124_v53  ;;  %v929_v9 = vadd.f32 %v928_v25, %v927_v40 }
 0x166   :  { %842 = vst.msk [vmem:[%s2471_s2 + $0xc8] sm:$0xff] %vm816_vm0, %v660_v5  ;;  %874 = vst.msk [vmem:[%s2471_s2 + $0x1c8] sm:$0xff] %vm816_vm0, %v2194_v48  ;;  %v1041_v11 = vmul.f32 %v660_v5, %v660_v5  ;;  %v930_v61 = vsel %vm816_vm0, %v660_v5, 0.0 }
 0x167   :  { %v662_v63 = vpop.f32.mrf.mxu0  ;;  %v790_v0 = vpop.f32.mrf.mxu1  ;;  %v1128_v5 = vadd.f32 %v1127_v49, %v1126_v56  ;;  %v931_v33 = vadd.f32 %v930_v61, %v929_v9 }
 0x168   :  { %v1129_v63 = vsel %vm816_vm0, %v1041_v11, 0.0 }
 0x169   :  { %v665_v13 = vpop.f32.mrf.mxu0  ;;  %v2215_v8 = vpop.f32.mrf.mxu1  ;;  %v1130_v16 = vadd.f32 %v1129_v63, %v1128_v5 }
 0x16a   :  { %843 = vst.msk [vmem:[%s2471_s2 + $0xd0] sm:$0xff] %vm816_vm0, %v665_v13  ;;  %875 = vst.msk [vmem:[%s2471_s2 + $0x1d0] sm:$0xff] %vm816_vm0, %v2215_v8  ;;  %v1042_v55 = vmul.f32 %v665_v13, %v665_v13  ;;  %v932_v0 = vsel %vm816_vm0, %v665_v13, 0.0 }
 0x16b   :  { %v667_v23 = vpop.f32.mrf.mxu0  ;;  %v795_v24 = vpop.f32.mrf.mxu1  ;;  %v933_v27 = vadd.f32 %v932_v0, %v931_v33  ;;  %v1048_v33 = vmul.f32 %v1751_v18, %v1751_v18 }
 0x16c   :  { %v1131_v57 = vsel %vm816_vm0, %v1042_v55, 0.0 }
 0x16d   :  { %v668_v51 = vpop.f32.mrf.mxu0  ;;  %v2231_v36 = vpop.f32.mrf.mxu1  ;;  %v1132_v45 = vadd.f32 %v1131_v57, %v1130_v16 }
 0x16e   :  { %844 = vst.msk [vmem:[%s2471_s2 + $0xd8] sm:$0xff] %vm816_vm0, %v668_v51  ;;  %876 = vst.msk [vmem:[%s2471_s2 + $0x1d8] sm:$0xff] %vm816_vm0, %v2231_v36  ;;  %v1043_v29 = vmul.f32 %v668_v51, %v668_v51  ;;  %v934_v13 = vsel %vm816_vm0, %v668_v51, 0.0 }
 0x16f   :  { %v670_v44 = vpop.f32.mrf.mxu0  ;;  %v798_v47 = vpop.f32.mrf.mxu1  ;;  %v935_v32 = vadd.f32 %v934_v13, %v933_v27  ;;  %v944_v27 = vsel %vm816_vm0, %v1751_v18, 0.0  ;;  %v948_v18 = vsel %vm816_vm0, %v1779_v26, 0.0 }
 0x170   :  { %v1133_v23 = vsel %vm816_vm0, %v1043_v29, 0.0 }
 0x171   :  { %v673_v17 = vpop.f32.mrf.mxu0  ;;  %v2246_v59 = vpop.f32.mrf.mxu1  ;;  %v1134_v25 = vadd.f32 %v1133_v23, %v1132_v45  ;;  %v1143_v45 = vsel %vm816_vm0, %v1048_v33, 0.0 }
 0x172   :  { %845 = vst.msk [vmem:[%s2471_s2 + $0xe0] sm:$0xff] %vm816_vm0, %v673_v17  ;;  %877 = vst.msk [vmem:[%s2471_s2 + $0x1e0] sm:$0xff] %vm816_vm0, %v2246_v59  ;;  %v1044_v15 = vmul.f32 %v673_v17, %v673_v17  ;;  %v936_v24 = vsel %vm816_vm0, %v673_v17, 0.0 }
 0x173   :  { %v675_v4 = vpop.f32.mrf.mxu0  ;;  %v803_v7 = vpop.f32.mrf.mxu1  ;;  %v937_v11 = vadd.f32 %v936_v24, %v935_v32  ;;  %v946_v32 = vsel %vm816_vm0, %v1765_v22, 0.0 }
 0x174   :  { %v1135_v51 = vsel %vm816_vm0, %v1044_v15, 0.0 }
 0x175   :  { %v676_v37 = vpop.f32.mrf.mxu0  ;;  %v2261_v19 = vpop.f32.mrf.mxu1  ;;  %v1136_v61 = vadd.f32 %v1135_v51, %v1134_v25  ;;  %v1051_v25 = vmul.f32 %v1793_v30, %v1793_v30 }
 0x176   :  { %846 = vst.msk [vmem:[%s2471_s2 + $0xe8] sm:$0xff] %vm816_vm0, %v676_v37  ;;  %v1045_v41 = vmul.f32 %v676_v37, %v676_v37  ;;  %878 = vst.msk [vmem:[%s2471_s2 + $0x1e8] sm:$0xff] %vm816_vm0, %v2261_v19  ;;  %v938_v39 = vsel %vm816_vm0, %v676_v37, 0.0  ;;  %v1049_v37 = vmul.f32 %v1765_v22, %v1765_v22  ;;  %v950_v22 = vsel %vm816_vm0, %v1793_v30, 0.0 }
 0x177   :  { %v678_v35 = vpop.f32.mrf.mxu0  ;;  %v806_v1 = vpop.f32.mrf.mxu1  ;;  %v939_v55 = vadd.f32 %v938_v39, %v937_v11  ;;  %v954_v30 = vsel %vm816_vm0, %v1821_v38, 0.0 }
 0x178   :  { %v1137_v44 = vsel %vm816_vm0, %v1045_v41, 0.0  ;;  %v1050_v35 = vmul.f32 %v1779_v26, %v1779_v26  ;;  %v1145_v39 = vsel %vm816_vm0, %v1049_v37, 0.0  ;;  %v952_v26 = vsel %vm816_vm0, %v1807_v34, 0.0 }
 0x179   :  { %v681_v53 = vpop.f32.mrf.mxu0  ;;  %v2276_v40 = vpop.f32.mrf.mxu1  ;;  %v1138_v63 = vadd.f32 %v1137_v44, %v1136_v61 }
 0x17a   :  { %847 = vst.msk [vmem:[%s2471_s2 + $0xf0] sm:$0xff] %vm816_vm0, %v681_v53  ;;  %v940_v47 = vsel %vm816_vm0, %v681_v53, 0.0  ;;  %v1046_v49 = vmul.f32 %v681_v53, %v681_v53  ;;  %879 = vst.msk [vmem:[%s2471_s2 + $0x1f0] sm:$0xff] %vm816_vm0, %v2276_v40  ;;  %v1147_v44 = vsel %vm816_vm0, %v1050_v35, 0.0  ;;  %v1058_v35 = vmul.f32 %v1891_v58, %v1891_v58 }
 0x17b   :  { %v683_v56 = vpop.f32.mrf.mxu0  ;;  %v811_v9 = vpop.f32.mrf.mxu1  ;;  %v941_v0 = vadd.f32 %v940_v47, %v939_v55  ;;  %v1052_v47 = vmul.f32 %v1807_v34, %v1807_v34  ;;  %v1149_v55 = vsel %vm816_vm0, %v1051_v25, 0.0  ;;  %v956_v34 = vsel %vm816_vm0, %v1835_v42, 0.0 }
 0x17c   :  { %v1139_v17 = vsel %vm816_vm0, %v1046_v49, 0.0  ;;  %v1053_v56 = vmul.f32 %v1821_v38, %v1821_v38  ;;  %v958_v38 = vsel %vm816_vm0, %v1849_v46, 0.0 }
 0x17d   :  { %v684_v29 = vpop.f32.mrf.mxu0  ;;  %v2290_v5 = vpop.f32.mrf.mxu1  ;;  %v1140_v57 = vadd.f32 %v1139_v17, %v1138_v63  ;;  %v1151_v63 = vsel %vm816_vm0, %v1052_v47, 0.0 }
 0x17e   :  { %848 = vst.msk [vmem:[%s2471_s2 + $0xf8] sm:$0xff] %vm816_vm0, %v684_v29  ;;  %v942_v4 = vsel %vm816_vm0, %v684_v29, 0.0  ;;  %v1047_v7 = vmul.f32 %v684_v29, %v684_v29  ;;  %880 = vst.msk [vmem:[%s2471_s2 + $0x1f8] sm:$0xff] %vm816_vm0, %v2290_v5 }
 0x17f   :  { %v943_v13 = vadd.f32 %v942_v4, %v941_v0  ;;  %v686_v15 = vpop.f32.mrf.mxu0  ;;  %v814_v16 = vpop.f32.mrf.mxu1  ;;  %v1054_v0 = vmul.f32 %v1835_v42, %v1835_v42  ;;  %v1153_v4 = vsel %vm816_vm0, %v1053_v56, 0.0  ;;  %v960_v42 = vsel %vm816_vm0, %v1863_v50, 0.0 }
 0x180   :  { %v1141_v23 = vsel %vm816_vm0, %v1047_v7, 0.0  ;;  %v1055_v7 = vmul.f32 %v1849_v46, %v1849_v46  ;;  %v1056_v16 = vmul.f32 %v1863_v50, %v1863_v50  ;;  %v962_v46 = vsel %vm816_vm0, %v1877_v54, 0.0 }
 0x181   :  { %v945_v24 = vadd.f32 %v944_v27, %v943_v13  ;;  %v1142_v41 = vadd.f32 %v1141_v23, %v1140_v57  ;;  %v1155_v15 = vsel %vm816_vm0, %v1054_v0, 0.0  ;;  %v964_v50 = vsel %vm816_vm0, %v1891_v58, 0.0 }
 0x182   :  { %v1157_v23 = vsel %vm816_vm0, %v1055_v7, 0.0  ;;  %v968_v58 = vsel %vm816_vm0, %v1919_v2, 0.0  ;;  %v1063_v0 = vmul.f32 %v1961_v14, %v1961_v14 }
 0x183   :  { %v947_v1 = vadd.f32 %v946_v32, %v945_v24  ;;  %v1144_v51 = vadd.f32 %v1143_v45, %v1142_v41  ;;  %v1057_v24 = vmul.f32 %v1877_v54, %v1877_v54  ;;  %v1159_v32 = vsel %vm816_vm0, %v1056_v16, 0.0 }
 0x184   :  { %v966_v54 = vsel %vm816_vm0, %v1905_v62, 0.0 }
 0x185   :  { %v949_v11 = vadd.f32 %v948_v18, %v947_v1  ;;  %v1146_v53 = vadd.f32 %v1145_v39, %v1144_v51  ;;  %v1161_v39 = vsel %vm816_vm0, %v1057_v24, 0.0  ;;  %v1059_v18 = vmul.f32 %v1905_v62, %v1905_v62 }
 0x186   :  { %v970_v62 = vsel %vm816_vm0, %v1933_v6, 0.0 }
 0x187   :  { %v951_v49 = vadd.f32 %v950_v22, %v949_v11  ;;  %v1148_v61 = vadd.f32 %v1147_v44, %v1146_v53  ;;  %v1163_v53 = vsel %vm816_vm0, %v1058_v35, 0.0  ;;  %v1060_v44 = vmul.f32 %v1919_v2, %v1919_v2 }
 0x188   :  { %v972_v2 = vsel %vm816_vm0, %v1947_v10, 0.0  ;;  %v1068_v35 = vmul.f32 %v2082_v60, %v2082_v60 }
 0x189   :  { %v953_v9 = vadd.f32 %v952_v26, %v951_v49  ;;  %v1150_v17 = vadd.f32 %v1149_v55, %v1148_v61  ;;  %v1165_v49 = vsel %vm816_vm0, %v1059_v18, 0.0  ;;  %v1061_v61 = vmul.f32 %v1933_v6, %v1933_v6 }
 0x18a   :  { %v1167_v56 = vsel %vm816_vm0, %v1060_v44, 0.0  ;;  %v974_v6 = vsel %vm816_vm0, %v1961_v14, 0.0  ;;  %v978_v14 = vsel %vm816_vm0, %v2010_v52, 0.0 }
 0x18b   :  { %v955_v29 = vadd.f32 %v954_v30, %v953_v9  ;;  %v1152_v33 = vadd.f32 %v1151_v63, %v1150_v17  ;;  %v1062_v9 = vmul.f32 %v1947_v10, %v1947_v10  ;;  %v1169_v30 = vsel %vm816_vm0, %v1061_v61, 0.0 }
 0x18c   :  { %v976_v10 = vsel %vm816_vm0, %v1983_v28, 0.0 }
 0x18d   :  { %v957_v57 = vadd.f32 %v956_v34, %v955_v29  ;;  %v1154_v13 = vadd.f32 %v1153_v4, %v1152_v33  ;;  %v1171_v4 = vsel %vm816_vm0, %v1062_v9, 0.0  ;;  %v1064_v34 = vmul.f32 %v1983_v28, %v1983_v28 }
 0x18e   :  { %v980_v28 = vsel %vm816_vm0, %v2034_v12, 0.0  ;;  %v1073_v9 = vmul.f32 %v2194_v48, %v2194_v48 }
 0x18f   :  { %v959_v27 = vadd.f32 %v958_v38, %v957_v57  ;;  %v1156_v37 = vadd.f32 %v1155_v15, %v1154_v13  ;;  %v1173_v13 = vsel %vm816_vm0, %v1063_v0, 0.0  ;;  %v1065_v15 = vmul.f32 %v2010_v52, %v2010_v52 }
 0x190   :  { %v982_v52 = vsel %vm816_vm0, %v2058_v21, 0.0 }
 0x191   :  { %v1158_v41 = vadd.f32 %v1157_v23, %v1156_v37  ;;  %v961_v45 = vadd.f32 %v960_v42, %v959_v27  ;;  %v1175_v27 = vsel %vm816_vm0, %v1064_v34, 0.0  ;;  %v1066_v37 = vmul.f32 %v2034_v12, %v2034_v12 }
 0x192   :  { %v1177_v24 = vsel %vm816_vm0, %v1065_v15, 0.0  ;;  %v984_v12 = vsel %vm816_vm0, %v2082_v60, 0.0  ;;  %v988_v60 = vsel %vm816_vm0, %v2130_v43, 0.0 }
 0x193   :  { %v963_v1 = vadd.f32 %v962_v46, %v961_v45  ;;  %v1160_v51 = vadd.f32 %v1159_v32, %v1158_v41  ;;  %v1067_v41 = vmul.f32 %v2058_v21, %v2058_v21  ;;  %v1179_v46 = vsel %vm816_vm0, %v1066_v37, 0.0 }
 0x194   :  { %v986_v21 = vsel %vm816_vm0, %v2106_v20, 0.0  ;;  %v1078_v37 = vmul.f32 %v2276_v40, %v2276_v40 }
 0x195   :  { %v965_v25 = vadd.f32 %v964_v50, %v963_v1  ;;  %v1162_v11 = vadd.f32 %v1161_v39, %v1160_v51  ;;  %v1181_v39 = vsel %vm816_vm0, %v1067_v41, 0.0  ;;  %v1069_v50 = vmul.f32 %v2106_v20, %v2106_v20 }
 0x196   :  { %v990_v20 = vsel %vm816_vm0, %v2152_v3, 0.0 }
 0x197   :  { %v967_v22 = vadd.f32 %v966_v54, %v965_v25  ;;  %v1164_v47 = vadd.f32 %v1163_v53, %v1162_v11  ;;  %v1183_v11 = vsel %vm816_vm0, %v1068_v35, 0.0  ;;  %v1070_v53 = vmul.f32 %v2130_v43, %v2130_v43 }
 0x198   :  { %v992_v43 = vsel %vm816_vm0, %v2173_v31, 0.0 }
 0x199   :  { %v969_v55 = vadd.f32 %v968_v58, %v967_v22  ;;  %v1166_v26 = vadd.f32 %v1165_v49, %v1164_v47  ;;  %v1185_v22 = vsel %vm816_vm0, %v1069_v50, 0.0  ;;  %v1071_v47 = vmul.f32 %v2152_v3, %v2152_v3 }
 0x19a   :  { %v1187_v61 = vsel %vm816_vm0, %v1070_v53, 0.0  ;;  %v994_v3 = vsel %vm816_vm0, %v2194_v48, 0.0  ;;  %v998_v48 = vsel %vm816_vm0, %v2231_v36, 0.0 }
 0x19b   :  { %v971_v17 = vadd.f32 %v970_v62, %v969_v55  ;;  %v1168_v63 = vadd.f32 %v1167_v56, %v1166_v26  ;;  %v1072_v55 = vmul.f32 %v2173_v31, %v2173_v31  ;;  %v1189_v62 = vsel %vm816_vm0, %v1071_v47, 0.0 }
 0x19c   :  { %v996_v31 = vsel %vm816_vm0, %v2215_v8, 0.0 }
 0x19d   :  { %v973_v29 = vadd.f32 %v972_v2, %v971_v17  ;;  %v1170_v33 = vadd.f32 %v1169_v30, %v1168_v63  ;;  %v1191_v30 = vsel %vm816_vm0, %v1072_v55, 0.0  ;;  %v1074_v2 = vmul.f32 %v2215_v8, %v2215_v8 }
 0x19e   :  { %v1000_v8 = vsel %vm816_vm0, %v2246_v59, 0.0 }
 0x19f   :  { %v975_v7 = vadd.f32 %v974_v6, %v973_v29  ;;  %v1172_v57 = vadd.f32 %v1171_v4, %v1170_v33  ;;  %v1193_v33 = vsel %vm816_vm0, %v1073_v9, 0.0  ;;  %v1075_v4 = vmul.f32 %v2231_v36, %v2231_v36 }
 0x1a0   :  { %v1002_v36 = vsel %vm816_vm0, %v2261_v19, 0.0 }
 0x1a1   :  { %v977_v38 = vadd.f32 %v976_v10, %v975_v7  ;;  %v1174_v16 = vadd.f32 %v1173_v13, %v1172_v57  ;;  %v1195_v7 = vsel %vm816_vm0, %v1074_v2, 0.0  ;;  %v1076_v57 = vmul.f32 %v2246_v59, %v2246_v59 }
 0x1a2   :  { %v1197_v15 = vsel %vm816_vm0, %v1075_v4, 0.0  ;;  %v1004_v59 = vsel %vm816_vm0, %v2276_v40, 0.0 }
 0x1a3   :  { %v979_v23 = vadd.f32 %v978_v14, %v977_v38  ;;  %v1176_v42 = vadd.f32 %v1175_v27, %v1174_v16  ;;  %v1077_v38 = vmul.f32 %v2261_v19, %v2261_v19  ;;  %v1199_v14 = vsel %vm816_vm0, %v1076_v57, 0.0 }
 0x1a4   :  { %v1006_v19 = vsel %vm816_vm0, %v2290_v5, 0.0 }
 0x1a5   :  { %v1178_v45 = vadd.f32 %v1177_v24, %v1176_v42  ;;  %v981_v32 = vadd.f32 %v980_v28, %v979_v23  ;;  %v1201_v24 = vsel %vm816_vm0, %v1077_v38, 0.0  ;;  %v1079_v28 = vmul.f32 %v2290_v5, %v2290_v5 }
 0x1a7   :  { %v1180_v1 = vadd.f32 %v1179_v46, %v1178_v45  ;;  %v983_v51 = vadd.f32 %v982_v52, %v981_v32  ;;  %v1203_v32 = vsel %vm816_vm0, %v1078_v37, 0.0  ;;  %v1205_v35 = vsel %vm816_vm0, %v1079_v28, 0.0 }
 0x1a9   :  { %v1182_v18 = vadd.f32 %v1181_v39, %v1180_v1  ;;  %v985_v25 = vadd.f32 %v984_v12, %v983_v51 }
 0x1ab   :  { %v1184_v54 = vadd.f32 %v1183_v11, %v1182_v18  ;;  %v987_v44 = vadd.f32 %v986_v21, %v985_v25 }
 0x1ad   :  { %v1186_v49 = vadd.f32 %v1185_v22, %v1184_v54  ;;  %v989_v58 = vadd.f32 %v988_v60, %v987_v44 }
 0x1af   :  { %v1188_v26 = vadd.f32 %v1187_v61, %v1186_v49  ;;  %v991_v56 = vadd.f32 %v990_v20, %v989_v58 }
 0x1b1   :  { %v1190_v17 = vadd.f32 %v1189_v62, %v1188_v26  ;;  %v993_v63 = vadd.f32 %v992_v43, %v991_v56 }
 0x1b3   :  { %v1192_v0 = vadd.f32 %v1191_v30, %v1190_v17  ;;  %v995_v29 = vadd.f32 %v994_v3, %v993_v63 }
 0x1b5   :  { %v1194_v6 = vadd.f32 %v1193_v33, %v1192_v0  ;;  %v997_v34 = vadd.f32 %v996_v31, %v995_v29 }
 0x1b7   :  { %v1196_v13 = vadd.f32 %v1195_v7, %v1194_v6  ;;  %v999_v10 = vadd.f32 %v998_v48, %v997_v34 }
 0x1b9   :  { %v1198_v16 = vadd.f32 %v1197_v15, %v1196_v13  ;;  %v1001_v27 = vadd.f32 %v1000_v8, %v999_v10 }
 0x1bb   :  { %v1200_v23 = vadd.f32 %v1199_v14, %v1198_v16  ;;  %v1003_v42 = vadd.f32 %v1002_v36, %v1001_v27 }
 0x1bd   :  { %v1202_v41 = vadd.f32 %v1201_v24, %v1200_v23  ;;  %v1005_v45 = vadd.f32 %v1004_v59, %v1003_v42 }
 0x1bf   :  { %v1204_v46 = vadd.f32 %v1203_v32, %v1202_v41  ;;  %v1007_v52 = vadd.f32 %v1006_v19, %v1005_v45 }
 0x1c1   :  { %v1008_v1 = vrot.slane %v1007_v52, 4  ;;  %v1206_v51 = vadd.f32 %v1205_v35, %v1204_v46 }
 0x1c3   :  { %v1009_v39 = vadd.f32 %v1008_v1, %v1007_v52  ;;  %v1207_v12 = vrot.slane %v1206_v51, 4 }
 0x1c5   :  { %v1010_v50 = vrot.slane %v1009_v39, 2  ;;  %v1208_v40 = vadd.f32 %v1207_v12, %v1206_v51 }
 0x1c7   :  { %v1011_v18 = vadd.f32 %v1010_v50, %v1009_v39  ;;  %v1209_v25 = vrot.slane %v1208_v40, 2 }
 0x1c9   :  { %v1012_v11 = vrot.slane %v1011_v18, 1  ;;  %v1210_v21 = vadd.f32 %v1209_v25, %v1208_v40 }
 0x1cb   :  { %v1013_v53 = vadd.f32 %v1012_v11, %v1011_v18  ;;  %v1211_v54 = vrot.slane %v1210_v21, 1 }
 0x1cd   :  { %1015 = vst.msk [vmem:[%s2472_s3] sm:$0x1] %vm1014_vm1, %v1013_v53  ;;  %v1212_v5 = vadd.f32 %v1211_v54, %v1210_v21 }
 0x1cf   :  { %1213 = vst.msk [vmem:[%s2473_s4] sm:$0x1] %vm1014_vm1, %v1212_v5 }

// kernel: resnet_basic_stem_forward.3
= control target key start
LH: loop header
LB: loop body
LE: loop exit
PB: predicated region body
PF: predicated region fallthrough
CT: control target
= control target key end

     0   :  { %8 = vsyncpa [#allocation3], 0  ;;  %s4896_s0 = inlined_call_operand.vmem [shape: f32[9,128,16], index: 0, kind: input, shape index: {}]   ;;  %s4897_s1 = inlined_call_operand.vmem [shape: f32[1,16], index: 1, kind: input, shape index: {}]   ;;  %s4898_s2 = inlined_call_operand.vmem [shape: f32[1,16], index: 2, kind: input, shape index: {}]   ;;  %s4899_s3 = inlined_call_operand.hbm [shape: f32[128,16], index: 3, kind: output, shape index: {}]  }
   0x1   :  { %v15_v0 = vld [vmem:[%s4896_s0] sm:$0xff]  ;;  %v16_v1 = vld [vmem:[%s4896_s0 + $0x8] sm:$0xff]  ;;  %v17_v2 = vld [vmem:[%s4896_s0 + $0x10] sm:$0xff] }
   0x2   :  { %v18_v3 = vld [vmem:[%s4896_s0 + $0x18] sm:$0xff]  ;;  %v19_v4 = vld [vmem:[%s4896_s0 + $0x20] sm:$0xff]  ;;  %v20_v5 = vld [vmem:[%s4896_s0 + $0x28] sm:$0xff] }
   0x3   :  { %v21_v6 = vld [vmem:[%s4896_s0 + $0x30] sm:$0xff]  ;;  %v22_v7 = vld [vmem:[%s4896_s0 + $0x38] sm:$0xff]  ;;  %v23_v8 = vld [vmem:[%s4896_s0 + $0x40] sm:$0xff] }
   0x4   :  { %v24_v9 = vld [vmem:[%s4896_s0 + $0x48] sm:$0xff]  ;;  %v25_v10 = vld [vmem:[%s4896_s0 + $0x50] sm:$0xff]  ;;  %v26_v11 = vld [vmem:[%s4896_s0 + $0x58] sm:$0xff] }
   0x5   :  { %v1431_v12 = vld [vmem:[%s4897_s1] ss:$0 sm:$0xff]  ;;  %v28_v14 = vld [vmem:[%s4896_s0 + $0x68] sm:$0xff]  ;;  %v29_v15 = vld [vmem:[%s4896_s0 + $0x70] sm:$0xff] }
   0x6   :  { %v27_v13 = vld [vmem:[%s4896_s0 + $0x60] sm:$0xff]  ;;  %v30_v16 = vld [vmem:[%s4896_s0 + $0x78] sm:$0xff]  ;;  %v32_v18 = vld [vmem:[%s4896_s0 + $0x88] sm:$0xff]  ;;  %v1470_v25 = vmul.f32 %v1431_v12, %v15_v0  ;;  %v1473_v26 = vmul.f32 %v1431_v12, %v16_v1  ;;  %v1476_v27 = vmul.f32 %v1431_v12, %v17_v2  ;;  %v1479_v28 = vmul.f32 %v1431_v12, %v18_v3 }
   0x7   :  { %v31_v17 = vld [vmem:[%s4896_s0 + $0x80] sm:$0xff]  ;;  %v33_v19 = vld [vmem:[%s4896_s0 + $0x90] sm:$0xff]  ;;  %v34_v20 = vld [vmem:[%s4896_s0 + $0x98] sm:$0xff]  ;;  %v1494_v33 = vmul.f32 %v1431_v12, %v19_v4  ;;  %v1497_v34 = vmul.f32 %v1431_v12, %v20_v5  ;;  %v1500_v35 = vmul.f32 %v1431_v12, %v21_v6  ;;  %v1503_v36 = vmul.f32 %v1431_v12, %v22_v7 }
   0x8   :  { %v35_v21 = vld [vmem:[%s4896_s0 + $0xa0] sm:$0xff]  ;;  %v36_v22 = vld [vmem:[%s4896_s0 + $0xa8] sm:$0xff]  ;;  %v37_v23 = vld [vmem:[%s4896_s0 + $0xb0] sm:$0xff]  ;;  %v1518_v41 = vmul.f32 %v1431_v12, %v23_v8  ;;  %v1521_v42 = vmul.f32 %v1431_v12, %v24_v9  ;;  %v1524_v43 = vmul.f32 %v1431_v12, %v25_v10  ;;  %v1527_v44 = vmul.f32 %v1431_v12, %v26_v11 }
   0x9   :  { %v38_v24 = vld [vmem:[%s4896_s0 + $0xb8] sm:$0xff]  ;;  %v39_v29 = vld [vmem:[%s4896_s0 + $0xc0] sm:$0xff]  ;;  %v40_v30 = vld [vmem:[%s4896_s0 + $0xc8] sm:$0xff]  ;;  %v1542_v49 = vmul.f32 %v1431_v12, %v27_v13  ;;  %v1545_v50 = vmul.f32 %v1431_v12, %v28_v14  ;;  %v1548_v51 = vmul.f32 %v1431_v12, %v29_v15  ;;  %v1551_v52 = vmul.f32 %v1431_v12, %v30_v16 }
   0xa   :  { %v41_v31 = vld [vmem:[%s4896_s0 + $0xd0] sm:$0xff]  ;;  %v42_v32 = vld [vmem:[%s4896_s0 + $0xd8] sm:$0xff]  ;;  %v43_v37 = vld [vmem:[%s4896_s0 + $0xe0] sm:$0xff]  ;;  %v1563_v56 = vmul.f32 %v1431_v12, %v31_v17  ;;  %v1566_v57 = vmul.f32 %v1431_v12, %v32_v18  ;;  %v1569_v58 = vmul.f32 %v1431_v12, %v33_v19  ;;  %v1572_v59 = vmul.f32 %v1431_v12, %v34_v20 }
   0xb   :  { %v44_v38 = vld [vmem:[%s4896_s0 + $0xe8] sm:$0xff]  ;;  %v45_v39 = vld [vmem:[%s4896_s0 + $0xf0] sm:$0xff]  ;;  %v46_v40 = vld [vmem:[%s4896_s0 + $0xf8] sm:$0xff]  ;;  %v1587_v0 = vmul.f32 %v1431_v12, %v35_v21  ;;  %v1590_v1 = vmul.f32 %v1431_v12, %v36_v22  ;;  %v1593_v2 = vmul.f32 %v1431_v12, %v37_v23  ;;  %v1596_v3 = vmul.f32 %v1431_v12, %v38_v24 }
   0xc   :  { %v47_v45 = vld [vmem:[%s4896_s0 + $0x100] sm:$0xff]  ;;  %v48_v46 = vld [vmem:[%s4896_s0 + $0x108] sm:$0xff]  ;;  %v49_v47 = vld [vmem:[%s4896_s0 + $0x110] sm:$0xff]  ;;  %v1614_v9 = vmul.f32 %v1431_v12, %v39_v29  ;;  %v1617_v10 = vmul.f32 %v1431_v12, %v40_v30  ;;  %v1620_v11 = vmul.f32 %v1431_v12, %v41_v31  ;;  %v1623_v13 = vmul.f32 %v1431_v12, %v42_v32 }
   0xd   :  { %v50_v48 = vld [vmem:[%s4896_s0 + $0x118] sm:$0xff]  ;;  %v51_v53 = vld [vmem:[%s4896_s0 + $0x120] sm:$0xff]  ;;  %v52_v54 = vld [vmem:[%s4896_s0 + $0x128] sm:$0xff]  ;;  %v1635_v17 = vmul.f32 %v1431_v12, %v43_v37  ;;  %v1638_v18 = vmul.f32 %v1431_v12, %v44_v38  ;;  %v1641_v19 = vmul.f32 %v1431_v12, %v45_v39  ;;  %v1644_v20 = vmul.f32 %v1431_v12, %v46_v40 }
   0xe   :  { %v53_v55 = vld [vmem:[%s4896_s0 + $0x130] sm:$0xff]  ;;  %v54_v60 = vld [vmem:[%s4896_s0 + $0x138] sm:$0xff]  ;;  %v55_v61 = vld [vmem:[%s4896_s0 + $0x140] sm:$0xff]  ;;  %v1656_v24 = vmul.f32 %v1431_v12, %v47_v45  ;;  %v1659_v29 = vmul.f32 %v1431_v12, %v48_v46  ;;  %v1662_v30 = vmul.f32 %v1431_v12, %v49_v47  ;;  %v1665_v31 = vmul.f32 %v1431_v12, %v50_v48 }
   0xf   :  { %v56_v62 = vld [vmem:[%s4896_s0 + $0x148] sm:$0xff]  ;;  %v57_v63 = vld [vmem:[%s4896_s0 + $0x150] sm:$0xff]  ;;  %v58_v4 = vld [vmem:[%s4896_s0 + $0x158] sm:$0xff]  ;;  %v1680_v40 = vmul.f32 %v1431_v12, %v51_v53  ;;  %v1683_v45 = vmul.f32 %v1431_v12, %v52_v54  ;;  %v1686_v46 = vmul.f32 %v1431_v12, %v53_v55 }
  0x10   :  { %v59_v5 = vld [vmem:[%s4896_s0 + $0x160] sm:$0xff]  ;;  %v60_v6 = vld [vmem:[%s4896_s0 + $0x168] sm:$0xff]  ;;  %v61_v7 = vld [vmem:[%s4896_s0 + $0x170] sm:$0xff]  ;;  %5032 = vst [vmem:[#allocation5_spill] sm:$0xff] %v1659_v29 }
  0x11   :  { %v78_v8 = vld [vmem:[%s4896_s0 + $0x1f8] sm:$0xff]  ;;  %v63_v15 = vld [vmem:[%s4896_s0 + $0x180] sm:$0xff]  ;;  %v64_v16 = vld [vmem:[%s4896_s0 + $0x188] sm:$0xff]  ;;  %5033 = vst [vmem:[#allocation6_spill] sm:$0xff] %v1662_v30 }
  0x12   :  { %v62_v14 = vld [vmem:[%s4896_s0 + $0x178] sm:$0xff]  ;;  %v65_v21 = vld [vmem:[%s4896_s0 + $0x190] sm:$0xff]  ;;  %v67_v23 = vld [vmem:[%s4896_s0 + $0x1a0] sm:$0xff]  ;;  %5034 = vst [vmem:[#allocation7_spill] sm:$0xff] %v1665_v31  ;;  %v230_v47 = vmul.f32 %v1431_v12, %v78_v8  ;;  %v1705_v8 = vmul.f32 %v1431_v12, %v54_v60 }
  0x13   :  { %v66_v22 = vld [vmem:[%s4896_s0 + $0x198] sm:$0xff]  ;;  %v68_v32 = vld [vmem:[%s4896_s0 + $0x1a8] sm:$0xff]  ;;  %v69_v37 = vld [vmem:[%s4896_s0 + $0x1b0] sm:$0xff]  ;;  %5035 = vst [vmem:[#allocation8_spill] sm:$0xff] %v1680_v40  ;;  %v1714_v40 = vmul.f32 %v1431_v12, %v57_v63  ;;  %v1732_v63 = vmul.f32 %v1431_v12, %v60_v6  ;;  %v1752_v6 = vmul.f32 %v1431_v12, %v63_v15 }
  0x14   :  { %v70_v38 = vld [vmem:[%s4896_s0 + $0x1b8] sm:$0xff]  ;;  %v71_v39 = vld [vmem:[%s4896_s0 + $0x1c0] sm:$0xff]  ;;  %5036 = vst [vmem:[#allocation9_spill] sm:$0xff] %v1683_v45  ;;  %5037 = vst [vmem:[#allocation10_spill] sm:$0xff] %v1686_v46  ;;  %v1708_v46 = vmul.f32 %v1431_v12, %v55_v61  ;;  %v1711_v45 = vmul.f32 %v1431_v12, %v56_v62  ;;  %v1726_v61 = vmul.f32 %v1431_v12, %v58_v4 }
  0x15   :  { %v72_v48 = vld [vmem:[%s4896_s0 + $0x1c8] sm:$0xff]  ;;  %v73_v31 = vld [vmem:[%s4896_s0 + $0x1d0] sm:$0xff]  ;;  %v74_v53 = vld [vmem:[%s4896_s0 + $0x1d8] sm:$0xff]  ;;  %5040 = vst [vmem:[#allocation13_spill] sm:$0xff] %v1714_v40  ;;  %v1729_v62 = vmul.f32 %v1431_v12, %v59_v5  ;;  %v1735_v40 = vmul.f32 %v1431_v12, %v61_v7  ;;  %v1749_v5 = vmul.f32 %v1431_v12, %v62_v14  ;;  %v1755_v7 = vmul.f32 %v1431_v12, %v64_v16 }
  0x16   :  { %v75_v54 = vld [vmem:[%s4896_s0 + $0x1e0] sm:$0xff]  ;;  %v94_v55 = vld [vmem:[%s4896_s0 + $0x278] sm:$0xff]  ;;  %5038 = vst [vmem:[#allocation11_spill] sm:$0xff] %v1708_v46  ;;  %5039 = vst [vmem:[#allocation12_spill] sm:$0xff] %v1711_v45  ;;  %v1773_v16 = vmul.f32 %v1431_v12, %v66_v22 }
  0x17   :  { %v76_v30 = vld [vmem:[%s4896_s0 + $0x1e8] sm:$0xff]  ;;  %v77_v29 = vld [vmem:[%s4896_s0 + $0x1f0] sm:$0xff]  ;;  %v79_v60 = vld [vmem:[%s4896_s0 + $0x200] sm:$0xff]  ;;  %5041 = vst [vmem:[#allocation14_spill] sm:$0xff] %v1726_v61 }
  0x18   :  { %5042 = vst [vmem:[#allocation15_spill] sm:$0xff] %v1729_v62  ;;  %5043 = vst [vmem:[#allocation16_spill] sm:$0xff] %v1732_v63  ;;  %v80_v45 = vld [vmem:[%s4896_s0 + $0x208] sm:$0xff]  ;;  %v81_v46 = vld [vmem:[%s4896_s0 + $0x210] sm:$0xff] }
  0x19   :  { %5044 = vst [vmem:[#allocation17_spill] sm:$0xff] %v1735_v40  ;;  %v1746_v4 = vld [vmem:[%s4898_s2] ss:$0 sm:$0xff]  ;;  %5045 = vst [vmem:[#allocation18_spill] sm:$0xff] %v1749_v5  ;;  %v1758_v40 = vmul.f32 %v1431_v12, %v65_v21  ;;  %v82_v63 = vld [vmem:[%s4896_s0 + $0x218] sm:$0xff]  ;;  %v1776_v21 = vmul.f32 %v1431_v12, %v67_v23 }
  0x1a   :  { %5046 = vst [vmem:[#allocation19_spill] sm:$0xff] %v1752_v6  ;;  %5047 = vst [vmem:[#allocation20_spill] sm:$0xff] %v1755_v7  ;;  %v83_v62 = vld [vmem:[%s4896_s0 + $0x220] sm:$0xff]  ;;  %v84_v14 = vld [vmem:[%s4896_s0 + $0x228] sm:$0xff]  ;;  %v1780_v7 = vadd.f32 %v1746_v4, %v230_v47  ;;  %v1798_v47 = vmul.f32 %v1431_v12, %v69_v37  ;;  %v1816_v37 = vmul.f32 %v1431_v12, %v72_v48 }
  0x1b   :  { %5048 = vst [vmem:[#allocation21_spill] sm:$0xff] %v1758_v40  ;;  %v85_v15 = vld [vmem:[%s4896_s0 + $0x230] sm:$0xff]  ;;  %5049 = vst [vmem:[#allocation22_spill] sm:$0xff] %v1773_v16  ;;  %v246_v40 = vmul.f32 %v1431_v12, %v94_v55  ;;  %v86_v6 = vld [vmem:[%s4896_s0 + $0x238] sm:$0xff]  ;;  %v1795_v55 = vmul.f32 %v1431_v12, %v68_v32 }
  0x1c   :  { %5050 = vst [vmem:[#allocation23_spill] sm:$0xff] %v1776_v21  ;;  %5051 = vst [vmem:[#allocation24_spill] sm:$0xff] %v1780_v7  ;;  %v87_v5 = vld [vmem:[%s4896_s0 + $0x240] sm:$0xff]  ;;  %v109_v22 = vld [vmem:[%s4896_s0 + $0x2f0] sm:$0xff]  ;;  %v1801_v7 = vmul.f32 %v1431_v12, %v70_v38  ;;  %v1804_v21 = vmul.f32 %v1431_v12, %v71_v39  ;;  %v1819_v38 = vmul.f32 %v1431_v12, %v73_v31 }
  0x1d   :  { %v110_v23 = vld [vmem:[%s4896_s0 + $0x2f8] sm:$0xff]  ;;  %5052 = vst [vmem:[#allocation25_spill] sm:$0xff] %v1795_v55  ;;  %5053 = vst [vmem:[#allocation26_spill] sm:$0xff] %v1798_v47  ;;  %v88_v16 = vld [vmem:[%s4896_s0 + $0x248] sm:$0xff]  ;;  %v1822_v39 = vmul.f32 %v1431_v12, %v74_v53  ;;  %v1837_v31 = vmul.f32 %v1431_v12, %v76_v30  ;;  %v1840_v53 = vmul.f32 %v1431_v12, %v77_v29 }
  0x1e   :  { %5054 = vst [vmem:[#allocation27_spill] sm:$0xff] %v1801_v7  ;;  %5055 = vst [vmem:[#allocation28_spill] sm:$0xff] %v1804_v21  ;;  %v89_v61 = vld [vmem:[%s4896_s0 + $0x250] sm:$0xff]  ;;  %v90_v32 = vld [vmem:[%s4896_s0 + $0x258] sm:$0xff]  ;;  %v1825_v21 = vmul.f32 %v1431_v12, %v75_v54  ;;  %v1843_v54 = vmul.f32 %v1431_v12, %v79_v60  ;;  %v1861_v60 = vmul.f32 %v1431_v12, %v81_v46 }
  0x1f   :  { %5056 = vst [vmem:[#allocation29_spill] sm:$0xff] %v1816_v37  ;;  %5057 = vst [vmem:[#allocation30_spill] sm:$0xff] %v1819_v38  ;;  %v91_v7 = vld [vmem:[%s4896_s0 + $0x260] sm:$0xff]  ;;  %v92_v47 = vld [vmem:[%s4896_s0 + $0x268] sm:$0xff] }
  0x20   :  { %5058 = vst [vmem:[#allocation31_spill] sm:$0xff] %v1822_v39  ;;  %5059 = vst [vmem:[#allocation32_spill] sm:$0xff] %v1825_v21  ;;  %v93_v48 = vld [vmem:[%s4896_s0 + $0x270] sm:$0xff]  ;;  %v1846_v21 = vmul.f32 %v1431_v12, %v80_v45  ;;  %v95_v39 = vld [vmem:[%s4896_s0 + $0x280] sm:$0xff]  ;;  %v261_v45 = vmul.f32 %v1431_v12, %v109_v22  ;;  %v1881_v22 = vmul.f32 %v1431_v12, %v83_v62 }
  0x21   :  { %5060 = vst [vmem:[#allocation33_spill] sm:$0xff] %v1837_v31  ;;  %5061 = vst [vmem:[#allocation34_spill] sm:$0xff] %v1840_v53  ;;  %v96_v38 = vld [vmem:[%s4896_s0 + $0x288] sm:$0xff]  ;;  %v97_v30 = vld [vmem:[%s4896_s0 + $0x290] sm:$0xff]  ;;  %v1899_v62 = vmul.f32 %v1431_v12, %v86_v6 }
  0x22   :  { %5062 = vst [vmem:[#allocation35_spill] sm:$0xff] %v1843_v54  ;;  %5063 = vst [vmem:[#allocation36_spill] sm:$0xff] %v1846_v21  ;;  %v98_v29 = vld [vmem:[%s4896_s0 + $0x298] sm:$0xff]  ;;  %v262_v21 = vmul.f32 %v1431_v12, %v110_v23  ;;  %v1866_v54 = vadd.f32 %v1746_v4, %v246_v40  ;;  %v99_v53 = vld [vmem:[%s4896_s0 + $0x2a0] sm:$0xff]  ;;  %v1884_v40 = vmul.f32 %v1431_v12, %v84_v14 }
  0x23   :  { %5064 = vst [vmem:[#allocation37_spill] sm:$0xff] %v1861_v60  ;;  %v125_v31 = vld [vmem:[%s4896_s0 + $0x370] sm:$0xff]  ;;  %v126_v46 = vld [vmem:[%s4896_s0 + $0x378] sm:$0xff]  ;;  %v1878_v60 = vmul.f32 %v1431_v12, %v82_v63  ;;  %5067 = vst [vmem:[#allocation40_spill] sm:$0xff] %v1881_v22  ;;  %v1887_v23 = vmul.f32 %v1431_v12, %v85_v15  ;;  %v1902_v14 = vmul.f32 %v1431_v12, %v87_v5 }
  0x24   :  { %5065 = vst [vmem:[#allocation38_spill] sm:$0xff] %v1866_v54  ;;  %5068 = vst [vmem:[#allocation41_spill] sm:$0xff] %v1884_v40  ;;  %v100_v54 = vld [vmem:[%s4896_s0 + $0x2a8] sm:$0xff]  ;;  %v101_v37 = vld [vmem:[%s4896_s0 + $0x2b0] sm:$0xff]  ;;  %v1905_v15 = vmul.f32 %v1431_v12, %v88_v16  ;;  %v1920_v5 = vmul.f32 %v1431_v12, %v90_v32  ;;  %v1923_v16 = vmul.f32 %v1431_v12, %v91_v7 }
  0x25   :  { %5066 = vst [vmem:[#allocation39_spill] sm:$0xff] %v1878_v60  ;;  %5069 = vst [vmem:[#allocation42_spill] sm:$0xff] %v1887_v23  ;;  %v102_v63 = vld [vmem:[%s4896_s0 + $0x2b8] sm:$0xff]  ;;  %v1908_v23 = vmul.f32 %v1431_v12, %v89_v61  ;;  %v103_v40 = vld [vmem:[%s4896_s0 + $0x2c0] sm:$0xff]  ;;  %v1926_v61 = vmul.f32 %v1431_v12, %v92_v47  ;;  %v277_v47 = vmul.f32 %v1431_v12, %v125_v31 }
  0x26   :  { %5070 = vst [vmem:[#allocation43_spill] sm:$0xff] %v1899_v62  ;;  %5071 = vst [vmem:[#allocation44_spill] sm:$0xff] %v1902_v14  ;;  %v104_v22 = vld [vmem:[%s4896_s0 + $0x2c8] sm:$0xff]  ;;  %v105_v6 = vld [vmem:[%s4896_s0 + $0x2d0] sm:$0xff] }
  0x27   :  { %5072 = vst [vmem:[#allocation45_spill] sm:$0xff] %v1905_v15  ;;  %5073 = vst [vmem:[#allocation46_spill] sm:$0xff] %v1908_v23  ;;  %v1929_v23 = vmul.f32 %v1431_v12, %v93_v48  ;;  %v106_v15 = vld [vmem:[%s4896_s0 + $0x2d8] sm:$0xff]  ;;  %v107_v14 = vld [vmem:[%s4896_s0 + $0x2e0] sm:$0xff]  ;;  %v278_v48 = vmul.f32 %v1431_v12, %v126_v46  ;;  %v1961_v46 = vmul.f32 %v1431_v12, %v95_v39 }
  0x28   :  { %5074 = vst [vmem:[#allocation47_spill] sm:$0xff] %v1920_v5  ;;  %5075 = vst [vmem:[#allocation48_spill] sm:$0xff] %v1923_v16  ;;  %v108_v32 = vld [vmem:[%s4896_s0 + $0x2e8] sm:$0xff]  ;;  %v111_v16 = vld [vmem:[%s4896_s0 + $0x300] sm:$0xff] }
  0x29   :  { %5076 = vst [vmem:[#allocation49_spill] sm:$0xff] %v1926_v61  ;;  %5077 = vst [vmem:[#allocation50_spill] sm:$0xff] %v1929_v23  ;;  %v140_v7 = vld [vmem:[%s4896_s0 + $0x3e8] sm:$0xff]  ;;  %v1946_v23 = vadd.f32 %v1746_v4, %v261_v45  ;;  %v1949_v61 = vadd.f32 %v1746_v4, %v262_v21  ;;  %v141_v5 = vld [vmem:[%s4896_s0 + $0x3f0] sm:$0xff]  ;;  %v1964_v45 = vmul.f32 %v1431_v12, %v96_v38 }
  0x2a   :  { %v142_v31 = vld [vmem:[%s4896_s0 + $0x3f8] sm:$0xff]  ;;  %5080 = vst [vmem:[#allocation53_spill] sm:$0xff] %v1961_v46  ;;  %v1967_v21 = vmul.f32 %v1431_v12, %v97_v30  ;;  %v113_v62 = vld [vmem:[%s4896_s0 + $0x310] sm:$0xff]  ;;  %v1982_v38 = vmul.f32 %v1431_v12, %v99_v53  ;;  %v1985_v30 = vmul.f32 %v1431_v12, %v100_v54  ;;  %v2003_v54 = vmul.f32 %v1431_v12, %v103_v40  ;;  %v120_v40 = vld [vmem:[%s4896_s0 + $0x348] sm:$0xff] }
  0x2b   :  { %5078 = vst [vmem:[#allocation51_spill] sm:$0xff] %v1946_v23  ;;  %5079 = vst [vmem:[#allocation52_spill] sm:$0xff] %v1949_v61  ;;  %v1970_v61 = vmul.f32 %v1431_v12, %v98_v29  ;;  %v112_v23 = vld [vmem:[%s4896_s0 + $0x308] sm:$0xff]  ;;  %v114_v39 = vld [vmem:[%s4896_s0 + $0x318] sm:$0xff]  ;;  %v1988_v29 = vmul.f32 %v1431_v12, %v101_v37  ;;  %v2006_v37 = vmul.f32 %v1431_v12, %v104_v22 }
  0x2c   :  { %5081 = vst [vmem:[#allocation54_spill] sm:$0xff] %v1964_v45  ;;  %5082 = vst [vmem:[#allocation55_spill] sm:$0xff] %v1967_v21  ;;  %v115_v21 = vld [vmem:[%s4896_s0 + $0x320] sm:$0xff]  ;;  %v116_v45 = vld [vmem:[%s4896_s0 + $0x328] sm:$0xff] }
  0x2d   :  { %5083 = vst [vmem:[#allocation56_spill] sm:$0xff] %v1970_v61  ;;  %5084 = vst [vmem:[#allocation57_spill] sm:$0xff] %v1982_v38  ;;  %v1991_v61 = vmul.f32 %v1431_v12, %v102_v63  ;;  %v117_v53 = vld [vmem:[%s4896_s0 + $0x330] sm:$0xff]  ;;  %v2009_v63 = vmul.f32 %v1431_v12, %v105_v6  ;;  %v156_v6 = vld [vmem:[%s4896_s0 + $0x468] sm:$0xff]  ;;  %v2036_v38 = vadd.f32 %v1746_v4, %v278_v48 }
  0x2e   :  { %5085 = vst [vmem:[#allocation58_spill] sm:$0xff] %v1985_v30  ;;  %5086 = vst [vmem:[#allocation59_spill] sm:$0xff] %v1988_v29  ;;  %v118_v29 = vld [vmem:[%s4896_s0 + $0x338] sm:$0xff]  ;;  %v119_v30 = vld [vmem:[%s4896_s0 + $0x340] sm:$0xff]  ;;  %v2054_v48 = vmul.f32 %v1431_v12, %v108_v32  ;;  %v2072_v32 = vmul.f32 %v1431_v12, %v113_v62  ;;  %v2090_v62 = vmul.f32 %v1431_v12, %v116_v45 }
  0x2f   :  { %5087 = vst [vmem:[#allocation60_spill] sm:$0xff] %v1991_v61  ;;  %5088 = vst [vmem:[#allocation61_spill] sm:$0xff] %v2003_v54  ;;  %v292_v61 = vmul.f32 %v1431_v12, %v140_v7  ;;  %v121_v22 = vld [vmem:[%s4896_s0 + $0x350] sm:$0xff]  ;;  %v2033_v54 = vadd.f32 %v1746_v4, %v277_v47  ;;  %v122_v46 = vld [vmem:[%s4896_s0 + $0x358] sm:$0xff]  ;;  %v2051_v47 = vmul.f32 %v1431_v12, %v107_v14 }
  0x30   :  { %5089 = vst [vmem:[#allocation62_spill] sm:$0xff] %v2006_v37  ;;  %5090 = vst [vmem:[#allocation63_spill] sm:$0xff] %v2009_v63  ;;  %v157_v7 = vld [vmem:[%s4896_s0 + $0x470] sm:$0xff]  ;;  %v293_v63 = vmul.f32 %v1431_v12, %v141_v5  ;;  %v294_v37 = vmul.f32 %v1431_v12, %v142_v31  ;;  %v123_v60 = vld [vmem:[%s4896_s0 + $0x360] sm:$0xff]  ;;  %v2048_v31 = vmul.f32 %v1431_v12, %v106_v15 }
  0x31   :  { %5091 = vst [vmem:[#allocation64_spill] sm:$0xff] %v2033_v54  ;;  %5092 = vst [vmem:[#allocation65_spill] sm:$0xff] %v2036_v38  ;;  %v158_v5 = vld [vmem:[%s4896_s0 + $0x478] sm:$0xff]  ;;  %v2057_v38 = vmul.f32 %v1431_v12, %v111_v16  ;;  %v124_v54 = vld [vmem:[%s4896_s0 + $0x368] sm:$0xff]  ;;  %v2069_v14 = vmul.f32 %v1431_v12, %v112_v23  ;;  %v2075_v16 = vmul.f32 %v1431_v12, %v114_v39 }
  0x32   :  { %5093 = vst [vmem:[#allocation66_spill] sm:$0xff] %v2051_v47  ;;  %5094 = vst [vmem:[#allocation67_spill] sm:$0xff] %v2054_v48  ;;  %v127_v55 = vld [vmem:[%s4896_s0 + $0x380] sm:$0xff]  ;;  %v128_v15 = vld [vmem:[%s4896_s0 + $0x388] sm:$0xff]  ;;  %v2093_v39 = vmul.f32 %v1431_v12, %v117_v53  ;;  %v2108_v53 = vadd.f32 %v1746_v4, %v292_v61  ;;  %v2126_v61 = vmul.f32 %v1431_v12, %v118_v29 }
  0x33   :  { %5095 = vst [vmem:[#allocation68_spill] sm:$0xff] %v2057_v38  ;;  %5096 = vst [vmem:[#allocation69_spill] sm:$0xff] %v2069_v14  ;;  %v2078_v38 = vmul.f32 %v1431_v12, %v115_v21  ;;  %v129_v48 = vld [vmem:[%s4896_s0 + $0x390] sm:$0xff]  ;;  %v130_v47 = vld [vmem:[%s4896_s0 + $0x398] sm:$0xff]  ;;  %v308_v21 = vmul.f32 %v1431_v12, %v156_v6  ;;  %v2111_v6 = vadd.f32 %v1746_v4, %v293_v63 }
  0x34   :  { %5097 = vst [vmem:[#allocation70_spill] sm:$0xff] %v2072_v32  ;;  %5098 = vst [vmem:[#allocation71_spill] sm:$0xff] %v2075_v16  ;;  %v131_v23 = vld [vmem:[%s4896_s0 + $0x3a0] sm:$0xff]  ;;  %v132_v16 = vld [vmem:[%s4896_s0 + $0x3a8] sm:$0xff]  ;;  %v2129_v63 = vmul.f32 %v1431_v12, %v119_v30  ;;  %v2147_v30 = vmul.f32 %v1431_v12, %v122_v46 }
  0x35   :  { %5099 = vst [vmem:[#allocation72_spill] sm:$0xff] %v2078_v38  ;;  %5100 = vst [vmem:[#allocation73_spill] sm:$0xff] %v2090_v62  ;;  %v309_v38 = vmul.f32 %v1431_v12, %v157_v7  ;;  %v133_v32 = vld [vmem:[%s4896_s0 + $0x3b0] sm:$0xff]  ;;  %v134_v45 = vld [vmem:[%s4896_s0 + $0x3b8] sm:$0xff]  ;;  %v310_v62 = vmul.f32 %v1431_v12, %v158_v5  ;;  %v2114_v7 = vadd.f32 %v1746_v4, %v294_v37 }
  0x36   :  { %5101 = vst [vmem:[#allocation74_spill] sm:$0xff] %v2093_v39  ;;  %5102 = vst [vmem:[#allocation75_spill] sm:$0xff] %v2108_v53  ;;  %v135_v39 = vld [vmem:[%s4896_s0 + $0x3c0] sm:$0xff]  ;;  %v136_v14 = vld [vmem:[%s4896_s0 + $0x3c8] sm:$0xff]  ;;  %v2132_v37 = vmul.f32 %v1431_v12, %v120_v40  ;;  %v2150_v40 = vmul.f32 %v1431_v12, %v123_v60  ;;  %v2168_v60 = vmul.f32 %v1431_v12, %v128_v15 }
  0x37   :  { %5103 = vst [vmem:[#allocation76_spill] sm:$0xff] %v2111_v6  ;;  %5104 = vst [vmem:[#allocation77_spill] sm:$0xff] %v2114_v7  ;;  %v137_v5 = vld [vmem:[%s4896_s0 + $0x3d0] sm:$0xff]  ;;  %v2135_v7 = vmul.f32 %v1431_v12, %v121_v22  ;;  %v138_v6 = vld [vmem:[%s4896_s0 + $0x3d8] sm:$0xff]  ;;  %v2153_v22 = vmul.f32 %v1431_v12, %v124_v54  ;;  %v2171_v54 = vmul.f32 %v1431_v12, %v129_v48 }
  0x38   :  { %5105 = vst [vmem:[#allocation78_spill] sm:$0xff] %v2129_v63  ;;  %5106 = vst [vmem:[#allocation79_spill] sm:$0xff] %v2132_v37  ;;  %v139_v53 = vld [vmem:[%s4896_s0 + $0x3e0] sm:$0xff]  ;;  %v144_v37 = vld [vmem:[%s4896_s0 + $0x408] sm:$0xff]  ;;  %v2189_v48 = vmul.f32 %v1431_v12, %v132_v16 }
  0x39   :  { %5107 = vst [vmem:[#allocation80_spill] sm:$0xff] %v2135_v7  ;;  %v143_v29 = vld [vmem:[%s4896_s0 + $0x400] sm:$0xff]  ;;  %5108 = vst [vmem:[#allocation81_spill] sm:$0xff] %v2150_v40  ;;  %v2156_v7 = vmul.f32 %v1431_v12, %v127_v55  ;;  %v145_v63 = vld [vmem:[%s4896_s0 + $0x410] sm:$0xff]  ;;  %v2174_v55 = vmul.f32 %v1431_v12, %v130_v47  ;;  %v2192_v47 = vadd.f32 %v1746_v4, %v308_v21 }
  0x3a   :  { %5109 = vst [vmem:[#allocation82_spill] sm:$0xff] %v2153_v22  ;;  %v146_v46 = vld [vmem:[%s4896_s0 + $0x418] sm:$0xff]  ;;  %5111 = vst [vmem:[#allocation84_spill] sm:$0xff] %v2171_v54  ;;  %v147_v22 = vld [vmem:[%s4896_s0 + $0x420] sm:$0xff]  ;;  %v2210_v21 = vmul.f32 %v1431_v12, %v133_v32 }
  0x3b   :  { %5110 = vst [vmem:[#allocation83_spill] sm:$0xff] %v2156_v7  ;;  %5112 = vst [vmem:[#allocation85_spill] sm:$0xff] %v2174_v55  ;;  %v2177_v7 = vmul.f32 %v1431_v12, %v131_v23  ;;  %v148_v40 = vld [vmem:[%s4896_s0 + $0x428] sm:$0xff]  ;;  %v149_v15 = vld [vmem:[%s4896_s0 + $0x430] sm:$0xff]  ;;  %v2195_v23 = vadd.f32 %v1746_v4, %v309_v38  ;;  %v2213_v38 = vmul.f32 %v1431_v12, %v134_v45 }
  0x3c   :  { %5114 = vst [vmem:[#allocation87_spill] sm:$0xff] %v2192_v47  ;;  %v150_v55 = vld [vmem:[%s4896_s0 + $0x438] sm:$0xff]  ;;  %v151_v54 = vld [vmem:[%s4896_s0 + $0x440] sm:$0xff]  ;;  %v152_v16 = vld [vmem:[%s4896_s0 + $0x448] sm:$0xff]  ;;  %v2231_v45 = vmul.f32 %v1431_v12, %v137_v5  ;;  %v2252_v5 = vmul.f32 %v1431_v12, %v147_v22 }
  0x3d   :  { %5113 = vst [vmem:[#allocation86_spill] sm:$0xff] %v2177_v7  ;;  %5115 = vst [vmem:[#allocation88_spill] sm:$0xff] %v2195_v23  ;;  %v2198_v7 = vadd.f32 %v1746_v4, %v310_v62  ;;  %v2216_v62 = vmul.f32 %v1431_v12, %v135_v39  ;;  %v153_v23 = vld [vmem:[%s4896_s0 + $0x450] sm:$0xff]  ;;  %v154_v47 = vld [vmem:[%s4896_s0 + $0x458] sm:$0xff]  ;;  %v2234_v39 = vmul.f32 %v1431_v12, %v138_v6 }
  0x3e   :  { %5117 = vst [vmem:[#allocation90_spill] sm:$0xff] %v2210_v21  ;;  %5118 = vst [vmem:[#allocation91_spill] sm:$0xff] %v2213_v38  ;;  %v155_v32 = vld [vmem:[%s4896_s0 + $0x460] sm:$0xff]  ;;  %v2246_v38 = vmul.f32 %v1431_v12, %v145_v63  ;;  %v2249_v21 = vmul.f32 %v1431_v12, %v146_v46  ;;  %v2255_v6 = vmul.f32 %v1431_v12, %v148_v40 }
  0x3f   :  { %5116 = vst [vmem:[#allocation89_spill] sm:$0xff] %v2198_v7  ;;  %5119 = vst [vmem:[#allocation92_spill] sm:$0xff] %v2216_v62  ;;  %v2219_v7 = vmul.f32 %v1431_v12, %v136_v14  ;;  %v2237_v14 = vmul.f32 %v1431_v12, %v139_v53  ;;  %v2243_v62 = vmul.f32 %v1431_v12, %v144_v37 }
  0x40   :  { %v2258_v53 = vmul.f32 %v1431_v12, %v149_v15  ;;  %v2264_v37 = vmul.f32 %v1431_v12, %v151_v54  ;;  %v2267_v63 = vmul.f32 %v1431_v12, %v152_v16  ;;  %v2270_v46 = vmul.f32 %v1431_v12, %v153_v23  ;;  %v5135_v16 = vld [vmem:[#allocation6_spill] sm:$0xff] }
  0x41   :  { %5120 = vst [vmem:[#allocation93_spill] sm:$0xff] %v2219_v7  ;;  %v2240_v7 = vmul.f32 %v1431_v12, %v143_v29  ;;  %v2261_v29 = vmul.f32 %v1431_v12, %v150_v55  ;;  %v2273_v22 = vmul.f32 %v1431_v12, %v154_v47  ;;  %v2276_v40 = vmul.f32 %v1431_v12, %v155_v32  ;;  %v5133_v47 = vld [vmem:[#allocation5_spill] sm:$0xff]  ;;  %v5137_v32 = vld [vmem:[#allocation7_spill] sm:$0xff] }
  0x42   :  { %v2280_v15 = vadd.f32 %v1746_v4, %v1470_v25  ;;  %v2284_v54 = vadd.f32 %v1746_v4, %v1473_v26  ;;  %v2288_v55 = vadd.f32 %v1746_v4, %v1476_v27  ;;  %v2292_v23 = vadd.f32 %v1746_v4, %v1479_v28 }
  0x43   :  { %v2296_v12 = vadd.f32 %v1746_v4, %v1494_v33  ;;  %v2300_v25 = vadd.f32 %v1746_v4, %v1497_v34  ;;  %v2304_v26 = vadd.f32 %v1746_v4, %v1500_v35  ;;  %v2308_v27 = vadd.f32 %v1746_v4, %v1503_v36 }
  0x44   :  { %v2312_v28 = vadd.f32 %v1746_v4, %v1518_v41  ;;  %v2316_v33 = vadd.f32 %v1746_v4, %v1521_v42  ;;  %v2320_v34 = vadd.f32 %v1746_v4, %v1524_v43  ;;  %v2324_v35 = vadd.f32 %v1746_v4, %v1527_v44 }
  0x45   :  { %v2328_v36 = vadd.f32 %v1746_v4, %v1542_v49  ;;  %v2332_v41 = vadd.f32 %v1746_v4, %v1545_v50  ;;  %v2336_v42 = vadd.f32 %v1746_v4, %v1548_v51  ;;  %v2340_v43 = vadd.f32 %v1746_v4, %v1551_v52 }
  0x46   :  { %v2344_v44 = vadd.f32 %v1746_v4, %v1563_v56  ;;  %v2348_v49 = vadd.f32 %v1746_v4, %v1566_v57  ;;  %v2352_v50 = vadd.f32 %v1746_v4, %v1569_v58  ;;  %v2356_v51 = vadd.f32 %v1746_v4, %v1572_v59 }
  0x47   :  { %v2360_v52 = vadd.f32 %v1746_v4, %v1587_v0  ;;  %v2364_v56 = vadd.f32 %v1746_v4, %v1590_v1  ;;  %v2368_v57 = vadd.f32 %v1746_v4, %v1593_v2  ;;  %v2372_v58 = vadd.f32 %v1746_v4, %v1596_v3 }
  0x48   :  { %v2376_v59 = vadd.f32 %v1746_v4, %v1614_v9  ;;  %v2380_v0 = vadd.f32 %v1746_v4, %v1617_v10  ;;  %v2384_v1 = vadd.f32 %v1746_v4, %v1620_v11  ;;  %v2388_v2 = vadd.f32 %v1746_v4, %v1623_v13 }
  0x49   :  { %5121 = vst [vmem:[#allocation94_spill] sm:$0xff] %v2360_v52  ;;  %5122 = vst [vmem:[#allocation95_spill] sm:$0xff] %v2364_v56  ;;  %v2392_v3 = vadd.f32 %v1746_v4, %v1635_v17  ;;  %v2396_v9 = vadd.f32 %v1746_v4, %v1638_v18  ;;  %v2400_v10 = vadd.f32 %v1746_v4, %v1641_v19  ;;  %v3180_v56 = vld [vmem:[%s4896_s0 + $0x130] sm:$0xff]  ;;  %v3198_v52 = vld [vmem:[%s4896_s0 + $0x148] sm:$0xff] }
  0x4a   :  { %5123 = vst [vmem:[#allocation96_spill] sm:$0xff] %v2372_v58  ;;  %5124 = vst [vmem:[#allocation97_spill] sm:$0xff] %v2376_v59  ;;  %v2404_v11 = vadd.f32 %v1746_v4, %v1644_v20  ;;  %v2408_v13 = vadd.f32 %v1746_v4, %v1656_v24  ;;  %v2412_v17 = vadd.f32 %v1746_v4, %v5133_v47  ;;  %v2937_v58 = vld [vmem:[%s4896_s0 + $0x10] sm:$0xff]  ;;  %v3192_v59 = vld [vmem:[%s4896_s0 + $0x140] sm:$0xff] }
  0x4b   :  { %5125 = vst [vmem:[#allocation98_spill] sm:$0xff] %v2380_v0  ;;  %5126 = vst [vmem:[#allocation99_spill] sm:$0xff] %v2384_v1  ;;  %v2416_v18 = vadd.f32 %v1746_v4, %v5135_v16  ;;  %v2420_v19 = vadd.f32 %v1746_v4, %v5137_v32  ;;  %v2436_v16 = vadd.f32 %v1746_v4, %v1705_v8  ;;  %vm607_vm2 = vcmp.gt.f32.partialorder %v2937_v58, -5e+29  ;;  %v3105_v1 = vld [vmem:[%s4896_s0 + $0xd0] sm:$0xff]  ;;  %v3111_v0 = vld [vmem:[%s4896_s0 + $0xd8] sm:$0xff] }
  0x4c   :  { %5127 = vst [vmem:[#allocation100_spill] sm:$0xff] %v2388_v2  ;;  %5128 = vst [vmem:[#allocation101_spill] sm:$0xff] %v2392_v3  ;;  %v3123_v2 = vld [vmem:[%s4896_s0 + $0xe8] sm:$0xff]  ;;  %v3186_v3 = vld [vmem:[%s4896_s0 + $0x138] sm:$0xff]  ;;  %v5421_v58 = vmax.f32 %v2304_v26, 0.0 }
  0x4d   :  { %5129 = vst [vmem:[#allocation102_spill] sm:$0xff] %v2396_v9  ;;  %5130 = vst [vmem:[#allocation103_spill] sm:$0xff] %v2400_v10  ;;  %v5139_v10 = vld [vmem:[#allocation8_spill] sm:$0xff] }
  0x4e   :  { %5131 = vst [vmem:[#allocation104_spill] sm:$0xff] %v2404_v11  ;;  %5132 = vst [vmem:[#allocation105_spill] sm:$0xff] %v2408_v13  ;;  %v2424_v20 = vadd.f32 %v1746_v4, %v5139_v10  ;;  %v5141_v11 = vld [vmem:[#allocation9_spill] sm:$0xff]  ;;  %v5143_v13 = vld [vmem:[#allocation10_spill] sm:$0xff] }
  0x4f   :  { %5134 = vst [vmem:[#allocation5_spill] sm:$0xff] %v2412_v17  ;;  %5136 = vst [vmem:[#allocation6_spill] sm:$0xff] %v2416_v18  ;;  %v2428_v24 = vadd.f32 %v1746_v4, %v5141_v11  ;;  %v2432_v47 = vadd.f32 %v1746_v4, %v5143_v13  ;;  %v5146_v18 = vld [vmem:[#allocation11_spill] sm:$0xff]  ;;  %v2943_v17 = vld [vmem:[%s4896_s0 + $0x18] sm:$0xff] }
  0x50   :  { %5138 = vst [vmem:[#allocation7_spill] sm:$0xff] %v2420_v19  ;;  %5140 = vst [vmem:[#allocation8_spill] sm:$0xff] %v2424_v20  ;;  %v2440_v32 = vadd.f32 %v1746_v4, %v5146_v18  ;;  %v5148_v19 = vld [vmem:[#allocation12_spill] sm:$0xff]  ;;  %v5150_v20 = vld [vmem:[#allocation13_spill] sm:$0xff]  ;;  %vm608_vm3 = vcmp.gt.f32.partialorder %v2943_v17, -5e+29 }
  0x51   :  { %5142 = vst [vmem:[#allocation9_spill] sm:$0xff] %v2428_v24  ;;  %5144 = vst [vmem:[#allocation10_spill] sm:$0xff] %v2432_v47  ;;  %v2444_v10 = vadd.f32 %v1746_v4, %v5148_v19  ;;  %v2448_v11 = vadd.f32 %v1746_v4, %v5150_v20  ;;  %v5152_v24 = vld [vmem:[#allocation14_spill] sm:$0xff]  ;;  %v5154_v47 = vld [vmem:[#allocation15_spill] sm:$0xff] }
  0x52   :  { %5145 = vst [vmem:[#allocation106_spill] sm:$0xff] %v2436_v16  ;;  %5147 = vst [vmem:[#allocation11_spill] sm:$0xff] %v2440_v32  ;;  %v2452_v13 = vadd.f32 %v1746_v4, %v5152_v24  ;;  %v2456_v8 = vadd.f32 %v1746_v4, %v5154_v47  ;;  %v5156_v16 = vld [vmem:[#allocation16_spill] sm:$0xff]  ;;  %v5158_v32 = vld [vmem:[#allocation17_spill] sm:$0xff] }
  0x53   :  { %5149 = vst [vmem:[#allocation12_spill] sm:$0xff] %v2444_v10  ;;  %5151 = vst [vmem:[#allocation13_spill] sm:$0xff] %v2448_v11  ;;  %v2460_v18 = vadd.f32 %v1746_v4, %v5156_v16  ;;  %v2464_v19 = vadd.f32 %v1746_v4, %v5158_v32  ;;  %v5160_v10 = vld [vmem:[#allocation18_spill] sm:$0xff]  ;;  %v5162_v11 = vld [vmem:[#allocation19_spill] sm:$0xff] }
  0x54   :  { %5153 = vst [vmem:[#allocation14_spill] sm:$0xff] %v2452_v13  ;;  %5155 = vst [vmem:[#allocation15_spill] sm:$0xff] %v2456_v8  ;;  %v2468_v20 = vadd.f32 %v1746_v4, %v5160_v10  ;;  %v2472_v24 = vadd.f32 %v1746_v4, %v5162_v11  ;;  %v5164_v13 = vld [vmem:[#allocation20_spill] sm:$0xff]  ;;  %v5166_v8 = vld [vmem:[#allocation21_spill] sm:$0xff] }
  0x55   :  { %5157 = vst [vmem:[#allocation16_spill] sm:$0xff] %v2460_v18  ;;  %5159 = vst [vmem:[#allocation17_spill] sm:$0xff] %v2464_v19  ;;  %v2476_v47 = vadd.f32 %v1746_v4, %v5164_v13  ;;  %v2480_v16 = vadd.f32 %v1746_v4, %v5166_v8  ;;  %v5168_v18 = vld [vmem:[#allocation22_spill] sm:$0xff]  ;;  %v5170_v19 = vld [vmem:[#allocation23_spill] sm:$0xff] }
  0x56   :  { %5161 = vst [vmem:[#allocation18_spill] sm:$0xff] %v2468_v20  ;;  %5163 = vst [vmem:[#allocation19_spill] sm:$0xff] %v2472_v24  ;;  %v2484_v32 = vadd.f32 %v1746_v4, %v5168_v18  ;;  %v2488_v10 = vadd.f32 %v1746_v4, %v5170_v19  ;;  %v5172_v20 = vld [vmem:[#allocation25_spill] sm:$0xff]  ;;  %v5174_v24 = vld [vmem:[#allocation26_spill] sm:$0xff] }
  0x57   :  { %5165 = vst [vmem:[#allocation20_spill] sm:$0xff] %v2476_v47  ;;  %5167 = vst [vmem:[#allocation21_spill] sm:$0xff] %v2480_v16  ;;  %v2492_v11 = vadd.f32 %v1746_v4, %v5172_v20  ;;  %v2496_v13 = vadd.f32 %v1746_v4, %v5174_v24  ;;  %v5176_v47 = vld [vmem:[#allocation27_spill] sm:$0xff]  ;;  %v5178_v16 = vld [vmem:[#allocation28_spill] sm:$0xff] }
  0x58   :  { %5169 = vst [vmem:[#allocation22_spill] sm:$0xff] %v2484_v32  ;;  %5171 = vst [vmem:[#allocation23_spill] sm:$0xff] %v2488_v10  ;;  %v2500_v8 = vadd.f32 %v1746_v4, %v5176_v47  ;;  %v2504_v18 = vadd.f32 %v1746_v4, %v5178_v16  ;;  %v5180_v32 = vld [vmem:[#allocation29_spill] sm:$0xff]  ;;  %v5182_v10 = vld [vmem:[#allocation30_spill] sm:$0xff] }
  0x59   :  { %5173 = vst [vmem:[#allocation25_spill] sm:$0xff] %v2492_v11  ;;  %5175 = vst [vmem:[#allocation26_spill] sm:$0xff] %v2496_v13  ;;  %v2508_v19 = vadd.f32 %v1746_v4, %v5180_v32  ;;  %v2512_v20 = vadd.f32 %v1746_v4, %v5182_v10  ;;  %v5184_v11 = vld [vmem:[#allocation31_spill] sm:$0xff]  ;;  %v5186_v13 = vld [vmem:[#allocation32_spill] sm:$0xff] }
  0x5a   :  { %5177 = vst [vmem:[#allocation27_spill] sm:$0xff] %v2500_v8  ;;  %5179 = vst [vmem:[#allocation28_spill] sm:$0xff] %v2504_v18  ;;  %v2516_v24 = vadd.f32 %v1746_v4, %v5184_v11  ;;  %v2520_v47 = vadd.f32 %v1746_v4, %v5186_v13  ;;  %v5188_v8 = vld [vmem:[#allocation33_spill] sm:$0xff]  ;;  %v5190_v18 = vld [vmem:[#allocation34_spill] sm:$0xff] }
  0x5b   :  { %5181 = vst [vmem:[#allocation29_spill] sm:$0xff] %v2508_v19  ;;  %5183 = vst [vmem:[#allocation30_spill] sm:$0xff] %v2512_v20  ;;  %v2524_v16 = vadd.f32 %v1746_v4, %v5188_v8  ;;  %v2528_v32 = vadd.f32 %v1746_v4, %v5190_v18  ;;  %v5192_v19 = vld [vmem:[#allocation35_spill] sm:$0xff]  ;;  %v5194_v20 = vld [vmem:[#allocation36_spill] sm:$0xff] }
  0x5c   :  { %5185 = vst [vmem:[#allocation31_spill] sm:$0xff] %v2516_v24  ;;  %5187 = vst [vmem:[#allocation32_spill] sm:$0xff] %v2520_v47  ;;  %v2532_v10 = vadd.f32 %v1746_v4, %v5192_v19  ;;  %v2536_v11 = vadd.f32 %v1746_v4, %v5194_v20  ;;  %v5196_v24 = vld [vmem:[#allocation37_spill] sm:$0xff]  ;;  %v5198_v47 = vld [vmem:[#allocation39_spill] sm:$0xff] }
  0x5d   :  { %5189 = vst [vmem:[#allocation33_spill] sm:$0xff] %v2524_v16  ;;  %5191 = vst [vmem:[#allocation34_spill] sm:$0xff] %v2528_v32  ;;  %v2540_v13 = vadd.f32 %v1746_v4, %v5196_v24  ;;  %v2544_v8 = vadd.f32 %v1746_v4, %v5198_v47  ;;  %v5200_v16 = vld [vmem:[#allocation40_spill] sm:$0xff]  ;;  %v5202_v32 = vld [vmem:[#allocation41_spill] sm:$0xff] }
  0x5e   :  { %5193 = vst [vmem:[#allocation35_spill] sm:$0xff] %v2532_v10  ;;  %5195 = vst [vmem:[#allocation36_spill] sm:$0xff] %v2536_v11  ;;  %v2548_v18 = vadd.f32 %v1746_v4, %v5200_v16  ;;  %v2552_v19 = vadd.f32 %v1746_v4, %v5202_v32  ;;  %v5204_v10 = vld [vmem:[#allocation42_spill] sm:$0xff]  ;;  %v5206_v11 = vld [vmem:[#allocation43_spill] sm:$0xff] }
  0x5f   :  { %5197 = vst [vmem:[#allocation37_spill] sm:$0xff] %v2540_v13  ;;  %5199 = vst [vmem:[#allocation39_spill] sm:$0xff] %v2544_v8  ;;  %v2556_v20 = vadd.f32 %v1746_v4, %v5204_v10  ;;  %v2560_v24 = vadd.f32 %v1746_v4, %v5206_v11  ;;  %v5208_v13 = vld [vmem:[#allocation44_spill] sm:$0xff]  ;;  %v5210_v8 = vld [vmem:[#allocation45_spill] sm:$0xff] }
  0x60   :  { %5201 = vst [vmem:[#allocation40_spill] sm:$0xff] %v2548_v18  ;;  %5203 = vst [vmem:[#allocation41_spill] sm:$0xff] %v2552_v19  ;;  %v2564_v47 = vadd.f32 %v1746_v4, %v5208_v13  ;;  %v2568_v16 = vadd.f32 %v1746_v4, %v5210_v8  ;;  %v5212_v18 = vld [vmem:[#allocation46_spill] sm:$0xff]  ;;  %v5214_v19 = vld [vmem:[#allocation47_spill] sm:$0xff] }
  0x61   :  { %5205 = vst [vmem:[#allocation42_spill] sm:$0xff] %v2556_v20  ;;  %5207 = vst [vmem:[#allocation43_spill] sm:$0xff] %v2560_v24  ;;  %v2572_v32 = vadd.f32 %v1746_v4, %v5212_v18  ;;  %v2576_v10 = vadd.f32 %v1746_v4, %v5214_v19  ;;  %v5216_v20 = vld [vmem:[#allocation48_spill] sm:$0xff]  ;;  %v5218_v24 = vld [vmem:[#allocation49_spill] sm:$0xff] }
  0x62   :  { %5209 = vst [vmem:[#allocation44_spill] sm:$0xff] %v2564_v47  ;;  %5211 = vst [vmem:[#allocation45_spill] sm:$0xff] %v2568_v16  ;;  %v2580_v11 = vadd.f32 %v1746_v4, %v5216_v20  ;;  %v2584_v13 = vadd.f32 %v1746_v4, %v5218_v24  ;;  %v5220_v47 = vld [vmem:[#allocation50_spill] sm:$0xff]  ;;  %v5222_v16 = vld [vmem:[#allocation53_spill] sm:$0xff] }
  0x63   :  { %5213 = vst [vmem:[#allocation46_spill] sm:$0xff] %v2572_v32  ;;  %5215 = vst [vmem:[#allocation47_spill] sm:$0xff] %v2576_v10  ;;  %v2588_v8 = vadd.f32 %v1746_v4, %v5220_v47  ;;  %v2592_v18 = vadd.f32 %v1746_v4, %v5222_v16  ;;  %v5224_v32 = vld [vmem:[#allocation54_spill] sm:$0xff]  ;;  %v5226_v10 = vld [vmem:[#allocation55_spill] sm:$0xff] }
  0x64   :  { %5217 = vst [vmem:[#allocation48_spill] sm:$0xff] %v2580_v11  ;;  %5219 = vst [vmem:[#allocation49_spill] sm:$0xff] %v2584_v13  ;;  %v2596_v19 = vadd.f32 %v1746_v4, %v5224_v32  ;;  %v2600_v20 = vadd.f32 %v1746_v4, %v5226_v10  ;;  %v5228_v11 = vld [vmem:[#allocation56_spill] sm:$0xff]  ;;  %v5230_v13 = vld [vmem:[#allocation57_spill] sm:$0xff] }
  0x65   :  { %5221 = vst [vmem:[#allocation50_spill] sm:$0xff] %v2588_v8  ;;  %5223 = vst [vmem:[#allocation53_spill] sm:$0xff] %v2592_v18  ;;  %v2604_v24 = vadd.f32 %v1746_v4, %v5228_v11  ;;  %v2608_v47 = vadd.f32 %v1746_v4, %v5230_v13  ;;  %v5232_v8 = vld [vmem:[#allocation58_spill] sm:$0xff]  ;;  %v5234_v18 = vld [vmem:[#allocation59_spill] sm:$0xff] }
  0x66   :  { %5225 = vst [vmem:[#allocation54_spill] sm:$0xff] %v2596_v19  ;;  %5227 = vst [vmem:[#allocation55_spill] sm:$0xff] %v2600_v20  ;;  %v2612_v16 = vadd.f32 %v1746_v4, %v5232_v8  ;;  %v2616_v32 = vadd.f32 %v1746_v4, %v5234_v18  ;;  %v5236_v19 = vld [vmem:[#allocation60_spill] sm:$0xff]  ;;  %v5238_v20 = vld [vmem:[#allocation61_spill] sm:$0xff]  ;;  %v2636_v18 = vadd.f32 %v1746_v4, %v2048_v31 }
  0x67   :  { %5229 = vst [vmem:[#allocation56_spill] sm:$0xff] %v2604_v24  ;;  %5231 = vst [vmem:[#allocation57_spill] sm:$0xff] %v2608_v47  ;;  %v2620_v10 = vadd.f32 %v1746_v4, %v5236_v19  ;;  %v2624_v11 = vadd.f32 %v1746_v4, %v5238_v20  ;;  %v5240_v24 = vld [vmem:[#allocation62_spill] sm:$0xff]  ;;  %v5242_v47 = vld [vmem:[#allocation63_spill] sm:$0xff] }
  0x68   :  { %5233 = vst [vmem:[#allocation58_spill] sm:$0xff] %v2612_v16  ;;  %5235 = vst [vmem:[#allocation59_spill] sm:$0xff] %v2616_v32  ;;  %v2628_v13 = vadd.f32 %v1746_v4, %v5240_v24  ;;  %v2632_v8 = vadd.f32 %v1746_v4, %v5242_v47  ;;  %v5245_v32 = vld [vmem:[#allocation66_spill] sm:$0xff]  ;;  %v3027_v16 = vld [vmem:[%s4896_s0 + $0x78] sm:$0xff] }
  0x69   :  { %5237 = vst [vmem:[#allocation60_spill] sm:$0xff] %v2620_v10  ;;  %5239 = vst [vmem:[#allocation61_spill] sm:$0xff] %v2624_v11  ;;  %v2640_v19 = vadd.f32 %v1746_v4, %v5245_v32  ;;  %v5247_v10 = vld [vmem:[#allocation67_spill] sm:$0xff]  ;;  %v5249_v11 = vld [vmem:[#allocation68_spill] sm:$0xff] }
  0x6a   :  { %5241 = vst [vmem:[#allocation62_spill] sm:$0xff] %v2628_v13  ;;  %5243 = vst [vmem:[#allocation63_spill] sm:$0xff] %v2632_v8  ;;  %v2644_v20 = vadd.f32 %v1746_v4, %v5247_v10  ;;  %v2648_v24 = vadd.f32 %v1746_v4, %v5249_v11  ;;  %v5251_v13 = vld [vmem:[#allocation69_spill] sm:$0xff]  ;;  %v5253_v8 = vld [vmem:[#allocation70_spill] sm:$0xff] }
  0x6b   :  { %5244 = vst [vmem:[#allocation107_spill] sm:$0xff] %v2636_v18  ;;  %5246 = vst [vmem:[#allocation66_spill] sm:$0xff] %v2640_v19  ;;  %v2652_v47 = vadd.f32 %v1746_v4, %v5251_v13  ;;  %v2656_v31 = vadd.f32 %v1746_v4, %v5253_v8  ;;  %v5255_v18 = vld [vmem:[#allocation71_spill] sm:$0xff]  ;;  %v5257_v19 = vld [vmem:[#allocation72_spill] sm:$0xff]  ;;  %v2676_v8 = vadd.f32 %v1746_v4, %v2126_v61 }
  0x6c   :  { %5248 = vst [vmem:[#allocation67_spill] sm:$0xff] %v2644_v20  ;;  %5250 = vst [vmem:[#allocation68_spill] sm:$0xff] %v2648_v24  ;;  %v2660_v32 = vadd.f32 %v1746_v4, %v5255_v18  ;;  %v2664_v10 = vadd.f32 %v1746_v4, %v5257_v19  ;;  %v5259_v20 = vld [vmem:[#allocation73_spill] sm:$0xff]  ;;  %v5261_v24 = vld [vmem:[#allocation74_spill] sm:$0xff] }
  0x6d   :  { %5252 = vst [vmem:[#allocation69_spill] sm:$0xff] %v2652_v47  ;;  %5254 = vst [vmem:[#allocation70_spill] sm:$0xff] %v2656_v31  ;;  %v2668_v11 = vadd.f32 %v1746_v4, %v5259_v20  ;;  %v2672_v13 = vadd.f32 %v1746_v4, %v5261_v24  ;;  %v5264_v31 = vld [vmem:[#allocation78_spill] sm:$0xff]  ;;  %v2692_v24 = vadd.f32 %v1746_v4, %v2147_v30  ;;  %v3021_v47 = vld [vmem:[%s4896_s0 + $0x70] sm:$0xff] }
  0x6e   :  { %5256 = vst [vmem:[#allocation71_spill] sm:$0xff] %v2660_v32  ;;  %5258 = vst [vmem:[#allocation72_spill] sm:$0xff] %v2664_v10  ;;  %v2680_v18 = vadd.f32 %v1746_v4, %v5264_v31  ;;  %v5266_v32 = vld [vmem:[#allocation79_spill] sm:$0xff]  ;;  %v5268_v10 = vld [vmem:[#allocation80_spill] sm:$0xff] }
  0x6f   :  { %5260 = vst [vmem:[#allocation73_spill] sm:$0xff] %v2668_v11  ;;  %5262 = vst [vmem:[#allocation74_spill] sm:$0xff] %v2672_v13  ;;  %v2684_v19 = vadd.f32 %v1746_v4, %v5266_v32  ;;  %v2688_v20 = vadd.f32 %v1746_v4, %v5268_v10  ;;  %v5271_v13 = vld [vmem:[#allocation81_spill] sm:$0xff]  ;;  %v2708_v10 = vadd.f32 %v1746_v4, %v2168_v60  ;;  %v3083_v9 = vld [vmem:[%s4896_s0 + $0xb8] sm:$0xff] }
  0x70   :  { %5263 = vst [vmem:[#allocation108_spill] sm:$0xff] %v2676_v8  ;;  %5265 = vst [vmem:[#allocation78_spill] sm:$0xff] %v2680_v18  ;;  %v2696_v61 = vadd.f32 %v1746_v4, %v5271_v13  ;;  %v5273_v8 = vld [vmem:[#allocation82_spill] sm:$0xff]  ;;  %v5275_v18 = vld [vmem:[#allocation83_spill] sm:$0xff] }
  0x71   :  { %5267 = vst [vmem:[#allocation79_spill] sm:$0xff] %v2684_v19  ;;  %5269 = vst [vmem:[#allocation80_spill] sm:$0xff] %v2688_v20  ;;  %v2700_v31 = vadd.f32 %v1746_v4, %v5273_v8  ;;  %v2704_v32 = vadd.f32 %v1746_v4, %v5275_v18  ;;  %v5278_v20 = vld [vmem:[#allocation84_spill] sm:$0xff]  ;;  %v2724_v18 = vadd.f32 %v1746_v4, %v2189_v48  ;;  %v3144_v19 = vld [vmem:[%s4896_s0 + $0x100] sm:$0xff] }
  0x72   :  { %5270 = vst [vmem:[#allocation109_spill] sm:$0xff] %v2692_v24  ;;  %5272 = vst [vmem:[#allocation81_spill] sm:$0xff] %v2696_v61  ;;  %v2712_v30 = vadd.f32 %v1746_v4, %v5278_v20  ;;  %v5280_v24 = vld [vmem:[#allocation85_spill] sm:$0xff]  ;;  %v5282_v61 = vld [vmem:[#allocation86_spill] sm:$0xff]  ;;  %v2744_v48 = vadd.f32 %v1746_v4, %v2231_v45  ;;  %v2764_v45 = vadd.f32 %v1746_v4, %v2246_v38 }
  0x73   :  { %5274 = vst [vmem:[#allocation82_spill] sm:$0xff] %v2700_v31  ;;  %5276 = vst [vmem:[#allocation83_spill] sm:$0xff] %v2704_v32  ;;  %v2716_v13 = vadd.f32 %v1746_v4, %v5280_v24  ;;  %v2720_v8 = vadd.f32 %v1746_v4, %v5282_v61  ;;  %v5285_v32 = vld [vmem:[#allocation90_spill] sm:$0xff]  ;;  %v2784_v38 = vadd.f32 %v1746_v4, %v2261_v29  ;;  %v3138_v11 = vld [vmem:[%s4896_s0 + $0xf8] sm:$0xff] }
  0x74   :  { %5277 = vst [vmem:[#allocation110_spill] sm:$0xff] %v2708_v10  ;;  %5279 = vst [vmem:[#allocation84_spill] sm:$0xff] %v2712_v30  ;;  %v2728_v60 = vadd.f32 %v1746_v4, %v5285_v32  ;;  %v5287_v10 = vld [vmem:[#allocation91_spill] sm:$0xff]  ;;  %v5289_v30 = vld [vmem:[#allocation92_spill] sm:$0xff]  ;;  %v2748_v32 = vadd.f32 %v1746_v4, %v2234_v39  ;;  %v2768_v39 = vadd.f32 %v1746_v4, %v2249_v21 }
  0x75   :  { %5281 = vst [vmem:[#allocation85_spill] sm:$0xff] %v2716_v13  ;;  %5283 = vst [vmem:[#allocation86_spill] sm:$0xff] %v2720_v8  ;;  %v2732_v20 = vadd.f32 %v1746_v4, %v5287_v10  ;;  %v2736_v24 = vadd.f32 %v1746_v4, %v5289_v30  ;;  %v5291_v13 = vld [vmem:[#allocation93_spill] sm:$0xff]  ;;  %v2752_v10 = vadd.f32 %v1746_v4, %v2237_v14  ;;  %v2999_v8 = vld [vmem:[%s4896_s0 + $0x58] sm:$0xff] }
  0x76   :  { %5284 = vst [vmem:[#allocation111_spill] sm:$0xff] %v2724_v18  ;;  %5286 = vst [vmem:[#allocation90_spill] sm:$0xff] %v2728_v60  ;;  %v2740_v61 = vadd.f32 %v1746_v4, %v5291_v13  ;;  %v2756_v30 = vadd.f32 %v1746_v4, %v2240_v7  ;;  %v2760_v13 = vadd.f32 %v1746_v4, %v2243_v62  ;;  %v2993_v18 = vld [vmem:[%s4896_s0 + $0x50] sm:$0xff]  ;;  %vm616_vm11 = vcmp.gt.f32.partialorder %v2999_v8, -5e+29  ;;  %v3011_v60 = vld [vmem:[%s4896_s0 + $0x68] sm:$0xff] }
  0x77   :  { %5288 = vst [vmem:[#allocation91_spill] sm:$0xff] %v2732_v20  ;;  %5290 = vst [vmem:[#allocation92_spill] sm:$0xff] %v2736_v24  ;;  %v2772_v14 = vadd.f32 %v1746_v4, %v2252_v5  ;;  %v2776_v7 = vadd.f32 %v1746_v4, %v2255_v6  ;;  %v2780_v62 = vadd.f32 %v1746_v4, %v2258_v53  ;;  %vm615_vm10 = vcmp.gt.f32.partialorder %v2993_v18, -5e+29  ;;  %v3005_v20 = vld [vmem:[%s4896_s0 + $0x60] sm:$0xff]  ;;  %v3039_v31 = vld [vmem:[%s4896_s0 + $0x88] sm:$0xff] }
  0x78   :  { %5292 = vst [vmem:[#allocation93_spill] sm:$0xff] %v2740_v61  ;;  %5293 = vst [vmem:[#allocation112_spill] sm:$0xff] %v2744_v48  ;;  %v2788_v21 = vadd.f32 %v1746_v4, %v2264_v37  ;;  %v2792_v5 = vadd.f32 %v1746_v4, %v2267_v63  ;;  %v2796_v6 = vadd.f32 %v1746_v4, %v2270_v46  ;;  %v2921_v63 = vld [vmem:[%s4896_s0] sm:$0xff]  ;;  %v2983_v46 = vld [vmem:[%s4896_s0 + $0x48] sm:$0xff]  ;;  %vm617_vm12 = vcmp.gt.f32.partialorder %v3005_v20, -5e+29 }
  0x79   :  { %5294 = vst [vmem:[#allocation113_spill] sm:$0xff] %v2748_v32  ;;  %5295 = vst [vmem:[#allocation114_spill] sm:$0xff] %v2752_v10  ;;  %v2800_v53 = vadd.f32 %v1746_v4, %v2273_v22  ;;  %v2804_v29 = vadd.f32 %v1746_v4, %v2276_v40  ;;  %vm605_vm0 = vcmp.gt.f32.partialorder %v2921_v63, -5e+29  ;;  %v2949_v37 = vld [vmem:[%s4896_s0 + $0x20] sm:$0xff]  ;;  %v2965_v22 = vld [vmem:[%s4896_s0 + $0x30] sm:$0xff] }
  0x7a   :  { %5296 = vst [vmem:[#allocation115_spill] sm:$0xff] %v2756_v30  ;;  %5297 = vst [vmem:[#allocation116_spill] sm:$0xff] %v2760_v13  ;;  %vm609_vm4 = vcmp.gt.f32.partialorder %v2949_v37, -5e+29  ;;  %vm611_vm6 = vcmp.gt.f32.partialorder %v2965_v22, -5e+29 }
  0x7b   :  { %5298 = vst [vmem:[#allocation117_spill] sm:$0xff] %v2764_v45  ;;  %5299 = vst [vmem:[#allocation118_spill] sm:$0xff] %v2768_v39  ;;  %vm614_vm9 = vcmp.gt.f32.partialorder %v2983_v46, -5e+29  ;;  %v3033_v61 = vld [vmem:[%s4896_s0 + $0x80] sm:$0xff]  ;;  %v3049_v4 = vld [vmem:[%s4896_s0 + $0x90] sm:$0xff] }
  0x7c   :  { %5300 = vst [vmem:[#allocation119_spill] sm:$0xff] %v2772_v14  ;;  %5301 = vst [vmem:[#allocation120_spill] sm:$0xff] %v2776_v7  ;;  %v3055_v10 = vld [vmem:[%s4896_s0 + $0x98] sm:$0xff]  ;;  %v3061_v24 = vld [vmem:[%s4896_s0 + $0xa0] sm:$0xff]  ;;  %v5415_v63 = vmax.f32 %v2292_v23, 0.0  ;;  %v3313_v17 = vsel %vm611_vm6, %v5421_v58, 0.0 }
  0x7d   :  { %5302 = vst [vmem:[#allocation121_spill] sm:$0xff] %v2780_v62  ;;  %5303 = vst [vmem:[#allocation122_spill] sm:$0xff] %v2784_v38  ;;  %v3067_v48 = vld [vmem:[%s4896_s0 + $0xa8] sm:$0xff]  ;;  %v3077_v30 = vld [vmem:[%s4896_s0 + $0xb0] sm:$0xff]  ;;  %v5431_v22 = vmax.f32 %v2324_v35, 0.0  ;;  %v5438_v18 = vmax.f32 %v2336_v42, 0.0 }
  0x7e   :  { %5304 = vst [vmem:[#allocation123_spill] sm:$0xff] %v2788_v21  ;;  %5305 = vst [vmem:[#allocation124_spill] sm:$0xff] %v2792_v5  ;;  %v2955_v21 = vld [vmem:[%s4896_s0 + $0x28] sm:$0xff]  ;;  %v2977_v5 = vld [vmem:[%s4896_s0 + $0x40] sm:$0xff]  ;;  %v5441_v20 = vmax.f32 %v2340_v43, 0.0 }
  0x7f   :  { %5306 = vst [vmem:[#allocation125_spill] sm:$0xff] %v2796_v6  ;;  %5307 = vst [vmem:[#allocation126_spill] sm:$0xff] %v2800_v53  ;;  %v2927_v6 = vld [vmem:[%s4896_s0 + $0x8] sm:$0xff]  ;;  %vm610_vm5 = vcmp.gt.f32.partialorder %v2955_v21, -5e+29  ;;  %v2971_v53 = vld [vmem:[%s4896_s0 + $0x38] sm:$0xff] }
  0x80   :  { %5308 = vst [vmem:[#allocation127_spill] sm:$0xff] %v2804_v29  ;;  %vm606_vm1 = vcmp.gt.f32.partialorder %v2927_v6, -5e+29  ;;  %vm612_vm7 = vcmp.gt.f32.partialorder %v2971_v53, -5e+29  ;;  %v3089_v39 = vld [vmem:[%s4896_s0 + $0xc0] sm:$0xff] }
  0x81   :  { %vm613_vm8 = vcmp.gt.f32.partialorder %v2977_v5, -5e+29  ;;  %v3095_v13 = vld [vmem:[%s4896_s0 + $0xc8] sm:$0xff]  ;;  %v3117_v14 = vld [vmem:[%s4896_s0 + $0xe0] sm:$0xff]  ;;  %v3132_v32 = vld [vmem:[%s4896_s0 + $0xf0] sm:$0xff]  ;;  %5400 = vst [vmem:[#allocation129_spill] sm:$0xff] %v3180_v56 }
  0x82   :  { %v3150_v45 = vld [vmem:[%s4896_s0 + $0x108] sm:$0xff]  ;;  %v3156_v62 = vld [vmem:[%s4896_s0 + $0x110] sm:$0xff]  ;;  %v3162_v7 = vld [vmem:[%s4896_s0 + $0x118] sm:$0xff]  ;;  %5401 = vst [vmem:[#allocation130_spill] sm:$0xff] %v3186_v3  ;;  %v5423_v21 = vmax.f32 %v2308_v27, 0.0  ;;  %v5429_v53 = vmax.f32 %v2320_v34, 0.0 }
  0x83   :  { %v3168_v40 = vld [vmem:[%s4896_s0 + $0x120] sm:$0xff]  ;;  %v3174_v29 = vld [vmem:[%s4896_s0 + $0x128] sm:$0xff]  ;;  %5402 = vst [vmem:[#allocation131_spill] sm:$0xff] %v3192_v59  ;;  %5403 = vst [vmem:[#allocation132_spill] sm:$0xff] %v3198_v52  ;;  %v3367_v58 = vsel %vm616_vm11, %v5431_v22, 0.0  ;;  %v5444_v22 = vmax.f32 %v2344_v44, 0.0 }
  0x84   :  { %5399 = vst [vmem:[#allocation128_spill] sm:$0xff] %v3174_v29  ;;  %v3204_v38 = vld [vmem:[%s4896_s0 + $0x150] sm:$0xff]  ;;  %v3210_v3 = vld [vmem:[%s4896_s0 + $0x158] sm:$0xff]  ;;  %v3216_v59 = vld [vmem:[%s4896_s0 + $0x160] sm:$0xff]  ;;  %v3319_v37 = vsel %vm612_vm7, %v5423_v21, 0.0  ;;  %v3361_v46 = vsel %vm615_vm10, %v5429_v53, 0.0 }
  0x85   :  { %5404 = vst [vmem:[#allocation133_spill] sm:$0xff] %v3204_v38  ;;  %5405 = vst [vmem:[#allocation134_spill] sm:$0xff] %v3210_v3  ;;  %vm648_vm14 = vcmp.gt.f32.partialorder %v3210_v3, -5e+29  ;;  %v3222_v52 = vld [vmem:[%s4896_s0 + $0x168] sm:$0xff]  ;;  %v5407_v38 = vmax.f32 %v2280_v15, 0.0 }
  0x86   :  { %5406 = vst [vmem:[#allocation135_spill] sm:$0xff] %v3216_v59  ;;  %vm650_vm13 = vcmp.gt.f32.partialorder %v3222_v52, -5e+29  ;;  %v5409_v3 = vmax.f32 %v2284_v54, 0.0  ;;  %v3240_v59 = vld [vmem:[%s4896_s0 + $0x170] sm:$0xff]  ;;  %v3246_v15 = vld [vmem:[%s4896_s0 + $0x178] sm:$0xff] }
  0x87   :  { %v3229_v56 = vsel %vm605_vm0, %v5407_v38, 0.0  ;;  %vm652_vm0 = vcmp.gt.f32.partialorder %v3246_v15, -5e+29  ;;  %v3252_v54 = vld [vmem:[%s4896_s0 + $0x180] sm:$0xff]  ;;  %v5413_v38 = vmax.f32 %v2288_v55, 0.0  ;;  %v3288_v23 = vld [vmem:[%s4896_s0 + $0x190] sm:$0xff] }
  0x88   :  { %5408 = vst [vmem:[#allocation136_spill] sm:$0xff] %v3229_v56  ;;  %v3235_v29 = vsel %vm606_vm1, %v5409_v3, 0.0  ;;  %5411 = vst [vmem:[#allocation138_spill] sm:$0xff] %v3252_v54  ;;  %vm653_vm1 = vcmp.gt.f32.partialorder %v3252_v54, -5e+29  ;;  %v3258_v3 = vld [vmem:[%s4896_s0 + $0x188] sm:$0xff] }
  0x89   :  { %5410 = vst [vmem:[#allocation137_spill] sm:$0xff] %v3235_v29  ;;  %5412 = vst [vmem:[#allocation139_spill] sm:$0xff] %v3258_v3  ;;  %vm654_vm15 = vcmp.gt.f32.partialorder %v3258_v3, -5e+29  ;;  %v3265_v6 = vsel %vm607_vm2, %v5413_v38, 0.0  ;;  %v3271_v29 = vsel %vm608_vm3, %v5415_v63, 0.0 }
  0x8a   :  { %5414 = vst [vmem:[#allocation140_spill] sm:$0xff] %v3265_v6  ;;  %5416 = vst [vmem:[#allocation141_spill] sm:$0xff] %v3271_v29  ;;  %v5417_v56 = vmax.f32 %v2296_v12, 0.0  ;;  %v5419_v3 = vmax.f32 %v2300_v25, 0.0  ;;  %vm655_vm2 = vcmp.gt.f32.partialorder %v3288_v23, -5e+29 }
  0x8b   :  { %v3294_v12 = vld [vmem:[%s4896_s0 + $0x198] sm:$0xff]  ;;  %v3300_v25 = vld [vmem:[%s4896_s0 + $0x1a0] sm:$0xff]  ;;  %5422 = vst [vmem:[#allocation144_spill] sm:$0xff] %v3313_v17  ;;  %5424 = vst [vmem:[#allocation145_spill] sm:$0xff] %v3319_v37  ;;  %v5427_v63 = vmax.f32 %v2316_v33, 0.0  ;;  %v5433_v21 = vmax.f32 %v2328_v36, 0.0 }
  0x8c   :  { %v3277_v54 = vsel %vm609_vm4, %v5417_v56, 0.0  ;;  %v3283_v55 = vsel %vm610_vm5, %v5419_v3, 0.0  ;;  %vm656_vm3 = vcmp.gt.f32.partialorder %v3294_v12, -5e+29  ;;  %vm657_vm4 = vcmp.gt.f32.partialorder %v3300_v25, -5e+29 }
  0x8d   :  { %5418 = vst [vmem:[#allocation142_spill] sm:$0xff] %v3277_v54  ;;  %5420 = vst [vmem:[#allocation143_spill] sm:$0xff] %v3283_v55  ;;  %v3306_v56 = vld [vmem:[%s4896_s0 + $0x1a8] sm:$0xff]  ;;  %v5425_v3 = vmax.f32 %v2312_v28, 0.0  ;;  %v3331_v26 = vsel %vm614_vm9, %v5427_v63, 0.0  ;;  %v3336_v27 = vld [vmem:[%s4896_s0 + $0x1b0] sm:$0xff] }
  0x8e   :  { %vm658_vm5 = vcmp.gt.f32.partialorder %v3306_v56, -5e+29  ;;  %5428 = vst [vmem:[#allocation147_spill] sm:$0xff] %v3331_v26  ;;  %vm659_vm6 = vcmp.gt.f32.partialorder %v3336_v27, -5e+29  ;;  %v3342_v28 = vld [vmem:[%s4896_s0 + $0x1b8] sm:$0xff] }
  0x8f   :  { %v3325_v38 = vsel %vm613_vm8, %v5425_v3, 0.0  ;;  %vm660_vm7 = vcmp.gt.f32.partialorder %v3342_v28, -5e+29  ;;  %v3348_v33 = vld [vmem:[%s4896_s0 + $0x1c0] sm:$0xff]  ;;  %v3354_v5 = vld [vmem:[%s4896_s0 + $0x1c8] sm:$0xff]  ;;  %5430 = vst [vmem:[#allocation148_spill] sm:$0xff] %v3361_v46 }
  0x90   :  { %5426 = vst [vmem:[#allocation146_spill] sm:$0xff] %v3325_v38  ;;  %vm661_vm8 = vcmp.gt.f32.partialorder %v3348_v33, -5e+29  ;;  %5432 = vst [vmem:[#allocation149_spill] sm:$0xff] %v3367_v58  ;;  %v3373_v3 = vsel %vm617_vm12, %v5433_v21, 0.0  ;;  %v5435_v63 = vmax.f32 %v2332_v41, 0.0 }
  0x91   :  { %5434 = vst [vmem:[#allocation150_spill] sm:$0xff] %v3373_v3  ;;  %vm5436_vm9 = vcmp.gt.f32.partialorder %v3011_v60, -5e+29  ;;  %v3384_v35 = vld [vmem:[%s4896_s0 + $0x1d0] sm:$0xff]  ;;  %v3390_v36 = vld [vmem:[%s4896_s0 + $0x1d8] sm:$0xff]  ;;  %v3396_v41 = vld [vmem:[%s4896_s0 + $0x1e0] sm:$0xff] }
  0x92   :  { %v3379_v34 = vsel %vm5436_vm9, %v5435_v63, 0.0  ;;  %v3402_v8 = vld [vmem:[%s4896_s0 + $0x1e8] sm:$0xff]  ;;  %vm5439_vm10 = vcmp.gt.f32.partialorder %v3021_v47, -5e+29  ;;  %vm5442_vm11 = vcmp.gt.f32.partialorder %v3027_v16, -5e+29 }
  0x93   :  { %5437 = vst [vmem:[#allocation151_spill] sm:$0xff] %v3379_v34  ;;  %v3409_v60 = vsel %vm5439_vm10, %v5438_v18, 0.0  ;;  %v3415_v53 = vsel %vm5442_vm11, %v5441_v20, 0.0  ;;  %vm5445_vm12 = vcmp.gt.f32.partialorder %v3033_v61, -5e+29  ;;  %v5446_v63 = vmax.f32 %v2348_v49, 0.0 }
  0x94   :  { %5440 = vst [vmem:[#allocation152_spill] sm:$0xff] %v3409_v60  ;;  %5443 = vst [vmem:[#allocation153_spill] sm:$0xff] %v3415_v53  ;;  %v3421_v21 = vsel %vm5445_vm12, %v5444_v22, 0.0  ;;  %vm5447_vm9 = vcmp.gt.f32.partialorder %v3039_v31, -5e+29  ;;  %v3432_v43 = vld [vmem:[%s4896_s0 + $0x1f0] sm:$0xff] }
  0x95   :  { %v3427_v42 = vsel %vm5447_vm9, %v5446_v63, 0.0  ;;  %v3438_v44 = vld [vmem:[%s4896_s0 + $0x1f8] sm:$0xff]  ;;  %v3444_v49 = vld [vmem:[%s4896_s0 + $0x200] sm:$0xff]  ;;  %v3450_v16 = vld [vmem:[%s4896_s0 + $0x208] sm:$0xff]  ;;  %v5448_v47 = vmax.f32 %v2352_v50, 0.0  ;;  %v5451_v61 = vmax.f32 %v2356_v51, 0.0 }
  0x96   :  { %vm5449_vm10 = vcmp.gt.f32.partialorder %v3049_v4, -5e+29  ;;  %vm5452_vm11 = vcmp.gt.f32.partialorder %v3055_v10, -5e+29  ;;  %v5454_v20 = vld [vmem:[#allocation94_spill] sm:$0xff]  ;;  %v5458_v53 = vld [vmem:[#allocation95_spill] sm:$0xff] }
  0x97   :  { %v3457_v31 = vsel %vm5449_vm10, %v5448_v47, 0.0  ;;  %v3463_v18 = vsel %vm5452_vm11, %v5451_v61, 0.0  ;;  %v5455_v22 = vmax.f32 %v5454_v20, 0.0  ;;  %vm5456_vm12 = vcmp.gt.f32.partialorder %v3061_v24, -5e+29  ;;  %v3480_v51 = vld [vmem:[%s4896_s0 + $0x210] sm:$0xff] }
  0x98   :  { %5450 = vst [vmem:[#allocation154_spill] sm:$0xff] %v3457_v31  ;;  %5453 = vst [vmem:[#allocation155_spill] sm:$0xff] %v3463_v18  ;;  %v5459_v60 = vmax.f32 %v5458_v53, 0.0  ;;  %vm5460_vm9 = vcmp.gt.f32.partialorder %v3067_v48, -5e+29  ;;  %v3486_v10 = vld [vmem:[%s4896_s0 + $0x218] sm:$0xff] }
  0x99   :  { %v3469_v63 = vsel %vm5456_vm12, %v5455_v22, 0.0  ;;  %v3492_v24 = vld [vmem:[%s4896_s0 + $0x220] sm:$0xff]  ;;  %v3498_v48 = vld [vmem:[%s4896_s0 + $0x228] sm:$0xff]  ;;  %v5462_v4 = vmax.f32 %v2368_v57, 0.0  ;;  %vm5463_vm10 = vcmp.gt.f32.partialorder %v3077_v30, -5e+29 }
  0x9a   :  { %5457 = vst [vmem:[#allocation94_spill] sm:$0xff] %v3469_v63  ;;  %v3475_v50 = vsel %vm5460_vm9, %v5459_v60, 0.0  ;;  %v5465_v53 = vld [vmem:[#allocation96_spill] sm:$0xff]  ;;  %vm5467_vm11 = vcmp.gt.f32.partialorder %v3083_v9, -5e+29  ;;  %v5469_v20 = vld [vmem:[#allocation97_spill] sm:$0xff] }
  0x9b   :  { %5461 = vst [vmem:[#allocation95_spill] sm:$0xff] %v3475_v50  ;;  %v3505_v60 = vsel %vm5463_vm10, %v5462_v4, 0.0  ;;  %v5466_v47 = vmax.f32 %v5465_v53, 0.0  ;;  %v5470_v22 = vmax.f32 %v5469_v20, 0.0  ;;  %vm5471_vm12 = vcmp.gt.f32.partialorder %v3089_v39, -5e+29 }
  0x9c   :  { %5464 = vst [vmem:[#allocation156_spill] sm:$0xff] %v3505_v60  ;;  %v5473_v3 = vld [vmem:[#allocation98_spill] sm:$0xff]  ;;  %vm5475_vm9 = vcmp.gt.f32.partialorder %v3095_v13, -5e+29  ;;  %v3528_v30 = vld [vmem:[%s4896_s0 + $0x230] sm:$0xff]  ;;  %v3534_v9 = vld [vmem:[%s4896_s0 + $0x238] sm:$0xff] }
  0x9d   :  { %v3511_v61 = vsel %vm5467_vm11, %v5466_v47, 0.0  ;;  %v3517_v34 = vsel %vm5471_vm12, %v5470_v22, 0.0  ;;  %v5474_v58 = vmax.f32 %v5473_v3, 0.0  ;;  %v3540_v13 = vld [vmem:[%s4896_s0 + $0x240] sm:$0xff]  ;;  %v3546_v39 = vld [vmem:[%s4896_s0 + $0x248] sm:$0xff]  ;;  %v5481_v53 = vld [vmem:[#allocation100_spill] sm:$0xff] }
  0x9e   :  { %5468 = vst [vmem:[#allocation96_spill] sm:$0xff] %v3511_v61  ;;  %5472 = vst [vmem:[#allocation97_spill] sm:$0xff] %v3517_v34  ;;  %vm5479_vm10 = vcmp.gt.f32.partialorder %v3105_v1, -5e+29  ;;  %v5482_v47 = vmax.f32 %v5481_v53, 0.0  ;;  %v5485_v22 = vld [vmem:[#allocation101_spill] sm:$0xff] }
  0x9f   :  { %v3523_v57 = vsel %vm5475_vm9, %v5474_v58, 0.0  ;;  %v5477_v58 = vld [vmem:[#allocation99_spill] sm:$0xff]  ;;  %vm5483_vm11 = vcmp.gt.f32.partialorder %v3111_v0, -5e+29  ;;  %v5486_v46 = vmax.f32 %v5485_v22, 0.0  ;;  %v5489_v26 = vld [vmem:[#allocation102_spill] sm:$0xff] }
  0xa0   :  { %5476 = vst [vmem:[#allocation98_spill] sm:$0xff] %v3523_v57  ;;  %v5478_v3 = vmax.f32 %v5477_v58, 0.0  ;;  %v3559_v20 = vsel %vm5483_vm11, %v5482_v47, 0.0  ;;  %vm5487_vm12 = vcmp.gt.f32.partialorder %v3117_v14, -5e+29  ;;  %v5490_v34 = vmax.f32 %v5489_v26, 0.0 }
  0xa1   :  { %5484 = vst [vmem:[#allocation100_spill] sm:$0xff] %v3559_v20  ;;  %v3565_v57 = vsel %vm5487_vm12, %v5486_v46, 0.0  ;;  %vm5491_vm9 = vcmp.gt.f32.partialorder %v3123_v2, -5e+29  ;;  %v3576_v1 = vld [vmem:[%s4896_s0 + $0x250] sm:$0xff]  ;;  %v3582_v0 = vld [vmem:[%s4896_s0 + $0x258] sm:$0xff] }
  0xa2   :  { %v3553_v4 = vsel %vm5479_vm10, %v5478_v3, 0.0  ;;  %5488 = vst [vmem:[#allocation101_spill] sm:$0xff] %v3565_v57  ;;  %v3571_v58 = vsel %vm5491_vm9, %v5490_v34, 0.0  ;;  %v3588_v2 = vld [vmem:[%s4896_s0 + $0x260] sm:$0xff]  ;;  %v3594_v14 = vld [vmem:[%s4896_s0 + $0x268] sm:$0xff]  ;;  %v5493_v26 = vld [vmem:[#allocation103_spill] sm:$0xff] }
  0xa3   :  { %5480 = vst [vmem:[#allocation99_spill] sm:$0xff] %v3553_v4  ;;  %5492 = vst [vmem:[#allocation102_spill] sm:$0xff] %v3571_v58  ;;  %v5494_v46 = vmax.f32 %v5493_v26, 0.0  ;;  %vm5495_vm10 = vcmp.gt.f32.partialorder %v3132_v32, -5e+29  ;;  %v5497_v3 = vld [vmem:[#allocation104_spill] sm:$0xff] }
  0xa4   :  { %v5498_v53 = vmax.f32 %v5497_v3, 0.0  ;;  %vm5499_vm11 = vcmp.gt.f32.partialorder %v3138_v11, -5e+29  ;;  %v5501_v22 = vld [vmem:[#allocation105_spill] sm:$0xff]  ;;  %vm5503_vm12 = vcmp.gt.f32.partialorder %v3144_v19, -5e+29 }
  0xa5   :  { %v3601_v34 = vsel %vm5495_vm10, %v5494_v46, 0.0  ;;  %v5502_v58 = vmax.f32 %v5501_v22, 0.0  ;;  %v5504_v20 = vld [vmem:[#allocation5_spill] sm:$0xff]  ;;  %vm5506_vm9 = vcmp.gt.f32.partialorder %v3150_v45, -5e+29  ;;  %v3624_v32 = vld [vmem:[%s4896_s0 + $0x270] sm:$0xff] }
  0xa6   :  { %5496 = vst [vmem:[#allocation103_spill] sm:$0xff] %v3601_v34  ;;  %v3607_v47 = vsel %vm5499_vm11, %v5498_v53, 0.0  ;;  %v5505_v4 = vmax.f32 %v5504_v20, 0.0  ;;  %v3630_v11 = vld [vmem:[%s4896_s0 + $0x278] sm:$0xff]  ;;  %v3636_v19 = vld [vmem:[%s4896_s0 + $0x280] sm:$0xff]  ;;  %v3642_v45 = vld [vmem:[%s4896_s0 + $0x288] sm:$0xff] }
  0xa7   :  { %5500 = vst [vmem:[#allocation104_spill] sm:$0xff] %v3607_v47  ;;  %v3613_v57 = vsel %vm5503_vm12, %v5502_v58, 0.0  ;;  %vm5510_vm10 = vcmp.gt.f32.partialorder %v3156_v62, -5e+29  ;;  %v5512_v46 = vld [vmem:[#allocation7_spill] sm:$0xff]  ;;  %v5516_v22 = vld [vmem:[#allocation8_spill] sm:$0xff] }
  0xa8   :  { %v3619_v26 = vsel %vm5506_vm9, %v5505_v4, 0.0  ;;  %v5508_v4 = vld [vmem:[#allocation6_spill] sm:$0xff]  ;;  %v5513_v3 = vmax.f32 %v5512_v46, 0.0  ;;  %vm5514_vm11 = vcmp.gt.f32.partialorder %v3162_v7, -5e+29  ;;  %v5517_v47 = vmax.f32 %v5516_v22, 0.0 }
  0xa9   :  { %5507 = vst [vmem:[#allocation105_spill] sm:$0xff] %v3619_v26  ;;  %v5509_v20 = vmax.f32 %v5508_v4, 0.0  ;;  %vm5518_vm12 = vcmp.gt.f32.partialorder %v3168_v40, -5e+29  ;;  %v5520_v38 = vld [vmem:[#allocation9_spill] sm:$0xff]  ;;  %v5522_v37 = vld [vmem:[#allocation128_spill] sm:$0xff] }
  0xaa   :  { %v3655_v53 = vsel %vm5514_vm11, %v5513_v3, 0.0  ;;  %v3661_v34 = vsel %vm5518_vm12, %v5517_v47, 0.0  ;;  %v5521_v61 = vmax.f32 %v5520_v38, 0.0  ;;  %vm5523_vm9 = vcmp.gt.f32.partialorder %v5522_v37, -5e+29  ;;  %v3672_v62 = vld [vmem:[%s4896_s0 + $0x290] sm:$0xff] }
  0xab   :  { %v3649_v58 = vsel %vm5510_vm10, %v5509_v20, 0.0  ;;  %5515 = vst [vmem:[#allocation6_spill] sm:$0xff] %v3655_v53  ;;  %5519 = vst [vmem:[#allocation7_spill] sm:$0xff] %v3661_v34  ;;  %v3678_v7 = vld [vmem:[%s4896_s0 + $0x298] sm:$0xff]  ;;  %v3684_v40 = vld [vmem:[%s4896_s0 + $0x2a0] sm:$0xff] }
  0xac   :  { %5511 = vst [vmem:[#allocation5_spill] sm:$0xff] %v3649_v58  ;;  %v3667_v4 = vsel %vm5523_vm9, %v5521_v61, 0.0  ;;  %v3690_v37 = vld [vmem:[%s4896_s0 + $0x2a8] sm:$0xff]  ;;  %v5527_v47 = vld [vmem:[#allocation129_spill] sm:$0xff]  ;;  %v5535_v17 = vld [vmem:[#allocation11_spill] sm:$0xff] }
  0xad   :  { %5524 = vst [vmem:[#allocation8_spill] sm:$0xff] %v3667_v4  ;;  %v5525_v38 = vld [vmem:[#allocation10_spill] sm:$0xff]  ;;  %vm5528_vm10 = vcmp.gt.f32.partialorder %v5527_v47, -5e+29  ;;  %v5536_v4 = vmax.f32 %v5535_v17, 0.0  ;;  %v5537_v50 = vld [vmem:[#allocation131_spill] sm:$0xff] }
  0xae   :  { %v5526_v61 = vmax.f32 %v5525_v38, 0.0  ;;  %v5530_v46 = vld [vmem:[#allocation106_spill] sm:$0xff]  ;;  %vm5538_vm12 = vcmp.gt.f32.partialorder %v5537_v50, -5e+29  ;;  %v5540_v34 = vld [vmem:[#allocation12_spill] sm:$0xff]  ;;  %v5545_v50 = vld [vmem:[#allocation13_spill] sm:$0xff] }
  0xaf   :  { %v5531_v3 = vmax.f32 %v5530_v46, 0.0  ;;  %v5532_v22 = vld [vmem:[#allocation130_spill] sm:$0xff]  ;;  %v3709_v55 = vsel %vm5538_vm12, %v5536_v4, 0.0  ;;  %v5541_v63 = vmax.f32 %v5540_v34, 0.0  ;;  %v5542_v54 = vld [vmem:[#allocation132_spill] sm:$0xff]  ;;  %v5546_v34 = vmax.f32 %v5545_v50, 0.0 }
  0xb0   :  { %v3697_v20 = vsel %vm5528_vm10, %v5526_v61, 0.0  ;;  %vm5533_vm11 = vcmp.gt.f32.partialorder %v5532_v22, -5e+29  ;;  %5539 = vst [vmem:[#allocation10_spill] sm:$0xff] %v3709_v55  ;;  %vm5543_vm9 = vcmp.gt.f32.partialorder %v5542_v54, -5e+29 }
  0xb1   :  { %5529 = vst [vmem:[#allocation9_spill] sm:$0xff] %v3697_v20  ;;  %v3703_v60 = vsel %vm5533_vm11, %v5531_v3, 0.0  ;;  %v3715_v38 = vsel %vm5543_vm9, %v5541_v63, 0.0  ;;  %v3720_v61 = vld [vmem:[%s4896_s0 + $0x2b0] sm:$0xff]  ;;  %v3726_v17 = vld [vmem:[%s4896_s0 + $0x2b8] sm:$0xff]  ;;  %v3732_v54 = vld [vmem:[%s4896_s0 + $0x2c0] sm:$0xff] }
  0xb2   :  { %5534 = vst [vmem:[#allocation128_spill] sm:$0xff] %v3703_v60  ;;  %5544 = vst [vmem:[#allocation129_spill] sm:$0xff] %v3715_v38  ;;  %vm692_vm11 = vcmp.gt.f32.partialorder %v3726_v17, -5e+29  ;;  %v3738_v63 = vld [vmem:[%s4896_s0 + $0x2c8] sm:$0xff]  ;;  %v5547_v4 = vld [vmem:[#allocation133_spill] sm:$0xff] }
  0xb3   :  { %vm694_vm9 = vcmp.gt.f32.partialorder %v3738_v63, -5e+29  ;;  %vm5548_vm10 = vcmp.gt.f32.partialorder %v5547_v4, -5e+29  ;;  %v5550_v46 = vld [vmem:[#allocation14_spill] sm:$0xff]  ;;  %v5554_v55 = vld [vmem:[#allocation15_spill] sm:$0xff] }
  0xb4   :  { %v3745_v47 = vsel %vm5548_vm10, %v5546_v34, 0.0  ;;  %v5551_v3 = vmax.f32 %v5550_v46, 0.0  ;;  %v5555_v60 = vmax.f32 %v5554_v55, 0.0  ;;  %v5556_v20 = vld [vmem:[#allocation135_spill] sm:$0xff]  ;;  %v5559_v18 = vld [vmem:[#allocation16_spill] sm:$0xff]  ;;  %v3780_v52 = vld [vmem:[%s4896_s0 + $0x2e0] sm:$0xff] }
  0xb5   :  { %5549 = vst [vmem:[#allocation106_spill] sm:$0xff] %v3745_v47  ;;  %vm5557_vm12 = vcmp.gt.f32.partialorder %v5556_v20, -5e+29  ;;  %v5560_v29 = vmax.f32 %v5559_v18, 0.0  ;;  %v3768_v34 = vld [vmem:[%s4896_s0 + $0x2d0] sm:$0xff]  ;;  %v3774_v55 = vld [vmem:[%s4896_s0 + $0x2d8] sm:$0xff] }
  0xb6   :  { %v3751_v38 = vsel %vm648_vm14, %v5551_v3, 0.0  ;;  %v3757_v53 = vsel %vm5557_vm12, %v5555_v60, 0.0  ;;  %vm696_vm10 = vcmp.gt.f32.partialorder %v3774_v55, -5e+29  ;;  %v5562_v18 = vld [vmem:[#allocation17_spill] sm:$0xff]  ;;  %v5566_v4 = vld [vmem:[#allocation18_spill] sm:$0xff] }
  0xb7   :  { %5553 = vst [vmem:[#allocation130_spill] sm:$0xff] %v3751_v38  ;;  %5558 = vst [vmem:[#allocation11_spill] sm:$0xff] %v3757_v53  ;;  %v3763_v50 = vsel %vm650_vm13, %v5560_v29, 0.0  ;;  %vm697_vm13 = vcmp.gt.f32.partialorder %v3780_v52, -5e+29  ;;  %v3786_v29 = vld [vmem:[%s4896_s0 + $0x2e8] sm:$0xff] }
  0xb8   :  { %5561 = vst [vmem:[#allocation131_spill] sm:$0xff] %v3763_v50  ;;  %vm698_vm12 = vcmp.gt.f32.partialorder %v3786_v29, -5e+29  ;;  %v5563_v60 = vmax.f32 %v5562_v18, 0.0  ;;  %vm5564_vm14 = vcmp.gt.f32.partialorder %v3240_v59, -5e+29 }
  0xb9   :  { %v5567_v46 = vmax.f32 %v5566_v4, 0.0  ;;  %v5569_v22 = vld [vmem:[#allocation19_spill] sm:$0xff]  ;;  %v5572_v47 = vld [vmem:[#allocation20_spill] sm:$0xff]  ;;  %v3822_v15 = vld [vmem:[%s4896_s0 + $0x300] sm:$0xff] }
  0xba   :  { %v3793_v20 = vsel %vm5564_vm14, %v5563_v60, 0.0  ;;  %v5570_v50 = vmax.f32 %v5569_v22, 0.0  ;;  %v5573_v58 = vmax.f32 %v5572_v47, 0.0  ;;  %v3816_v59 = vld [vmem:[%s4896_s0 + $0x2f0] sm:$0xff]  ;;  %v3828_v31 = vld [vmem:[%s4896_s0 + $0x308] sm:$0xff]  ;;  %v5576_v53 = vld [vmem:[#allocation21_spill] sm:$0xff] }
  0xbb   :  { %5565 = vst [vmem:[#allocation12_spill] sm:$0xff] %v3793_v20  ;;  %v3799_v3 = vsel %vm652_vm0, %v5567_v46, 0.0  ;;  %vm699_vm0 = vcmp.gt.f32.partialorder %v3816_v59, -5e+29  ;;  %v5577_v47 = vmax.f32 %v5576_v53, 0.0  ;;  %v5579_v60 = vld [vmem:[#allocation22_spill] sm:$0xff] }
  0xbc   :  { %5568 = vst [vmem:[#allocation132_spill] sm:$0xff] %v3799_v3  ;;  %v3805_v38 = vsel %vm653_vm1, %v5570_v50, 0.0  ;;  %v3811_v18 = vsel %vm654_vm15, %v5573_v58, 0.0  ;;  %vm701_vm1 = vcmp.gt.f32.partialorder %v3822_v15, -5e+29  ;;  %v3834_v58 = vld [vmem:[%s4896_s0 + $0x310] sm:$0xff] }
  0xbd   :  { %5575 = vst [vmem:[#allocation13_spill] sm:$0xff] %v3811_v18  ;;  %vm702_vm15 = vcmp.gt.f32.partialorder %v3828_v31, -5e+29  ;;  %vm703_vm14 = vcmp.gt.f32.partialorder %v3834_v58, -5e+29  ;;  %v3841_v50 = vsel %vm655_vm2, %v5577_v47, 0.0 }
  0xbe   :  { %5578 = vst [vmem:[#allocation133_spill] sm:$0xff] %v3841_v50  ;;  %v5580_v4 = vmax.f32 %v5579_v60, 0.0  ;;  %v5582_v22 = vld [vmem:[#allocation23_spill] sm:$0xff]  ;;  %v5585_v6 = vld [vmem:[#allocation25_spill] sm:$0xff]  ;;  %v3864_v23 = vld [vmem:[%s4896_s0 + $0x318] sm:$0xff] }
  0xbf   :  { %v5583_v3 = vmax.f32 %v5582_v22, 0.0  ;;  %v5586_v18 = vmax.f32 %v5585_v6, 0.0  ;;  %vm704_vm2 = vcmp.gt.f32.partialorder %v3864_v23, -5e+29  ;;  %v3870_v12 = vld [vmem:[%s4896_s0 + $0x320] sm:$0xff]  ;;  %v3876_v6 = vld [vmem:[%s4896_s0 + $0x328] sm:$0xff] }
  0xc0   :  { %v3847_v46 = vsel %vm656_vm3, %v5580_v4, 0.0  ;;  %vm705_vm3 = vcmp.gt.f32.partialorder %v3870_v12, -5e+29  ;;  %v3882_v25 = vld [vmem:[%s4896_s0 + $0x330] sm:$0xff]  ;;  %v5588_v56 = vld [vmem:[#allocation26_spill] sm:$0xff]  ;;  %v5594_v22 = vld [vmem:[#allocation28_spill] sm:$0xff] }
  0xc1   :  { %5581 = vst [vmem:[#allocation14_spill] sm:$0xff] %v3847_v46  ;;  %v3853_v20 = vsel %vm657_vm4, %v5583_v3, 0.0  ;;  %v3859_v53 = vsel %vm658_vm5, %v5586_v18, 0.0  ;;  %vm706_vm4 = vcmp.gt.f32.partialorder %v3876_v6, -5e+29  ;;  %v5589_v3 = vmax.f32 %v5588_v56, 0.0 }
  0xc2   :  { %5584 = vst [vmem:[#allocation134_spill] sm:$0xff] %v3853_v20  ;;  %5587 = vst [vmem:[#allocation15_spill] sm:$0xff] %v3859_v53  ;;  %v5591_v47 = vld [vmem:[#allocation27_spill] sm:$0xff]  ;;  %v5595_v53 = vmax.f32 %v5594_v22, 0.0  ;;  %v5597_v46 = vld [vmem:[#allocation29_spill] sm:$0xff] }
  0xc3   :  { %v3889_v18 = vsel %vm659_vm6, %v5589_v3, 0.0  ;;  %v5592_v60 = vmax.f32 %v5591_v47, 0.0  ;;  %v5598_v50 = vmax.f32 %v5597_v46, 0.0  ;;  %vm5599_vm5 = vcmp.gt.f32.partialorder %v3354_v5, -5e+29  ;;  %v3912_v27 = vld [vmem:[%s4896_s0 + $0x338] sm:$0xff] }
  0xc4   :  { %5590 = vst [vmem:[#allocation135_spill] sm:$0xff] %v3889_v18  ;;  %v3901_v20 = vsel %vm661_vm8, %v5595_v53, 0.0  ;;  %v3918_v28 = vld [vmem:[%s4896_s0 + $0x340] sm:$0xff]  ;;  %v3924_v33 = vld [vmem:[%s4896_s0 + $0x348] sm:$0xff]  ;;  %v3930_v5 = vld [vmem:[%s4896_s0 + $0x350] sm:$0xff] }
  0xc5   :  { %v3895_v4 = vsel %vm660_vm7, %v5592_v60, 0.0  ;;  %5596 = vst [vmem:[#allocation17_spill] sm:$0xff] %v3901_v20  ;;  %v3907_v56 = vsel %vm5599_vm5, %v5598_v50, 0.0  ;;  %v5601_v50 = vld [vmem:[#allocation30_spill] sm:$0xff]  ;;  %vm5603_vm6 = vcmp.gt.f32.partialorder %v3384_v35, -5e+29 }
  0xc6   :  { %5593 = vst [vmem:[#allocation16_spill] sm:$0xff] %v3895_v4  ;;  %5600 = vst [vmem:[#allocation18_spill] sm:$0xff] %v3907_v56  ;;  %v5602_v46 = vmax.f32 %v5601_v50, 0.0  ;;  %v5605_v3 = vld [vmem:[#allocation31_spill] sm:$0xff]  ;;  %vm5607_vm7 = vcmp.gt.f32.partialorder %v3390_v36, -5e+29 }
  0xc7   :  { %v5606_v47 = vmax.f32 %v5605_v3, 0.0  ;;  %v5609_v22 = vld [vmem:[#allocation32_spill] sm:$0xff]  ;;  %vm5611_vm8 = vcmp.gt.f32.partialorder %v3396_v41, -5e+29  ;;  %v5613_v4 = vld [vmem:[#allocation33_spill] sm:$0xff]  ;;  %v3972_v41 = vld [vmem:[%s4896_s0 + $0x368] sm:$0xff] }
  0xc8   :  { %v3937_v53 = vsel %vm5603_vm6, %v5602_v46, 0.0  ;;  %v5610_v56 = vmax.f32 %v5609_v22, 0.0  ;;  %v5614_v18 = vmax.f32 %v5613_v4, 0.0  ;;  %vm5615_vm5 = vcmp.gt.f32.partialorder %v3402_v8, -5e+29  ;;  %v3960_v35 = vld [vmem:[%s4896_s0 + $0x358] sm:$0xff] }
  0xc9   :  { %5604 = vst [vmem:[#allocation19_spill] sm:$0xff] %v3937_v53  ;;  %v3943_v60 = vsel %vm5607_vm7, %v5606_v47, 0.0  ;;  %v3966_v36 = vld [vmem:[%s4896_s0 + $0x360] sm:$0xff]  ;;  %v3978_v8 = vld [vmem:[%s4896_s0 + $0x370] sm:$0xff]  ;;  %vm5619_vm6 = vcmp.gt.f32.partialorder %v3432_v43, -5e+29 }
  0xca   :  { %5608 = vst [vmem:[#allocation138_spill] sm:$0xff] %v3943_v60  ;;  %v3949_v20 = vsel %vm5611_vm8, %v5610_v56, 0.0  ;;  %v3955_v50 = vsel %vm5615_vm5, %v5614_v18, 0.0  ;;  %v5617_v18 = vld [vmem:[#allocation34_spill] sm:$0xff]  ;;  %v5621_v46 = vld [vmem:[#allocation24_spill] sm:$0xff]  ;;  %v5625_v22 = vld [vmem:[#allocation35_spill] sm:$0xff] }
  0xcb   :  { %5612 = vst [vmem:[#allocation20_spill] sm:$0xff] %v3949_v20  ;;  %5616 = vst [vmem:[#allocation139_spill] sm:$0xff] %v3955_v50  ;;  %v5618_v4 = vmax.f32 %v5617_v18, 0.0  ;;  %v5622_v3 = vmax.f32 %v5621_v46, 0.0  ;;  %vm5623_vm7 = vcmp.gt.f32.partialorder %v3438_v44, -5e+29 }
  0xcc   :  { %v5626_v50 = vmax.f32 %v5625_v22, 0.0  ;;  %vm5627_vm8 = vcmp.gt.f32.partialorder %v3444_v49, -5e+29  ;;  %v5628_v60 = vld [vmem:[#allocation36_spill] sm:$0xff]  ;;  %vm5630_vm5 = vcmp.gt.f32.partialorder %v3450_v16, -5e+29 }
  0xcd   :  { %v3985_v56 = vsel %vm5619_vm6, %v5618_v4, 0.0  ;;  %v3991_v47 = vsel %vm5623_vm7, %v5622_v3, 0.0  ;;  %v5629_v53 = vmax.f32 %v5628_v60, 0.0  ;;  %v4008_v43 = vld [vmem:[%s4896_s0 + $0x380] sm:$0xff]  ;;  %v4014_v44 = vld [vmem:[%s4896_s0 + $0x388] sm:$0xff]  ;;  %v4020_v49 = vld [vmem:[%s4896_s0 + $0x390] sm:$0xff] }
  0xce   :  { %5620 = vst [vmem:[#allocation21_spill] sm:$0xff] %v3985_v56  ;;  %5624 = vst [vmem:[#allocation22_spill] sm:$0xff] %v3991_v47  ;;  %v3997_v20 = vsel %vm5627_vm8, %v5626_v50, 0.0  ;;  %v4026_v16 = vld [vmem:[%s4896_s0 + $0x398] sm:$0xff]  ;;  %vm5634_vm6 = vcmp.gt.f32.partialorder %v3480_v51, -5e+29 }
  0xcf   :  { %v4003_v18 = vsel %vm5630_vm5, %v5629_v53, 0.0  ;;  %v5632_v53 = vld [vmem:[#allocation37_spill] sm:$0xff]  ;;  %v5636_v4 = vld [vmem:[#allocation39_spill] sm:$0xff]  ;;  %vm5638_vm7 = vcmp.gt.f32.partialorder %v3486_v10, -5e+29  ;;  %v5640_v22 = vld [vmem:[#allocation40_spill] sm:$0xff] }
  0xd0   :  { %5631 = vst [vmem:[#allocation23_spill] sm:$0xff] %v4003_v18  ;;  %v5633_v60 = vmax.f32 %v5632_v53, 0.0  ;;  %v5637_v46 = vmax.f32 %v5636_v4, 0.0  ;;  %v5641_v47 = vmax.f32 %v5640_v22, 0.0  ;;  %vm5642_vm8 = vcmp.gt.f32.partialorder %v3492_v24, -5e+29 }
  0xd1   :  { %v5644_v18 = vld [vmem:[#allocation41_spill] sm:$0xff]  ;;  %vm5646_vm5 = vcmp.gt.f32.partialorder %v3498_v48, -5e+29  ;;  %v4062_v10 = vld [vmem:[%s4896_s0 + $0x3a8] sm:$0xff]  ;;  %v4068_v24 = vld [vmem:[%s4896_s0 + $0x3b0] sm:$0xff] }
  0xd2   :  { %v4033_v50 = vsel %vm5634_vm6, %v5633_v60, 0.0  ;;  %v4039_v3 = vsel %vm5638_vm7, %v5637_v46, 0.0  ;;  %v4045_v56 = vsel %vm5642_vm8, %v5641_v47, 0.0  ;;  %v5645_v26 = vmax.f32 %v5644_v18, 0.0  ;;  %v4056_v51 = vld [vmem:[%s4896_s0 + $0x3a0] sm:$0xff]  ;;  %v4074_v48 = vld [vmem:[%s4896_s0 + $0x3b8] sm:$0xff] }
  0xd3   :  { %5635 = vst [vmem:[#allocation25_spill] sm:$0xff] %v4033_v50  ;;  %5639 = vst [vmem:[#allocation26_spill] sm:$0xff] %v4039_v3  ;;  %vm5650_vm6 = vcmp.gt.f32.partialorder %v3528_v30, -5e+29  ;;  %v5652_v60 = vld [vmem:[#allocation43_spill] sm:$0xff]  ;;  %v5656_v22 = vld [vmem:[#allocation44_spill] sm:$0xff] }
  0xd4   :  { %5643 = vst [vmem:[#allocation27_spill] sm:$0xff] %v4045_v56  ;;  %v4051_v53 = vsel %vm5646_vm5, %v5645_v26, 0.0  ;;  %v5648_v26 = vld [vmem:[#allocation42_spill] sm:$0xff]  ;;  %v5653_v4 = vmax.f32 %v5652_v60, 0.0  ;;  %vm5654_vm7 = vcmp.gt.f32.partialorder %v3534_v9, -5e+29 }
  0xd5   :  { %5647 = vst [vmem:[#allocation28_spill] sm:$0xff] %v4051_v53  ;;  %v5649_v47 = vmax.f32 %v5648_v26, 0.0  ;;  %v5657_v53 = vmax.f32 %v5656_v22, 0.0  ;;  %vm5658_vm8 = vcmp.gt.f32.partialorder %v3540_v13, -5e+29  ;;  %v5660_v3 = vld [vmem:[#allocation45_spill] sm:$0xff] }
  0xd6   :  { %v4087_v46 = vsel %vm5654_vm7, %v5653_v4, 0.0  ;;  %v5661_v50 = vmax.f32 %v5660_v3, 0.0  ;;  %vm5662_vm5 = vcmp.gt.f32.partialorder %v3546_v39, -5e+29  ;;  %v4104_v30 = vld [vmem:[%s4896_s0 + $0x3c0] sm:$0xff]  ;;  %v4110_v9 = vld [vmem:[%s4896_s0 + $0x3c8] sm:$0xff] }
  0xd7   :  { %v4081_v18 = vsel %vm5650_vm6, %v5649_v47, 0.0  ;;  %5655 = vst [vmem:[#allocation30_spill] sm:$0xff] %v4087_v46  ;;  %v4093_v56 = vsel %vm5658_vm8, %v5657_v53, 0.0  ;;  %v4116_v13 = vld [vmem:[%s4896_s0 + $0x3d0] sm:$0xff]  ;;  %v4122_v39 = vld [vmem:[%s4896_s0 + $0x3d8] sm:$0xff]  ;;  %v5676_v46 = vld [vmem:[#allocation49_spill] sm:$0xff] }
  0xd8   :  { %5651 = vst [vmem:[#allocation29_spill] sm:$0xff] %v4081_v18  ;;  %5659 = vst [vmem:[#allocation31_spill] sm:$0xff] %v4093_v56  ;;  %v4099_v26 = vsel %vm5662_vm5, %v5661_v50, 0.0  ;;  %v5664_v50 = vld [vmem:[#allocation46_spill] sm:$0xff]  ;;  %vm5666_vm6 = vcmp.gt.f32.partialorder %v3576_v1, -5e+29 }
  0xd9   :  { %5663 = vst [vmem:[#allocation32_spill] sm:$0xff] %v4099_v26  ;;  %v5665_v3 = vmax.f32 %v5664_v50, 0.0  ;;  %v5668_v47 = vld [vmem:[#allocation47_spill] sm:$0xff]  ;;  %vm5670_vm7 = vcmp.gt.f32.partialorder %v3582_v0, -5e+29  ;;  %v5672_v22 = vld [vmem:[#allocation48_spill] sm:$0xff] }
  0xda   :  { %v5669_v60 = vmax.f32 %v5668_v47, 0.0  ;;  %v5673_v26 = vmax.f32 %v5672_v22, 0.0  ;;  %vm5674_vm8 = vcmp.gt.f32.partialorder %v3588_v2, -5e+29  ;;  %v5677_v18 = vmax.f32 %v5676_v46, 0.0  ;;  %v4152_v1 = vld [vmem:[%s4896_s0 + $0x3e0] sm:$0xff] }
  0xdb   :  { %v4129_v53 = vsel %vm5666_vm6, %v5665_v3, 0.0  ;;  %vm5678_vm5 = vcmp.gt.f32.partialorder %v3594_v14, -5e+29  ;;  %v4158_v0 = vld [vmem:[%s4896_s0 + $0x3e8] sm:$0xff]  ;;  %v4164_v2 = vld [vmem:[%s4896_s0 + $0x3f0] sm:$0xff]  ;;  %v4170_v14 = vld [vmem:[%s4896_s0 + $0x400] sm:$0xff] }
  0xdc   :  { %5667 = vst [vmem:[#allocation33_spill] sm:$0xff] %v4129_v53  ;;  %v4135_v4 = vsel %vm5670_vm7, %v5669_v60, 0.0  ;;  %v4141_v56 = vsel %vm5674_vm8, %v5673_v26, 0.0  ;;  %v4147_v50 = vsel %vm5678_vm5, %v5677_v18, 0.0  ;;  %v5680_v18 = vld [vmem:[#allocation50_spill] sm:$0xff]  ;;  %v5688_v22 = vld [vmem:[#allocation53_spill] sm:$0xff] }
  0xdd   :  { %5671 = vst [vmem:[#allocation34_spill] sm:$0xff] %v4135_v4  ;;  %5675 = vst [vmem:[#allocation24_spill] sm:$0xff] %v4141_v56  ;;  %v5681_v46 = vmax.f32 %v5680_v18, 0.0  ;;  %vm5682_vm6 = vcmp.gt.f32.partialorder %v3624_v32, -5e+29  ;;  %v5684_v3 = vld [vmem:[#allocation38_spill] sm:$0xff] }
  0xde   :  { %5679 = vst [vmem:[#allocation35_spill] sm:$0xff] %v4147_v50  ;;  %v5685_v47 = vmax.f32 %v5684_v3, 0.0  ;;  %vm5686_vm7 = vcmp.gt.f32.partialorder %v3630_v11, -5e+29  ;;  %v5689_v50 = vmax.f32 %v5688_v22, 0.0  ;;  %v5692_v4 = vld [vmem:[#allocation54_spill] sm:$0xff] }
  0xdf   :  { %v4177_v26 = vsel %vm5682_vm6, %v5681_v46, 0.0  ;;  %vm5690_vm8 = vcmp.gt.f32.partialorder %v3636_v19, -5e+29  ;;  %v5693_v53 = vmax.f32 %v5692_v4, 0.0  ;;  %vm5694_vm5 = vcmp.gt.f32.partialorder %v3642_v45, -5e+29 }
  0xe0   :  { %5683 = vst [vmem:[#allocation36_spill] sm:$0xff] %v4177_v26  ;;  %v4183_v60 = vsel %vm5686_vm7, %v5685_v47, 0.0  ;;  %v4189_v56 = vsel %vm5690_vm8, %v5689_v50, 0.0  ;;  %v4200_v32 = vld [vmem:[%s4896_s0 + $0x408] sm:$0xff]  ;;  %v4206_v11 = vld [vmem:[%s4896_s0 + $0x410] sm:$0xff]  ;;  %v4212_v19 = vld [vmem:[%s4896_s0 + $0x418] sm:$0xff] }
  0xe1   :  { %5687 = vst [vmem:[#allocation37_spill] sm:$0xff] %v4183_v60  ;;  %5691 = vst [vmem:[#allocation39_spill] sm:$0xff] %v4189_v56  ;;  %v4195_v18 = vsel %vm5694_vm5, %v5693_v53, 0.0  ;;  %v4218_v45 = vld [vmem:[%s4896_s0 + $0x420] sm:$0xff]  ;;  %v5696_v53 = vld [vmem:[#allocation55_spill] sm:$0xff] }
  0xe2   :  { %5695 = vst [vmem:[#allocation40_spill] sm:$0xff] %v4195_v18  ;;  %v5697_v4 = vmax.f32 %v5696_v53, 0.0  ;;  %vm5698_vm6 = vcmp.gt.f32.partialorder %v3672_v62, -5e+29  ;;  %v5699_v46 = vld [vmem:[#allocation56_spill] sm:$0xff]  ;;  %v5703_v22 = vld [vmem:[#allocation57_spill] sm:$0xff] }
  0xe3   :  { %v5700_v3 = vmax.f32 %v5699_v46, 0.0  ;;  %vm5701_vm7 = vcmp.gt.f32.partialorder %v3678_v7, -5e+29  ;;  %v5704_v60 = vmax.f32 %v5703_v22, 0.0  ;;  %vm5705_vm8 = vcmp.gt.f32.partialorder %v3684_v40, -5e+29 }
  0xe4   :  { %v4225_v50 = vsel %vm5698_vm6, %v5697_v4, 0.0  ;;  %v5707_v18 = vld [vmem:[#allocation58_spill] sm:$0xff]  ;;  %vm5709_vm5 = vcmp.gt.f32.partialorder %v3690_v37, -5e+29  ;;  %v1334_v7 = vld [vmem:[%s4896_s0 + $0x430] sm:$0xff]  ;;  %v1335_v40 = vld [vmem:[%s4896_s0 + $0x438] sm:$0xff] }
  0xe5   :  { %v4231_v47 = vsel %vm5701_vm7, %v5700_v3, 0.0  ;;  %v4237_v26 = vsel %vm5705_vm8, %v5704_v60, 0.0  ;;  %v5708_v56 = vmax.f32 %v5707_v18, 0.0  ;;  %v1333_v62 = vld [vmem:[%s4896_s0 + $0x428] sm:$0xff]  ;;  %vm740_vm8 = vcmp.gt.f32.partialorder %v1335_v40, -5e+29 }
  0xe6   :  { %5702 = vst [vmem:[#allocation41_spill] sm:$0xff] %v4231_v47  ;;  %5706 = vst [vmem:[#allocation42_spill] sm:$0xff] %v4237_v26  ;;  %vm738_vm6 = vcmp.gt.f32.partialorder %v1333_v62, -5e+29  ;;  %v5711_v60 = vld [vmem:[#allocation59_spill] sm:$0xff]  ;;  %v5716_v3 = vld [vmem:[#allocation61_spill] sm:$0xff] }
  0xe7   :  { %v4243_v53 = vsel %vm5709_vm5, %v5708_v56, 0.0  ;;  %v5712_v18 = vmax.f32 %v5711_v60, 0.0  ;;  %vm5713_vm5 = vcmp.gt.f32.partialorder %v3720_v61, -5e+29  ;;  %v5714_v56 = vld [vmem:[#allocation60_spill] sm:$0xff]  ;;  %v5717_v22 = vmax.f32 %v5716_v3, 0.0 }
  0xe8   :  { %5710 = vst [vmem:[#allocation43_spill] sm:$0xff] %v4243_v53  ;;  %v5715_v4 = vmax.f32 %v5714_v56, 0.0  ;;  %vm5718_vm7 = vcmp.gt.f32.partialorder %v3732_v54, -5e+29  ;;  %v5719_v26 = vld [vmem:[#allocation62_spill] sm:$0xff]  ;;  %v1336_v61 = vld [vmem:[%s4896_s0 + $0x440] sm:$0xff] }
  0xe9   :  { %v4258_v37 = vsel %vm5713_vm5, %v5712_v18, 0.0  ;;  %v4270_v53 = vsel %vm5718_vm7, %v5717_v22, 0.0  ;;  %v5720_v47 = vmax.f32 %v5719_v26, 0.0  ;;  %vm741_vm5 = vcmp.gt.f32.partialorder %v1336_v61, -5e+29  ;;  %v5722_v17 = vld [vmem:[#allocation63_spill] sm:$0xff] }
  0xea   :  { %v4264_v46 = vsel %vm692_vm11, %v5715_v4, 0.0  ;;  %v5723_v18 = vmax.f32 %v5722_v17, 0.0  ;;  %vm5724_vm11 = vcmp.gt.f32.partialorder %v3768_v34, -5e+29  ;;  %v5725_v54 = vld [vmem:[#allocation107_spill] sm:$0xff]  ;;  %v5728_v63 = vld [vmem:[#allocation66_spill] sm:$0xff] }
  0xeb   :  { %v4276_v60 = vsel %vm694_vm9, %v5720_v47, 0.0  ;;  %v5726_v4 = vmax.f32 %v5725_v54, 0.0  ;;  %v5729_v47 = vmax.f32 %v5728_v63, 0.0  ;;  %v5731_v22 = vld [vmem:[#allocation67_spill] sm:$0xff]  ;;  %v1337_v34 = vld [vmem:[%s4896_s0 + $0x448] sm:$0xff]  ;;  %v1339_v52 = vld [vmem:[%s4896_s0 + $0x458] sm:$0xff] }
  0xec   :  { %5721 = vst [vmem:[#allocation44_spill] sm:$0xff] %v4276_v60  ;;  %v4285_v56 = vsel %vm5724_vm11, %v5723_v18, 0.0  ;;  %v5732_v60 = vmax.f32 %v5731_v22, 0.0  ;;  %vm742_vm9 = vcmp.gt.f32.partialorder %v1337_v34, -5e+29  ;;  %v1338_v55 = vld [vmem:[%s4896_s0 + $0x450] sm:$0xff] }
  0xed   :  { %v4291_v26 = vsel %vm696_vm10, %v5726_v4, 0.0  ;;  %v4297_v3 = vsel %vm697_vm13, %v5729_v47, 0.0  ;;  %vm743_vm10 = vcmp.gt.f32.partialorder %v1338_v55, -5e+29  ;;  %vm744_vm13 = vcmp.gt.f32.partialorder %v1339_v52, -5e+29 }
  0xee   :  { %5727 = vst [vmem:[#allocation45_spill] sm:$0xff] %v4291_v26  ;;  %5730 = vst [vmem:[#allocation46_spill] sm:$0xff] %v4297_v3  ;;  %v4303_v17 = vsel %vm698_vm12, %v5732_v60, 0.0  ;;  %v5734_v18 = vld [vmem:[#allocation51_spill] sm:$0xff]  ;;  %v5737_v60 = vld [vmem:[#allocation68_spill] sm:$0xff] }
  0xef   :  { %5733 = vst [vmem:[#allocation47_spill] sm:$0xff] %v4303_v17  ;;  %v5735_v54 = vmax.f32 %v5734_v18, 0.0  ;;  %v5738_v4 = vmax.f32 %v5737_v60, 0.0  ;;  %v5739_v47 = vld [vmem:[#allocation69_spill] sm:$0xff]  ;;  %v5741_v3 = vld [vmem:[#allocation70_spill] sm:$0xff]  ;;  %v5745_v31 = vld [vmem:[#allocation72_spill] sm:$0xff] }
  0xf0   :  { %v5740_v22 = vmax.f32 %v5739_v47, 0.0  ;;  %v5742_v26 = vmax.f32 %v5741_v3, 0.0  ;;  %v1340_v59 = vld [vmem:[%s4896_s0 + $0x460] sm:$0xff]  ;;  %v5752_v23 = vld [vmem:[#allocation108_spill] sm:$0xff]  ;;  %v5755_v12 = vld [vmem:[#allocation78_spill] sm:$0xff] }
  0xf1   :  { %v4318_v29 = vsel %vm699_vm0, %v5735_v54, 0.0  ;;  %v845_v63 = vsel %vm701_vm1, %v5738_v4, 0.0  ;;  %vm745_vm12 = vcmp.gt.f32.partialorder %v1340_v59, -5e+29  ;;  %v5743_v54 = vld [vmem:[#allocation71_spill] sm:$0xff]  ;;  %v5746_v4 = vmax.f32 %v5745_v31, 0.0 }
  0xf2   :  { %5736 = vst [vmem:[#allocation48_spill] sm:$0xff] %v4318_v29  ;;  %v4328_v17 = vsel %vm702_vm15, %v5740_v22, 0.0  ;;  %v4334_v18 = vsel %vm703_vm14, %v5742_v26, 0.0  ;;  %v5744_v15 = vmax.f32 %v5743_v54, 0.0  ;;  %v5747_v58 = vld [vmem:[#allocation73_spill] sm:$0xff]  ;;  %v5749_v22 = vld [vmem:[#allocation74_spill] sm:$0xff] }
  0xf3   :  { %v4349_v3 = vsel %vm705_vm3, %v5746_v4, 0.0  ;;  %v5748_v26 = vmax.f32 %v5747_v58, 0.0  ;;  %v5750_v29 = vmax.f32 %v5749_v22, 0.0  ;;  %vm5751_vm0 = vcmp.gt.f32.partialorder %v3882_v25, -5e+29  ;;  %v5758_v6 = vld [vmem:[#allocation79_spill] sm:$0xff] }
  0xf4   :  { %v4343_v60 = vsel %vm704_vm2, %v5744_v15, 0.0  ;;  %v5753_v15 = vmax.f32 %v5752_v23, 0.0  ;;  %vm5754_vm1 = vcmp.gt.f32.partialorder %v3912_v27, -5e+29  ;;  %v5756_v4 = vmax.f32 %v5755_v12, 0.0  ;;  %v5761_v25 = vld [vmem:[#allocation80_spill] sm:$0xff] }
  0xf5   :  { %v4355_v47 = vsel %vm706_vm4, %v5748_v26, 0.0  ;;  %v4361_v54 = vsel %vm5751_vm0, %v5750_v29, 0.0  ;;  %vm5757_vm15 = vcmp.gt.f32.partialorder %v3918_v28, -5e+29  ;;  %v5759_v26 = vmax.f32 %v5758_v6, 0.0  ;;  %v5764_v27 = vld [vmem:[#allocation109_spill] sm:$0xff] }
  0xf6   :  { %v4367_v31 = vsel %vm5754_vm1, %v5753_v15, 0.0  ;;  %v4373_v58 = vsel %vm5757_vm15, %v5756_v4, 0.0  ;;  %vm5760_vm14 = vcmp.gt.f32.partialorder %v3924_v33, -5e+29  ;;  %v5762_v29 = vmax.f32 %v5761_v25, 0.0  ;;  %v5767_v28 = vld [vmem:[#allocation81_spill] sm:$0xff] }
  0xf7   :  { %v4379_v22 = vsel %vm5760_vm14, %v5759_v26, 0.0  ;;  %vm5763_vm2 = vcmp.gt.f32.partialorder %v3930_v5, -5e+29  ;;  %v5765_v15 = vmax.f32 %v5764_v27, 0.0  ;;  %vm5766_vm3 = vcmp.gt.f32.partialorder %v3960_v35, -5e+29 }
  0xf8   :  { %v4385_v23 = vsel %vm5763_vm2, %v5762_v29, 0.0  ;;  %v5768_v4 = vmax.f32 %v5767_v28, 0.0  ;;  %vm5769_vm4 = vcmp.gt.f32.partialorder %v3966_v36, -5e+29  ;;  %v5771_v33 = vld [vmem:[#allocation82_spill] sm:$0xff]  ;;  %v5775_v5 = vld [vmem:[#allocation64_spill] sm:$0xff] }
  0xf9   :  { %v4391_v12 = vsel %vm5766_vm3, %v5765_v15, 0.0  ;;  %v5772_v26 = vmax.f32 %v5771_v33, 0.0  ;;  %vm5773_vm7 = vcmp.gt.f32.partialorder %v3972_v41, -5e+29  ;;  %v5776_v29 = vmax.f32 %v5775_v5, 0.0  ;;  %v5779_v35 = vld [vmem:[#allocation83_spill] sm:$0xff] }
  0xfa   :  { %v4397_v6 = vsel %vm5769_vm4, %v5768_v4, 0.0  ;;  %vm5777_vm11 = vcmp.gt.f32.partialorder %v3978_v8, -5e+29  ;;  %v5780_v15 = vmax.f32 %v5779_v35, 0.0  ;;  %vm5781_vm0 = vcmp.gt.f32.partialorder %v4008_v43, -5e+29 }
  0xfb   :  { %5770 = vst [vmem:[#allocation49_spill] sm:$0xff] %v4397_v6  ;;  %v4403_v25 = vsel %vm5773_vm7, %v5772_v26, 0.0  ;;  %v4409_v27 = vsel %vm5777_vm11, %v5776_v29, 0.0  ;;  %v5782_v36 = vld [vmem:[#allocation110_spill] sm:$0xff]  ;;  %vm5784_vm1 = vcmp.gt.f32.partialorder %v4014_v44, -5e+29 }
  0xfc   :  { %5774 = vst [vmem:[#allocation50_spill] sm:$0xff] %v4403_v25  ;;  %5778 = vst [vmem:[#allocation38_spill] sm:$0xff] %v4409_v27  ;;  %v861_v28 = vsel %vm5781_vm0, %v5780_v15, 0.0  ;;  %v5783_v4 = vmax.f32 %v5782_v36, 0.0  ;;  %v5785_v6 = vld [vmem:[#allocation84_spill] sm:$0xff]  ;;  %v5788_v5 = vld [vmem:[#allocation85_spill] sm:$0xff] }
  0xfd   :  { %v5786_v41 = vmax.f32 %v5785_v6, 0.0  ;;  %vm5787_vm15 = vcmp.gt.f32.partialorder %v4020_v49, -5e+29  ;;  %v5789_v8 = vmax.f32 %v5788_v5, 0.0  ;;  %vm5790_vm14 = vcmp.gt.f32.partialorder %v4026_v16, -5e+29 }
  0xfe   :  { %v862_v33 = vsel %vm5784_vm1, %v5783_v4, 0.0  ;;  %v5791_v35 = vld [vmem:[#allocation86_spill] sm:$0xff]  ;;  %vm5793_vm2 = vcmp.gt.f32.partialorder %v4056_v51, -5e+29  ;;  %v5794_v44 = vld [vmem:[#allocation111_spill] sm:$0xff]  ;;  %v5803_v51 = vld [vmem:[#allocation92_spill] sm:$0xff] }
  0xff   :  { %v4423_v26 = vsel %vm5787_vm15, %v5786_v41, 0.0  ;;  %v4429_v29 = vsel %vm5790_vm14, %v5789_v8, 0.0  ;;  %v5792_v43 = vmax.f32 %v5791_v35, 0.0  ;;  %v5795_v36 = vmax.f32 %v5794_v44, 0.0  ;;  %v5797_v49 = vld [vmem:[#allocation90_spill] sm:$0xff]  ;;  %v5800_v16 = vld [vmem:[#allocation91_spill] sm:$0xff] }
 0x100   :  { %vm5796_vm3 = vcmp.gt.f32.partialorder %v4062_v10, -5e+29  ;;  %v5798_v4 = vmax.f32 %v5797_v49, 0.0  ;;  %vm5799_vm4 = vcmp.gt.f32.partialorder %v4068_v24, -5e+29  ;;  %v5801_v5 = vmax.f32 %v5800_v16, 0.0 }
 0x101   :  { %v4435_v15 = vsel %vm5793_vm2, %v5792_v43, 0.0  ;;  %v4441_v6 = vsel %vm5796_vm3, %v5795_v36, 0.0  ;;  %vm5802_vm7 = vcmp.gt.f32.partialorder %v4074_v48, -5e+29  ;;  %v5804_v35 = vmax.f32 %v5803_v51, 0.0  ;;  %v5806_v10 = vld [vmem:[#allocation93_spill] sm:$0xff] }
 0x102   :  { %v4447_v41 = vsel %vm5799_vm4, %v5798_v4, 0.0  ;;  %v4453_v8 = vsel %vm5802_vm7, %v5801_v5, 0.0  ;;  %vm5805_vm11 = vcmp.gt.f32.partialorder %v4104_v30, -5e+29  ;;  %v5807_v44 = vmax.f32 %v5806_v10, 0.0  ;;  %v5809_v24 = vld [vmem:[#allocation112_spill] sm:$0xff] }
 0x103   :  { %v4459_v43 = vsel %vm5805_vm11, %v5804_v35, 0.0  ;;  %vm5808_vm0 = vcmp.gt.f32.partialorder %v4110_v9, -5e+29  ;;  %v5810_v49 = vmax.f32 %v5809_v24, 0.0  ;;  %vm5811_vm1 = vcmp.gt.f32.partialorder %v4116_v13, -5e+29 }
 0x104   :  { %v4465_v36 = vsel %vm5808_vm0, %v5807_v44, 0.0  ;;  %v5812_v48 = vld [vmem:[#allocation113_spill] sm:$0xff]  ;;  %vm5814_vm15 = vcmp.gt.f32.partialorder %v4122_v39, -5e+29  ;;  %v5816_v30 = vld [vmem:[#allocation114_spill] sm:$0xff]  ;;  %v5820_v9 = vld [vmem:[#allocation75_spill] sm:$0xff] }
 0x105   :  { %v4471_v4 = vsel %vm5811_vm1, %v5810_v49, 0.0  ;;  %v5813_v16 = vmax.f32 %v5812_v48, 0.0  ;;  %v5817_v51 = vmax.f32 %v5816_v30, 0.0  ;;  %vm5818_vm14 = vcmp.gt.f32.partialorder %v4152_v1, -5e+29  ;;  %v5824_v13 = vld [vmem:[#allocation76_spill] sm:$0xff] }
 0x106   :  { %v5821_v10 = vmax.f32 %v5820_v9, 0.0  ;;  %vm5822_vm2 = vcmp.gt.f32.partialorder %v4158_v0, -5e+29  ;;  %v5825_v24 = vmax.f32 %v5824_v13, 0.0  ;;  %vm5826_vm3 = vcmp.gt.f32.partialorder %v4164_v2, -5e+29 }
 0x107   :  { %v4477_v5 = vsel %vm5814_vm15, %v5813_v16, 0.0  ;;  %v4483_v35 = vsel %vm5818_vm14, %v5817_v51, 0.0  ;;  %v5828_v39 = vld [vmem:[#allocation115_spill] sm:$0xff]  ;;  %vm5830_vm4 = vcmp.gt.f32.partialorder %v4170_v14, -5e+29  ;;  %v5831_v1 = vld [vmem:[#allocation116_spill] sm:$0xff] }
 0x108   :  { %5815 = vst [vmem:[#allocation53_spill] sm:$0xff] %v4477_v5  ;;  %5819 = vst [vmem:[#allocation54_spill] sm:$0xff] %v4483_v35  ;;  %v4489_v44 = vsel %vm5822_vm2, %v5821_v10, 0.0  ;;  %v4495_v49 = vsel %vm5826_vm3, %v5825_v24, 0.0  ;;  %v5829_v48 = vmax.f32 %v5828_v39, 0.0  ;;  %v5832_v30 = vmax.f32 %v5831_v1, 0.0 }
 0x109   :  { %5823 = vst [vmem:[#allocation55_spill] sm:$0xff] %v4489_v44  ;;  %5827 = vst [vmem:[#allocation56_spill] sm:$0xff] %v4495_v49  ;;  %vm5833_vm7 = vcmp.gt.f32.partialorder %v4200_v32, -5e+29  ;;  %v5834_v9 = vld [vmem:[#allocation117_spill] sm:$0xff]  ;;  %v5837_v13 = vld [vmem:[#allocation118_spill] sm:$0xff] }
 0x10a   :  { %v877_v16 = vsel %vm5830_vm4, %v5829_v48, 0.0  ;;  %v878_v51 = vsel %vm5833_vm7, %v5832_v30, 0.0  ;;  %v5835_v0 = vmax.f32 %v5834_v9, 0.0  ;;  %vm5836_vm11 = vcmp.gt.f32.partialorder %v4206_v11, -5e+29  ;;  %v5840_v39 = vld [vmem:[#allocation119_spill] sm:$0xff] }
 0x10b   :  { %v5838_v2 = vmax.f32 %v5837_v13, 0.0  ;;  %vm5839_vm0 = vcmp.gt.f32.partialorder %v4212_v19, -5e+29  ;;  %v5841_v14 = vmax.f32 %v5840_v39, 0.0  ;;  %vm5842_vm1 = vcmp.gt.f32.partialorder %v4218_v45, -5e+29 }
 0x10c   :  { %v4509_v10 = vsel %vm5836_vm11, %v5835_v0, 0.0  ;;  %v5843_v32 = vld [vmem:[#allocation120_spill] sm:$0xff]  ;;  %v5845_v11 = vld [vmem:[#allocation121_spill] sm:$0xff]  ;;  %vm5847_vm15 = vcmp.gt.f32.partialorder %v1334_v7, -5e+29  ;;  %v5848_v13 = vld [vmem:[#allocation122_spill] sm:$0xff] }
 0x10d   :  { %v4515_v24 = vsel %vm5839_vm0, %v5838_v2, 0.0  ;;  %v4521_v48 = vsel %vm5842_vm1, %v5841_v14, 0.0  ;;  %v5844_v1 = vmax.f32 %v5843_v32, 0.0  ;;  %v5846_v9 = vmax.f32 %v5845_v11, 0.0  ;;  %v5850_v39 = vld [vmem:[#allocation123_spill] sm:$0xff]  ;;  %v5852_v32 = vld [vmem:[#allocation136_spill] sm:$0xff] }
 0x10e   :  { %v5849_v19 = vmax.f32 %v5848_v13, 0.0  ;;  %vm893_vm14 = vcmask 130048   ;;  %v5851_v45 = vmax.f32 %v5850_v39, 0.0  ;;  %v5853_v11 = vld [vmem:[#allocation124_spill] sm:$0xff]  ;;  %v5855_v13 = vld [vmem:[#allocation125_spill] sm:$0xff]  ;;  %v5857_v39 = vld [vmem:[#allocation126_spill] sm:$0xff] }
 0x10f   :  { %v4526_v30 = vsel %vm738_vm6, %v5844_v1, 0.0  ;;  %v4531_v0 = vsel %vm5847_vm15, %v5846_v9, 0.0  ;;  %v894_v62 = vsel %vm893_vm14, %v5852_v32, -inf  ;;  %v895_v1 = vsel %vm893_vm14, %v3421_v21, -inf  ;;  %v5860_v21 = vld [vmem:[#allocation127_spill] sm:$0xff]  ;;  %v5870_v44 = vld [vmem:[#allocation154_spill] sm:$0xff] }
 0x110   :  { %v4536_v2 = vsel %vm740_vm8, %v5849_v19, 0.0  ;;  %v4541_v14 = vsel %vm741_vm5, %v5851_v45, 0.0  ;;  %v897_v7 = vsel %vm893_vm14, %v3613_v57, -inf  ;;  %v5854_v9 = vmax.f32 %v5853_v11, 0.0  ;;  %v5863_v11 = vld [vmem:[#allocation137_spill] sm:$0xff]  ;;  %v5865_v59 = vld [vmem:[#allocation39_spill] sm:$0xff] }
 0x111   :  { %v5856_v19 = vmax.f32 %v5855_v13, 0.0  ;;  %v5858_v45 = vmax.f32 %v5857_v39, 0.0  ;;  %v896_v49 = vmax.f32 %v894_v62, %v895_v1  ;;  %v5861_v27 = vmax.f32 %v5860_v21, 0.0  ;;  %v5864_v62 = vld [vmem:[#allocation105_spill] sm:$0xff]  ;;  %v5877_v5 = vld [vmem:[#allocation14_spill] sm:$0xff] }
 0x112   :  { %v4552_v40 = vsel %vm742_vm9, %v5854_v9, 0.0  ;;  %v899_v34 = vsel %vm893_vm14, %v3805_v38, -inf  ;;  %v911_v9 = vsel %vm893_vm14, %v5863_v11, -inf  ;;  %v912_v55 = vsel %vm893_vm14, %v3427_v42, -inf }
 0x113   :  { %v4557_v61 = vsel %vm743_vm10, %v5856_v19, 0.0  ;;  %v4562_v32 = vsel %vm744_vm13, %v5858_v45, 0.0  ;;  %v4567_v57 = vsel %vm745_vm12, %v5861_v27, 0.0  ;;  %v898_v13 = vmax.f32 %v896_v49, %v897_v7  ;;  %v5866_v45 = vld [vmem:[#allocation13_spill] sm:$0xff]  ;;  %v5867_v7 = vld [vmem:[#allocation140_spill] sm:$0xff] }
 0x114   :  { %5859 = vst [vmem:[#allocation57_spill] sm:$0xff] %v4562_v32  ;;  %5862 = vst [vmem:[#allocation58_spill] sm:$0xff] %v4567_v57  ;;  %v901_v52 = vsel %vm893_vm14, %v3997_v20, -inf  ;;  %v913_v19 = vmax.f32 %v911_v9, %v912_v55  ;;  %v914_v1 = vsel %vm893_vm14, %v5864_v62, -inf  ;;  %v903_v27 = vsel %vm893_vm14, %v5865_v59, -inf  ;;  %v5868_v9 = vld [vmem:[#allocation23_spill] sm:$0xff] }
 0x115   :  { %v905_v39 = vsel %vm893_vm14, %v845_v63, -inf  ;;  %v907_v38 = vsel %vm893_vm14, %v861_v28, -inf  ;;  %v916_v21 = vsel %vm893_vm14, %v5866_v45, -inf  ;;  %v900_v11 = vmax.f32 %v898_v13, %v899_v34  ;;  %v5869_v62 = vld [vmem:[#allocation40_spill] sm:$0xff]  ;;  %v5871_v28 = vld [vmem:[#allocation5_spill] sm:$0xff] }
 0x116   :  { %v909_v42 = vsel %vm893_vm14, %v877_v16, -inf  ;;  %v915_v49 = vmax.f32 %v913_v19, %v914_v1  ;;  %v928_v20 = vsel %vm893_vm14, %v5867_v7, -inf  ;;  %v918_v55 = vsel %vm893_vm14, %v5868_v9, -inf  ;;  %v5872_v7 = vld [vmem:[#allocation133_spill] sm:$0xff] }
 0x117   :  { %v920_v59 = vsel %vm893_vm14, %v5869_v62, -inf  ;;  %v929_v63 = vsel %vm893_vm14, %v5870_v44, -inf  ;;  %v931_v25 = vsel %vm893_vm14, %v5871_v28, -inf  ;;  %v902_v45 = vmax.f32 %v900_v11, %v901_v52  ;;  %v5873_v62 = vld [vmem:[#allocation141_spill] sm:$0xff]  ;;  %v1341_v44 = vld [vmem:[%s4896_s0 + $0x468] sm:$0xff] }
 0x118   :  { %v917_v34 = vmax.f32 %v915_v49, %v916_v21  ;;  %v922_v16 = vsel %vm893_vm14, %v4328_v17, -inf  ;;  %v930_v13 = vmax.f32 %v928_v20, %v929_v63  ;;  %v924_v19 = vsel %vm893_vm14, %v862_v33, -inf  ;;  %v5874_v17 = vld [vmem:[#allocation155_spill] sm:$0xff]  ;;  %v5875_v33 = vld [vmem:[#allocation25_spill] sm:$0xff]  ;;  %v5876_v28 = vld [vmem:[#allocation6_spill] sm:$0xff] }
 0x119   :  { %v926_v1 = vsel %vm893_vm14, %v878_v51, -inf  ;;  %v933_v9 = vsel %vm893_vm14, %v5872_v7, -inf  ;;  %v945_v57 = vsel %vm893_vm14, %v5873_v62, -inf  ;;  %vm746_vm6 = vcmp.gt.f32.partialorder %v1341_v44, -5e+29  ;;  %v5892_v44 = vld [vmem:[#allocation28_spill] sm:$0xff] }
 0x11a   :  { %v904_v52 = vmax.f32 %v902_v45, %v903_v27  ;;  %v919_v21 = vmax.f32 %v917_v34, %v918_v55  ;;  %v932_v11 = vmax.f32 %v930_v13, %v931_v25  ;;  %v946_v49 = vsel %vm893_vm14, %v5874_v17, -inf  ;;  %v5878_v34 = vld [vmem:[#allocation26_spill] sm:$0xff] }
 0x11b   :  { %v935_v51 = vsel %vm893_vm14, %v5875_v33, -inf  ;;  %v937_v20 = vsel %vm893_vm14, %v4225_v50, -inf  ;;  %v947_v63 = vmax.f32 %v945_v57, %v946_v49  ;;  %v948_v7 = vsel %vm893_vm14, %v5876_v28, -inf  ;;  %v5879_v49 = vld [vmem:[#allocation142_spill] sm:$0xff] }
 0x11c   :  { %v906_v62 = vmax.f32 %v904_v52, %v905_v39  ;;  %v921_v35 = vmax.f32 %v919_v21, %v920_v59  ;;  %v934_v32 = vmax.f32 %v932_v11, %v933_v9  ;;  %v950_v27 = vsel %vm893_vm14, %v5877_v5, -inf  ;;  %v5880_v9 = vld [vmem:[#allocation41_spill] sm:$0xff]  ;;  %v5881_v52 = vld [vmem:[#allocation94_spill] sm:$0xff]  ;;  %v5882_v21 = vld [vmem:[#allocation7_spill] sm:$0xff] }
 0x11d   :  { %v939_v25 = vsel %vm893_vm14, %v4334_v18, -inf  ;;  %v941_v55 = vsel %vm893_vm14, %v4423_v26, -inf  ;;  %v949_v45 = vmax.f32 %v947_v63, %v948_v7  ;;  %v952_v50 = vsel %vm893_vm14, %v5878_v34, -inf }
 0x11e   :  { %v908_v57 = vmax.f32 %v906_v62, %v907_v38  ;;  %v923_v13 = vmax.f32 %v921_v35, %v922_v16  ;;  %v936_v17 = vmax.f32 %v934_v32, %v935_v51  ;;  %v962_v39 = vsel %vm893_vm14, %v5879_v49, -inf  ;;  %v5883_v16 = vld [vmem:[#allocation134_spill] sm:$0xff] }
 0x11f   :  { %v951_v59 = vmax.f32 %v949_v45, %v950_v27  ;;  %v954_v5 = vsel %vm893_vm14, %v5880_v9, -inf  ;;  %v963_v18 = vsel %vm893_vm14, %v5881_v52, -inf  ;;  %v965_v26 = vsel %vm893_vm14, %v5882_v21, -inf  ;;  %v5890_v9 = vld [vmem:[#allocation42_spill] sm:$0xff]  ;;  %v5891_v52 = vld [vmem:[#allocation15_spill] sm:$0xff] }
 0x120   :  { %v910_v11 = vmax.f32 %v908_v57, %v909_v42  ;;  %v925_v33 = vmax.f32 %v923_v13, %v924_v19  ;;  %v938_v63 = vmax.f32 %v936_v17, %v937_v20  ;;  %v964_v28 = vmax.f32 %v962_v39, %v963_v18  ;;  %v5884_v19 = vld [vmem:[#allocation27_spill] sm:$0xff] }
 0x121   :  { %v943_v35 = vsel %vm893_vm14, %v4509_v10, -inf  ;;  %v953_v32 = vmax.f32 %v951_v59, %v952_v50  ;;  %v956_v38 = vsel %vm893_vm14, %v4343_v60, -inf  ;;  %v967_v51 = vsel %vm893_vm14, %v5883_v16, -inf  ;;  %v5885_v10 = vld [vmem:[#allocation143_spill] sm:$0xff] }
 0x122   :  { %v927_v7 = vmax.f32 %v925_v33, %v926_v1  ;;  %v940_v62 = vmax.f32 %v938_v63, %v939_v25  ;;  %v958_v27 = vsel %vm893_vm14, %v4429_v29, -inf  ;;  %v966_v45 = vmax.f32 %v964_v28, %v965_v26  ;;  %1166 = vst.msk [vmem:[#allocation2] sm:$0xff] %vm893_vm14, %v910_v11  ;;  %v5886_v50 = vld [vmem:[#allocation95_spill] sm:$0xff]  ;;  %v5887_v25 = vld [vmem:[#allocation8_spill] sm:$0xff] }
 0x123   :  { %v955_v42 = vmax.f32 %v953_v32, %v954_v5  ;;  %v969_v20 = vsel %vm893_vm14, %v5884_v19, -inf  ;;  %v979_v34 = vsel %vm893_vm14, %v5885_v10, -inf  ;;  %v980_v60 = vsel %vm893_vm14, %v5886_v50, -inf  ;;  %v5888_v29 = vld [vmem:[#allocation87_spill] sm:$0xff]  ;;  %v5893_v32 = vld [vmem:[#allocation144_spill] sm:$0xff] }
 0x124   :  { %v942_v57 = vmax.f32 %v940_v62, %v941_v55  ;;  %v968_v13 = vmax.f32 %v966_v45, %v967_v51  ;;  %v981_v1 = vmax.f32 %v979_v34, %v980_v60  ;;  %v982_v17 = vsel %vm893_vm14, %v5887_v25, -inf  ;;  %1167 = vst.msk [vmem:[#allocation2 + $0x8] sm:$0xff] %vm893_vm14, %v927_v7  ;;  %v5894_v7 = vld [vmem:[#allocation156_spill] sm:$0xff]  ;;  %v5895_v62 = vld [vmem:[#allocation9_spill] sm:$0xff]  ;;  %v5896_v45 = vld [vmem:[#allocation43_spill] sm:$0xff] }
 0x125   :  { %v5889_v49 = vmax.f32 %v5888_v29, 0.0  ;;  %v957_v59 = vmax.f32 %v955_v42, %v956_v38  ;;  %v971_v5 = vsel %vm893_vm14, %v5890_v9, -inf  ;;  %v984_v18 = vsel %vm893_vm14, %v5891_v52, -inf  ;;  %v5897_v50 = vld [vmem:[#allocation135_spill] sm:$0xff]  ;;  %v5901_v9 = vld [vmem:[#allocation128_spill] sm:$0xff] }
 0x126   :  { %v944_v55 = vmax.f32 %v942_v57, %v943_v35  ;;  %v960_v21 = vsel %vm893_vm14, %v4515_v24, -inf  ;;  %v970_v26 = vmax.f32 %v968_v13, %v969_v20  ;;  %v983_v11 = vmax.f32 %v981_v1, %v982_v17  ;;  %v5898_v1 = vld [vmem:[#allocation29_spill] sm:$0xff] }
 0x127   :  { %v4652_v39 = vsel %vm746_vm6, %v5889_v49, 0.0  ;;  %v959_v33 = vmax.f32 %v957_v59, %v958_v27  ;;  %v973_v63 = vsel %vm893_vm14, %v4349_v3, -inf  ;;  %v986_v28 = vsel %vm893_vm14, %v5892_v44, -inf  ;;  %v5900_v59 = vld [vmem:[#allocation96_spill] sm:$0xff] }
 0x128   :  { %v996_v38 = vsel %vm893_vm14, %v5893_v32, -inf  ;;  %v972_v16 = vmax.f32 %v970_v26, %v971_v5  ;;  %v985_v51 = vmax.f32 %v983_v11, %v984_v18  ;;  %v997_v35 = vsel %vm893_vm14, %v5894_v7, -inf  ;;  %1168 = vst.msk [vmem:[#allocation2 + $0x10] sm:$0xff] %vm893_vm14, %v944_v55  ;;  %v5905_v7 = vld [vmem:[#allocation97_spill] sm:$0xff] }
 0x129   :  { %v999_v24 = vsel %vm893_vm14, %v5895_v62, -inf  ;;  %v961_v27 = vmax.f32 %v959_v33, %v960_v21  ;;  %v975_v3 = vsel %vm893_vm14, %v4435_v15, -inf  ;;  %v988_v42 = vsel %vm893_vm14, %v5896_v45, -inf  ;;  %v5899_v15 = vld [vmem:[#allocation145_spill] sm:$0xff]  ;;  %v5902_v33 = vld [vmem:[#allocation16_spill] sm:$0xff]  ;;  %v5906_v62 = vld [vmem:[#allocation10_spill] sm:$0xff] }
 0x12a   :  { %v998_v19 = vmax.f32 %v996_v38, %v997_v35  ;;  %v974_v20 = vmax.f32 %v972_v16, %v973_v63  ;;  %v977_v10 = vsel %vm893_vm14, %v4521_v48, -inf  ;;  %v987_v34 = vmax.f32 %v985_v51, %v986_v28  ;;  %v5903_v38 = vld [vmem:[#allocation30_spill] sm:$0xff] }
 0x12b   :  { %v1001_v60 = vsel %vm893_vm14, %v5897_v50, -inf  ;;  %v990_v57 = vsel %vm893_vm14, %v4355_v47, -inf  ;;  %v1003_v25 = vsel %vm893_vm14, %v5898_v1, -inf  ;;  %v1013_v17 = vsel %vm893_vm14, %v5899_v15, -inf  ;;  %1169 = vst.msk [vmem:[#allocation2 + $0x18] sm:$0xff] %vm893_vm14, %v961_v27  ;;  %v5909_v1 = vld [vmem:[#allocation147_spill] sm:$0xff] }
 0x12c   :  { %v1000_v13 = vmax.f32 %v998_v19, %v999_v24  ;;  %v976_v29 = vmax.f32 %v974_v20, %v975_v3  ;;  %v989_v49 = vmax.f32 %v987_v34, %v988_v42  ;;  %v1014_v48 = vsel %vm893_vm14, %v5900_v59, -inf  ;;  %v5907_v20 = vld [vmem:[#allocation17_spill] sm:$0xff]  ;;  %v5910_v15 = vld [vmem:[#allocation98_spill] sm:$0xff] }
 0x12d   :  { %v1016_v5 = vsel %vm893_vm14, %v5901_v9, -inf  ;;  %v992_v47 = vsel %vm893_vm14, %v4441_v6, -inf  ;;  %v994_v52 = vsel %vm893_vm14, %v4526_v30, -inf  ;;  %v1015_v55 = vmax.f32 %v1013_v17, %v1014_v48  ;;  %v5904_v30 = vld [vmem:[#allocation146_spill] sm:$0xff]  ;;  %v5911_v17 = vld [vmem:[#allocation129_spill] sm:$0xff] }
 0x12e   :  { %v1002_v18 = vmax.f32 %v1000_v13, %v1001_v60  ;;  %v978_v21 = vmax.f32 %v976_v29, %v977_v10  ;;  %v991_v26 = vmax.f32 %v989_v49, %v990_v57  ;;  %v1005_v11 = vsel %vm893_vm14, %v4258_v37, -inf  ;;  %v5908_v13 = vld [vmem:[#allocation31_spill] sm:$0xff] }
 0x12f   :  { %v1018_v63 = vsel %vm893_vm14, %v5902_v33, -inf  ;;  %v1007_v28 = vsel %vm893_vm14, %v4361_v54, -inf  ;;  %v1017_v32 = vmax.f32 %v1015_v55, %v1016_v5  ;;  %v1020_v6 = vsel %vm893_vm14, %v5903_v38, -inf  ;;  %v5913_v33 = vld [vmem:[#allocation32_spill] sm:$0xff] }
 0x130   :  { %v1004_v44 = vmax.f32 %v1002_v18, %v1003_v25  ;;  %v993_v16 = vmax.f32 %v991_v26, %v992_v47  ;;  %v1030_v51 = vsel %vm893_vm14, %v5904_v30, -inf  ;;  %v1031_v35 = vsel %vm893_vm14, %v5905_v7, -inf  ;;  %1170 = vst.msk [vmem:[#allocation2 + $0x20] sm:$0xff] %vm893_vm14, %v978_v21  ;;  %v5912_v47 = vld [vmem:[#allocation18_spill] sm:$0xff]  ;;  %v5916_v30 = vld [vmem:[#allocation44_spill] sm:$0xff] }
 0x131   :  { %v1033_v37 = vsel %vm893_vm14, %v5906_v62, -inf  ;;  %v1009_v54 = vsel %vm893_vm14, %v4447_v41, -inf  ;;  %v1019_v27 = vmax.f32 %v1017_v32, %v1018_v63  ;;  %v1032_v3 = vmax.f32 %v1030_v51, %v1031_v35  ;;  %v5917_v51 = vld [vmem:[#allocation106_spill] sm:$0xff]  ;;  %v5918_v35 = vld [vmem:[#allocation19_spill] sm:$0xff] }
 0x132   :  { %v1006_v24 = vmax.f32 %v1004_v44, %v1005_v11  ;;  %v995_v45 = vmax.f32 %v993_v16, %v994_v52  ;;  %v1011_v42 = vsel %vm893_vm14, %v4531_v0, -inf  ;;  %v1022_v19 = vsel %vm893_vm14, %v4264_v46, -inf }
 0x133   :  { %v1035_v10 = vsel %vm893_vm14, %v5907_v20, -inf  ;;  %v1021_v50 = vmax.f32 %v1019_v27, %v1020_v6  ;;  %v1024_v60 = vsel %vm893_vm14, %v4367_v31, -inf  ;;  %v1034_v57 = vmax.f32 %v1032_v3, %v1033_v37 }
 0x134   :  { %v1008_v34 = vmax.f32 %v1006_v24, %v1007_v28  ;;  %v1037_v41 = vsel %vm893_vm14, %v5908_v13, -inf  ;;  %v1047_v25 = vsel %vm893_vm14, %v5909_v1, -inf  ;;  %v1048_v0 = vsel %vm893_vm14, %v5910_v15, -inf  ;;  %1171 = vst.msk [vmem:[#allocation2 + $0x28] sm:$0xff] %vm893_vm14, %v995_v45 }
 0x135   :  { %v1050_v46 = vsel %vm893_vm14, %v5911_v17, -inf  ;;  %v1023_v49 = vmax.f32 %v1021_v50, %v1022_v19  ;;  %v1036_v59 = vmax.f32 %v1034_v57, %v1035_v10  ;;  %v1049_v48 = vmax.f32 %v1047_v25, %v1048_v0  ;;  %v5920_v19 = vld [vmem:[#allocation149_spill] sm:$0xff]  ;;  %v5923_v17 = vld [vmem:[#allocation138_spill] sm:$0xff] }
 0x136   :  { %v1010_v29 = vmax.f32 %v1008_v34, %v1009_v54  ;;  %v1026_v31 = vsel %vm893_vm14, %v4453_v8, -inf  ;;  %v1028_v9 = vsel %vm893_vm14, %v4536_v2, -inf  ;;  %v1039_v5 = vsel %vm893_vm14, %v4270_v53, -inf  ;;  %v5914_v8 = vld [vmem:[#allocation148_spill] sm:$0xff]  ;;  %v5915_v2 = vld [vmem:[#allocation99_spill] sm:$0xff] }
 0x137   :  { %v1052_v52 = vsel %vm893_vm14, %v5912_v47, -inf  ;;  %v1025_v55 = vmax.f32 %v1023_v49, %v1024_v60  ;;  %v1038_v21 = vmax.f32 %v1036_v59, %v1037_v41  ;;  %v1051_v26 = vmax.f32 %v1049_v48, %v1050_v46  ;;  %v5921_v60 = vld [vmem:[#allocation100_spill] sm:$0xff]  ;;  %v5922_v41 = vld [vmem:[#allocation130_spill] sm:$0xff]  ;;  %v5926_v47 = vld [vmem:[#allocation101_spill] sm:$0xff] }
 0x138   :  { %v1012_v18 = vmax.f32 %v1010_v29, %v1011_v42  ;;  %v1041_v11 = vsel %vm893_vm14, %v4373_v58, -inf  ;;  %v1054_v63 = vsel %vm893_vm14, %v5913_v33, -inf  ;;  %v1064_v44 = vsel %vm893_vm14, %v5914_v8, -inf  ;;  %v5924_v59 = vld [vmem:[#allocation34_spill] sm:$0xff]  ;;  %v5928_v33 = vld [vmem:[#allocation45_spill] sm:$0xff]  ;;  %v5929_v8 = vld [vmem:[#allocation20_spill] sm:$0xff] }
 0x139   :  { %v1065_v28 = vsel %vm893_vm14, %v5915_v2, -inf  ;;  %v1027_v53 = vmax.f32 %v1025_v55, %v1026_v31  ;;  %v1040_v32 = vmax.f32 %v1038_v21, %v1039_v5  ;;  %v1053_v38 = vmax.f32 %v1051_v26, %v1052_v52 }
 0x13a   :  { %v1066_v6 = vmax.f32 %v1064_v44, %v1065_v28  ;;  %1172 = vst.msk [vmem:[#allocation2 + $0x30] sm:$0xff] %vm893_vm14, %v1012_v18  ;;  %v1043_v16 = vsel %vm893_vm14, %v4459_v43, -inf  ;;  %v1056_v58 = vsel %vm893_vm14, %v5916_v30, -inf  ;;  %v1067_v7 = vsel %vm893_vm14, %v5917_v51, -inf  ;;  %v5919_v43 = vld [vmem:[#allocation33_spill] sm:$0xff] }
 0x13b   :  { %v1069_v62 = vsel %vm893_vm14, %v5918_v35, -inf  ;;  %v1029_v37 = vmax.f32 %v1027_v53, %v1028_v9  ;;  %v1042_v24 = vmax.f32 %v1040_v32, %v1041_v11  ;;  %v1055_v54 = vmax.f32 %v1053_v38, %v1054_v63  ;;  %v5925_v9 = vld [vmem:[#allocation150_spill] sm:$0xff]  ;;  %v5930_v38 = vld [vmem:[#allocation24_spill] sm:$0xff] }
 0x13c   :  { %v1068_v27 = vmax.f32 %v1066_v6, %v1067_v7  ;;  %v1045_v3 = vsel %vm893_vm14, %v4541_v14, -inf  ;;  %v1058_v45 = vsel %vm893_vm14, %v4379_v22, -inf  ;;  %v1071_v42 = vsel %vm893_vm14, %v5919_v43, -inf }
 0x13d   :  { %v1081_v20 = vsel %vm893_vm14, %v5920_v19, -inf  ;;  %v1044_v10 = vmax.f32 %v1042_v24, %v1043_v16  ;;  %v1057_v34 = vmax.f32 %v1055_v54, %v1056_v58  ;;  %v1082_v57 = vsel %vm893_vm14, %v5921_v60, -inf  ;;  %1173 = vst.msk [vmem:[#allocation2 + $0x38] sm:$0xff] %vm893_vm14, %v1029_v37  ;;  %v5931_v16 = vld [vmem:[#allocation151_spill] sm:$0xff]  ;;  %v5932_v58 = vld [vmem:[#allocation102_spill] sm:$0xff] }
 0x13e   :  { %v1070_v50 = vmax.f32 %v1068_v27, %v1069_v62  ;;  %v1060_v14 = vsel %vm893_vm14, %v4465_v36, -inf  ;;  %v1073_v22 = vsel %vm893_vm14, %v4285_v56, -inf  ;;  %v1083_v13 = vmax.f32 %v1081_v20, %v1082_v57  ;;  %v5933_v62 = vld [vmem:[#allocation131_spill] sm:$0xff]  ;;  %v5934_v27 = vld [vmem:[#allocation53_spill] sm:$0xff]  ;;  %v1344_v20 = vld [vmem:[%s4896_s0 + $0x378] sm:$0xff] }
 0x13f   :  { %v1084_v1 = vsel %vm893_vm14, %v5922_v41, -inf  ;;  %v1046_v25 = vmax.f32 %v1044_v10, %v1045_v3  ;;  %v1059_v15 = vmax.f32 %v1057_v34, %v1058_v45  ;;  %v1086_v46 = vsel %vm893_vm14, %v5923_v17, -inf  ;;  %v1343_v24 = vld [vmem:[%s4896_s0 + $0x470] sm:$0xff]  ;;  %v5935_v45 = vld [vmem:[#allocation46_spill] sm:$0xff]  ;;  %v5937_v34 = vld [vmem:[#allocation57_spill] sm:$0xff] }
 0x140   :  { %v1072_v0 = vmax.f32 %v1070_v50, %v1071_v42  ;;  %v1062_v29 = vsel %vm893_vm14, %v4552_v40, -inf  ;;  %v1075_v49 = vsel %vm893_vm14, %v4385_v23, -inf  ;;  %v1085_v36 = vmax.f32 %v1083_v13, %v1084_v1  ;;  %v5927_v23 = vld [vmem:[#allocation11_spill] sm:$0xff]  ;;  %v5940_v1 = vld [vmem:[#allocation152_spill] sm:$0xff] }
 0x141   :  { %v1088_v56 = vsel %vm893_vm14, %v5924_v59, -inf  ;;  %v1061_v48 = vmax.f32 %v1059_v15, %v1060_v14  ;;  %v1098_v5 = vsel %vm893_vm14, %v5925_v9, -inf  ;;  %v1099_v52 = vsel %vm893_vm14, %v5926_v47, -inf  ;;  %1174 = vst.msk [vmem:[#allocation2 + $0x40] sm:$0xff] %vm893_vm14, %v1046_v25  ;;  %v5936_v42 = vld [vmem:[#allocation139_spill] sm:$0xff]  ;;  %v5938_v14 = vld [vmem:[#allocation49_spill] sm:$0xff] }
 0x142   :  { %v1074_v31 = vmax.f32 %v1072_v0, %v1073_v22  ;;  %v1077_v40 = vsel %vm893_vm14, %v4471_v4, -inf  ;;  %v1087_v18 = vmax.f32 %v1085_v36, %v1086_v46  ;;  %v1100_v55 = vmax.f32 %v1098_v5, %v1099_v52  ;;  %v5939_v13 = vld [vmem:[#allocation35_spill] sm:$0xff]  ;;  %v1345_v17 = vld [vmem:[%s4896_s0 + $0x3f8] sm:$0xff]  ;;  %v5942_v59 = vld [vmem:[#allocation54_spill] sm:$0xff] }
 0x143   :  { %v1101_v21 = vsel %vm893_vm14, %v5927_v23, -inf  ;;  %v1063_v26 = vmax.f32 %v1061_v48, %v1062_v29  ;;  %v1090_v63 = vsel %vm893_vm14, %v5928_v33, -inf  ;;  %v1103_v44 = vsel %vm893_vm14, %v5929_v8, -inf  ;;  %v5941_v15 = vld [vmem:[#allocation103_spill] sm:$0xff]  ;;  %v5944_v9 = vld [vmem:[#allocation12_spill] sm:$0xff]  ;;  %v5945_v47 = vld [vmem:[#allocation21_spill] sm:$0xff] }
 0x144   :  { %v1076_v11 = vmax.f32 %v1074_v31, %v1075_v49  ;;  %v1079_v2 = vsel %vm893_vm14, %v4557_v61, -inf  ;;  %v1089_v28 = vmax.f32 %v1087_v18, %v1088_v56  ;;  %v1092_v4 = vsel %vm893_vm14, %v4391_v12, -inf  ;;  %v1342_v61 = vld [vmem:[%s4896_s0 + $0x2f8] sm:$0xff]  ;;  %v5943_v48 = vld [vmem:[#allocation47_spill] sm:$0xff] }
 0x145   :  { %v1102_v53 = vmax.f32 %v1100_v55, %v1101_v21  ;;  %v1105_v6 = vsel %vm893_vm14, %v5930_v38, -inf  ;;  %v1115_v30 = vsel %vm893_vm14, %v5931_v16, -inf  ;;  %v1116_v51 = vsel %vm893_vm14, %v5932_v58, -inf  ;;  %1175 = vst.msk [vmem:[#allocation2 + $0x48] sm:$0xff] %vm893_vm14, %v1063_v26  ;;  %v5946_v21 = vld [vmem:[#allocation58_spill] sm:$0xff] }
 0x146   :  { %v1078_v32 = vmax.f32 %v1076_v11, %v1077_v40  ;;  %vm700_vm8 = vcmp.gt.f32.partialorder %v1342_v61, -5e+29  ;;  %v1091_v7 = vmax.f32 %v1089_v28, %v1090_v63  ;;  %v1117_v35 = vmax.f32 %v1115_v30, %v1116_v51  ;;  %v5947_v11 = vld [vmem:[#allocation50_spill] sm:$0xff]  ;;  %v5948_v63 = vld [vmem:[#allocation36_spill] sm:$0xff]  ;;  %v5961_v61 = vld [vmem:[#allocation89_spill] sm:$0xff] }
 0x147   :  { %v1104_v12 = vmax.f32 %v1102_v53, %v1103_v44  ;;  %v1118_v37 = vsel %vm893_vm14, %v5933_v62, -inf  ;;  %vm747_vm5 = vcmp.gt.f32.partialorder %v1343_v24, -5e+29  ;;  %v1094_v3 = vsel %vm893_vm14, %v5934_v27, -inf  ;;  %v5949_v44 = vld [vmem:[#allocation153_spill] sm:$0xff]  ;;  %v5952_v30 = vld [vmem:[#allocation48_spill] sm:$0xff] }
 0x148   :  { %v1080_v54 = vmax.f32 %v1078_v32, %v1079_v2  ;;  %v1107_v43 = vsel %vm893_vm14, %v5935_v45, -inf  ;;  %v1120_v19 = vsel %vm893_vm14, %v5936_v42, -inf  ;;  %vm716_vm9 = vcmp.gt.f32.partialorder %v1344_v20, -5e+29  ;;  %v5950_v32 = vld [vmem:[#allocation104_spill] sm:$0xff] }
 0x149   :  { %v1093_v10 = vmax.f32 %v1091_v7, %v1092_v4  ;;  %v1096_v50 = vsel %vm893_vm14, %v5937_v34, -inf  ;;  %v1106_v60 = vmax.f32 %v1104_v12, %v1105_v6  ;;  %v1119_v57 = vmax.f32 %v1117_v35, %v1118_v37  ;;  %v5951_v6 = vld [vmem:[#allocation55_spill] sm:$0xff]  ;;  %v5953_v7 = vld [vmem:[#allocation132_spill] sm:$0xff] }
 0x14a   :  { %v1109_v22 = vsel %vm893_vm14, %v5938_v14, -inf  ;;  %v1122_v41 = vsel %vm893_vm14, %v5939_v13, -inf  ;;  %v1132_v25 = vsel %vm893_vm14, %v5940_v1, -inf  ;;  %v1133_v0 = vsel %vm893_vm14, %v5941_v15, -inf  ;;  %1176 = vst.msk [vmem:[#allocation2 + $0x50] sm:$0xff] %vm893_vm14, %v1080_v54  ;;  %v5954_v54 = vld [vmem:[#allocation22_spill] sm:$0xff] }
 0x14b   :  { %vm732_vm10 = vcmp.gt.f32.partialorder %v1345_v17, -5e+29  ;;  %v1095_v46 = vmax.f32 %v1093_v10, %v1094_v3  ;;  %v1108_v29 = vmax.f32 %v1106_v60, %v1107_v43  ;;  %v1121_v49 = vmax.f32 %v1119_v57, %v1120_v19  ;;  %v5955_v3 = vld [vmem:[#allocation52_spill] sm:$0xff]  ;;  %v5957_v19 = vld [vmem:[#allocation38_spill] sm:$0xff]  ;;  %v5960_v13 = vld [vmem:[#allocation37_spill] sm:$0xff] }
 0x14c   :  { %v1134_v36 = vmax.f32 %v1132_v25, %v1133_v0  ;;  %v1111_v56 = vsel %vm893_vm14, %v5942_v59, -inf  ;;  %v1124_v31 = vsel %vm893_vm14, %v5943_v48, -inf  ;;  %v1135_v5 = vsel %vm893_vm14, %v5944_v9, -inf  ;;  %v5962_v25 = vld [vmem:[#allocation65_spill] sm:$0xff]  ;;  %v5964_v0 = vld [vmem:[#allocation56_spill] sm:$0xff] }
 0x14d   :  { %v1137_v52 = vsel %vm893_vm14, %v5945_v47, -inf  ;;  %v1097_v40 = vmax.f32 %v1095_v46, %v1096_v50  ;;  %v1110_v18 = vmax.f32 %v1108_v29, %v1109_v22  ;;  %v1123_v55 = vmax.f32 %v1121_v49, %v1122_v41  ;;  %v5958_v50 = vld [vmem:[#allocation88_spill] sm:$0xff] }
 0x14e   :  { %v1136_v23 = vmax.f32 %v1134_v36, %v1135_v5  ;;  %v1113_v26 = vsel %vm893_vm14, %v5946_v21, -inf  ;;  %v1126_v33 = vsel %vm893_vm14, %v5947_v11, -inf  ;;  %v1139_v8 = vsel %vm893_vm14, %v5948_v63, -inf  ;;  %v1346_v24 = vld [vmem:[%s4896_s0 + $0x478] sm:$0xff]  ;;  %s1369_s0 = smov [#allocation2]  }
 0x14f   :  { %v1149_v2 = vsel %vm893_vm14, %v5949_v44, -inf  ;;  %v1112_v28 = vmax.f32 %v1110_v18, %v1111_v56  ;;  %v1125_v4 = vmax.f32 %v1123_v55, %v1124_v31  ;;  %v1150_v38 = vsel %vm893_vm14, %v5950_v32, -inf  ;;  %1177 = vst.msk [vmem:[#allocation2 + $0x58] sm:$0xff] %vm893_vm14, %v1097_v40  ;;  %v5965_v56 = vld [vmem:[#allocation77_spill] sm:$0xff]  ;;  %s1187_s17 = sshll.u32 %s1369_s0, 4  ;;  %s1188_s17 = int_to_ptr.vmem [resolvable:$true] %s1187_s17 }
 0x150   :  { %v1138_v53 = vmax.f32 %v1136_v23, %v1137_v52  ;;  %v1128_v16 = vsel %vm893_vm14, %v5951_v6, -inf  ;;  %v1141_v58 = vsel %vm893_vm14, %v5952_v30, -inf  ;;  %v1151_v51 = vmax.f32 %v1149_v2, %v1150_v38  ;;  %s1347_s18 = scalar_lea.vmem %s1188_s17, 2048  ;;  %p1352_p1 = scmp.lt.s32.totalorder %s1188_s17, %s1188_s17 }
 0x151   :  { %v1152_v12 = vsel %vm893_vm14, %v5953_v7, -inf  ;;  %v1114_v35 = vmax.f32 %v1112_v28, %v1113_v26  ;;  %v1127_v62 = vmax.f32 %v1125_v4, %v1126_v33  ;;  %v1154_v27 = vsel %vm893_vm14, %v5954_v54, -inf  ;;  %p1348_p0 = scmp.ne.s32.totalorder %s1188_s17, %s1347_s18  ;;  %p1353_p2 = scmp.lt.s32.totalorder %s1347_s18, %s1347_s18 }
 0x152   :  { %v1140_v37 = vmax.f32 %v1138_v53, %v1139_v8  ;;  %v5956_v45 = vmax.f32 %v5955_v3, 0.0  ;;  %v1130_v42 = vsel %vm893_vm14, %v4652_v39, -inf  ;;  %v1143_v10 = vsel %vm893_vm14, %v5957_v19, -inf }
 0x153   :  { %v1153_v34 = vmax.f32 %v1151_v51, %v1152_v12  ;;  %v5959_v60 = vmax.f32 %v5958_v50, 0.0  ;;  %v1129_v14 = vmax.f32 %v1127_v62, %v1128_v16  ;;  %v1156_v41 = vsel %vm893_vm14, %v5960_v13, -inf  ;;  %1178 = vst.msk [vmem:[#allocation2 + $0x60] sm:$0xff] %vm893_vm14, %v1114_v35  ;;  %p1354_p3 = por %p1353_p2, %p1352_p1 }
 0x154   :  { %v844_v43 = vsel %vm700_vm8, %v5956_v45, 0.0  ;;  %v1142_v22 = vmax.f32 %v1140_v37, %v1141_v58  ;;  %v604_v1 = vmax.f32 %v5961_v61, 0.0  ;;  %v5963_v15 = vmax.f32 %v5962_v25, 0.0 }
 0x155   :  { %v891_v57 = vsel %vm747_vm5, %v5959_v60, 0.0  ;;  %v1145_v46 = vsel %vm893_vm14, %v5964_v0, -inf  ;;  %v1155_v29 = vmax.f32 %v1153_v34, %v1154_v27  ;;  %vm748_vm13 = vcmp.gt.f32.partialorder %v1346_v24, -5e+29  ;;  %p1355_p4 = pnand %p1354_p3, %p1348_p0 }
 0x156   :  { %v860_v39 = vsel %vm716_vm9, %v5963_v15, 0.0  ;;  %v1131_v49 = vmax.f32 %v1129_v14, %v1130_v42  ;;  %v1144_v36 = vmax.f32 %v1142_v22, %v1143_v10  ;;  %v1158_v59 = vsel %vm893_vm14, %v844_v43, -inf }
 0x157   :  { %v5966_v48 = vmax.f32 %v5965_v56, 0.0  ;;  %v1147_v20 = vsel %vm893_vm14, %v891_v57, -inf  ;;  %v1157_v9 = vmax.f32 %v1155_v29, %v1156_v41  ;;  %v1160_v47 = vsel %vm893_vm14, %v860_v39, -inf }
 0x158   :  { %v1146_v5 = vmax.f32 %v1144_v36, %v1145_v46  ;;  %1179 = vst.msk [vmem:[#allocation2 + $0x68] sm:$0xff] %vm893_vm14, %v1131_v49  ;;  %v892_v52 = vsel %vm748_vm13, %v604_v1, 0.0 }
 0x159   :  { %v876_v31 = vsel %vm732_vm10, %v5966_v48, 0.0  ;;  %v1159_v40 = vmax.f32 %v1157_v9, %v1158_v59  ;;  %v1164_v21 = vsel %vm893_vm14, %v892_v52, -inf }
 0x15a   :  { %v1148_v18 = vmax.f32 %v1146_v5, %v1147_v20  ;;  %v1162_v55 = vsel %vm893_vm14, %v876_v31, -inf }
 0x15b   :  { %v1161_v23 = vmax.f32 %v1159_v40, %v1160_v47 }
 0x15c   :  { %1180 = vst.msk [vmem:[#allocation2 + $0x70] sm:$0xff] %vm893_vm14, %v1148_v18 }
 0x15d   :  { %v1163_v17 = vmax.f32 %v1161_v23, %v1162_v55 }
 0x15f   :  { %v1165_v26 = vmax.f32 %v1163_v17, %v1164_v21 }
 0x161   :  { %1181 = vst.msk [vmem:[#allocation2 + $0x78] sm:$0xff] %vm893_vm14, %v1165_v26 }
 0x162   :  { %1358 = shalt.err (!%p1355_p4)
}
 0x163   :  { %s1370_s19 = smov 128   ;;  %s1371_s20 = smov 8  }
 0x164   :  { %1193 = dma.vmem_to_hbm [thread:$0]  %s1188_s17, 2048, %s4899_s3, [#allocation3], %s1370_s19, %s1370_s19, %s1371_s20  }
 0x165   :  { %1367 = dma.done.wait [#allocation3], 2048  }
 0x166   :  { %1368 = vsyncadd [#allocation3], 4294965248 }
 0x167   :  { %1197 = vsyncpa [#allocation3], 1 }

</bundles_post_ra>
